<compile_context>
chip_gen: v6e
topology: v6e:2x2x1
jax: 0.10.0
libtpu: 0.0.40
codegen_flags: <defaults>
</compile_context>

<pallas_src>
import functools

import jax
import jax.numpy as jnp
from jax import lax
from jax.experimental import pallas as pl
from jax.experimental.pallas import tpu as pltpu

KH, KW = 5, 5
PAD = 2
EPS = 1e-5
C_PAD = 128  # lane-dense channel count (real C = 120)


def _pick_block(n, cands=(8, 4, 2, 1)):
    for c in cands:
        if n % c == 0:
            return c
    return 1


def _dwconv_bn_kernel(x_ref, w_ref, gamma_ref, beta_ref, o_ref,
                      xs1, xs2, xs3, xs4, *, block_rows, shift_rows):
    # x_ref:       (N, H+4, Wp, C_PAD)  zero-padded input (spatial + channel), VMEM
    # w_ref:       (25, C_PAD)          depthwise taps (kh*5+kw, c)
    # gamma_ref:   (1, C_PAD)
    # beta_ref:    (1, C_PAD)
    # o_ref:       (N, H, W, C_PAD)
    # xs1..xs4:    (N, H+4, Wp, C_PAD)  VMEM scratch: input shifted by kw=1..4
    N, Hp, Wp, C = x_ref.shape
    H, W = Hp - (KH - 1), Wp - (KW - 1)
    BR = block_rows
    SH = shift_rows
    srcs = [x_ref, xs1, xs2, xs3, xs4]   # srcs[kw][n, h, w, c] == x_pad[n, h, w+kw, c]

    # ---- pass 0: W-shifted copies (one relayout per row per kw, done once) --
    def shift_block(hb, _):
        h0 = hb * SH
        row = x_ref[:, pl.ds(h0, SH), :, :]                    # aligned load (N,SH,Wp,C)
        for kw in range(1, KW):
            dst = srcs[kw]
            dst[:, pl.ds(h0, SH), pl.ds(0, Wp - kw), :] = row[:, :, kw:, :]
            dst[:, pl.ds(h0, SH), pl.ds(Wp - kw, kw), :] = jnp.zeros(
                (N, SH, kw, C), jnp.float32)
        return 0

    lax.fori_loop(0, Hp // SH, shift_block, 0)

    w_all = w_ref[...]  # (25, C), 4 vregs, loop-invariant

    # ---- pass 1: depthwise 5x5 conv, BR output rows per iteration -----------
    def conv_block(rb, carry):
        s, sq = carry
        r0 = rb * BR
        acc = jnp.zeros((N, BR, W, C), jnp.float32)
        for kh in range(KH):
            for kw in range(KW):
                tap = kh * KW + kw
                # pure address-offset load: row offset on a leading axis,
                # column slice starts at 0 -> no sublane relayout.
                v = srcs[kw][:, pl.ds(r0 + kh, BR), pl.ds(0, W), :]
                acc = acc + v * w_all[tap:tap + 1]
        o_ref[:, pl.ds(r0, BR), :, :] = acc
        ps = jnp.sum(acc, axis=(0, 1, 2), keepdims=True).reshape(1, C)
        psq = jnp.sum(acc * acc, axis=(0, 1, 2), keepdims=True).reshape(1, C)
        return s + ps, sq + psq

    zeros_c = jnp.zeros((1, C), jnp.float32)
    s, sq = lax.fori_loop(0, H // BR, conv_block, (zeros_c, zeros_c))

    # ---- batchnorm (training-mode batch stats), folded to scale/shift -------
    inv_cnt = 1.0 / float(N * H * W)
    mean = s * inv_cnt                                         # (1, C)
    var = jnp.maximum(sq * inv_cnt - mean * mean, 0.0)         # biased variance
    a = gamma_ref[...] * lax.rsqrt(var + EPS)                  # (1, C)
    b = beta_ref[...] - mean * a                               # (1, C)

    # ---- pass 2: normalize in place, block by block --------------------------
    def norm_block(rb, _):
        r0 = rb * BR
        blk = o_ref[:, pl.ds(r0, BR), :, :]
        o_ref[:, pl.ds(r0, BR), :, :] = blk * a + b
        return 0

    lax.fori_loop(0, H // BR, norm_block, 0)


@jax.jit
def dwconv_bn(x_nchw, w_oihw, gamma, beta):
    """x_nchw: (N, C, H, W) f32; w_oihw: (C, 1, 5, 5); gamma/beta: (C,)."""
    N, C, H, W = x_nchw.shape
    assert C <= C_PAD
    Hp, Wp = H + 2 * PAD, W + 2 * PAD
    block_rows = _pick_block(H, (4, 2, 1))
    shift_rows = _pick_block(Hp, (8, 4, 2, 1))
    cpad = C_PAD - C

    # NCHW -> NHWC, then a single fused pad: spatial halo (2) + channel 120->128.
    x_nhwc = jnp.transpose(x_nchw, (0, 2, 3, 1))
    x_pad = jnp.pad(x_nhwc, ((0, 0), (PAD, PAD), (PAD, PAD), (0, cpad)))

    # (C, 1, 5, 5) -> (25, C_PAD) tap-major layout.
    w_taps = jnp.transpose(w_oihw[:, 0, :, :], (1, 2, 0)).reshape(KH * KW, C)
    w_taps = jnp.pad(w_taps, ((0, 0), (0, cpad)))
    gamma2 = jnp.pad(gamma.reshape(1, C), ((0, 0), (0, cpad)))
    beta2 = jnp.pad(beta.reshape(1, C), ((0, 0), (0, cpad)))

    out_nhwc = pl.pallas_call(
        functools.partial(_dwconv_bn_kernel,
                          block_rows=block_rows, shift_rows=shift_rows),
        out_shape=jax.ShapeDtypeStruct((N, H, W, C_PAD), jnp.float32),
        in_specs=[
            pl.BlockSpec(memory_space=pltpu.MemorySpace.VMEM),
            pl.BlockSpec(memory_space=pltpu.MemorySpace.VMEM),
            pl.BlockSpec(memory_space=pltpu.MemorySpace.VMEM),
            pl.BlockSpec(memory_space=pltpu.MemorySpace.VMEM),
        ],
        out_specs=pl.BlockSpec(memory_space=pltpu.MemorySpace.VMEM),
        scratch_shapes=[pltpu.VMEM((N, Hp, Wp, C_PAD), jnp.float32)
                        for _ in range(KW - 1)],
    )(x_pad, w_taps, gamma2, beta2)

    # Drop padded channels; NHWC -> NCHW to match PyTorch output convention.
    return jnp.transpose(out_nhwc[..., :C], (0, 3, 1, 2))


def _reference(x_nchw, w_oihw, gamma, beta):
    """Pure-JAX reference (lax depthwise conv + training-mode batchnorm)."""
    C = x_nchw.shape[1]
    conv = lax.conv_general_dilated(
        x_nchw, w_oihw,
        window_strides=(1, 1), padding=((PAD, PAD), (PAD, PAD)),
        dimension_numbers=("NCHW", "OIHW", "NCHW"),
        feature_group_count=C, precision=lax.Precision.HIGHEST)
    mean = jnp.mean(conv, axis=(0, 2, 3), keepdims=True)
    var = jnp.mean((conv - mean) ** 2, axis=(0, 2, 3), keepdims=True)
    y = (conv - mean) * lax.rsqrt(var + EPS)
    return y * gamma.reshape(1, C, 1, 1) + beta.reshape(1, C, 1, 1)


if __name__ == "__main__":
    key = jax.random.PRNGKey(0)
    kx, kw, kg, kb = jax.random.split(key, 4)

    # Shapes fixed by the module: (1, 120, 28, 28) input, 120 depthwise channels.
    N, C, H, W = 1, 120, 28, 28
    x = jax.random.normal(kx, (N, C, H, W), dtype=jnp.float32)
    w = jax.random.normal(kw, (C, 1, KH, KW), dtype=jnp.float32) * 0.1
    gamma = 1.0 + 0.1 * jax.random.normal(kg, (C,), dtype=jnp.float32)
    beta = 0.1 * jax.random.normal(kb, (C,), dtype=jnp.float32)

    out = dwconv_bn(x, w, gamma, beta)
    out = jax.block_until_ready(out)

    ref = jax.block_until_ready(_reference(x, w, gamma, beta))
    assert out.shape == (N, C, H, W)
    assert jnp.max(jnp.abs(out - ref)) < 1e-3, "mismatch vs reference"

    # TODO(synk): BatchNorm running_mean/var (momentum) state update is module
    # state, not part of the returned forward value, so it is not computed here.

    print("KERNEL_OK")
</pallas_src>

<mosaic_0001>
module attributes {stable_mosaic.version = 11 : i64} {
  func.func @_dwconv_bn_kernel(%arg0: memref<1x32x32x128xf32, #tpu.memory_space<vmem>>, %arg1: memref<25x128xf32, #tpu.memory_space<vmem>>, %arg2: memref<1x128xf32, #tpu.memory_space<vmem>>, %arg3: memref<1x128xf32, #tpu.memory_space<vmem>>, %arg4: memref<1x28x28x128xf32, #tpu.memory_space<vmem>>, %arg5: memref<1x32x32x128xf32, #tpu.memory_space<vmem>>, %arg6: memref<1x32x32x128xf32, #tpu.memory_space<vmem>>, %arg7: memref<1x32x32x128xf32, #tpu.memory_space<vmem>>, %arg8: memref<1x32x32x128xf32, #tpu.memory_space<vmem>>) attributes {dimension_semantics = [], scalar_prefetch = 0 : i64, scratch_operands = 4 : i64, tpu.core_type = #tpu.core_type<tc>} {
    %c0_i32 = arith.constant 0 : i32
    %c4_i32 = arith.constant 4 : i32
    %0 = arith.addi %c0_i32, %c4_i32 : i32
    %c1_i32 = arith.constant 1 : i32
    scf.for %arg9 = %c0_i32 to %0 step %c1_i32  : i32 {
      %c8_i32 = arith.constant 8 : i32
      %22 = arith.muli %arg9, %c8_i32 : i32
      %c0_17 = arith.constant 0 : index
      %23 = arith.index_cast %22 : i32 to index
      %c0_18 = arith.constant 0 : index
      %c0_19 = arith.constant 0 : index
      %24 = vector.load %arg0[%c0_17, %23, %c0_18, %c0_19] : memref<1x32x32x128xf32, #tpu.memory_space<vmem>>, vector<1x8x32x128xf32>
      %25 = vector.extract_strided_slice %24 {offsets = [0, 0, 1, 0], sizes = [1, 8, 31, 128], strides = [1, 1, 1, 1]} : vector<1x8x32x128xf32> to vector<1x8x31x128xf32>
      %c0_20 = arith.constant 0 : index
      %26 = arith.index_cast %22 : i32 to index
      %c0_21 = arith.constant 0 : index
      %c0_22 = arith.constant 0 : index
      %27 = vector.load %arg5[%c0_20, %26, %c0_21, %c0_22] : memref<1x32x32x128xf32, #tpu.memory_space<vmem>>, vector<1x8x31x128xf32>
      tpu.vector_store %arg5[%c0_20, %26, %c0_21, %c0_22], %25 {strides = array<i32>} : memref<1x32x32x128xf32, #tpu.memory_space<vmem>>, vector<1x8x31x128xf32>,
      %cst_23 = arith.constant 0.000000e+00 : f32
      %28 = vector.broadcast %cst_23 : f32 to vector<1x8x1x128xf32>
      %c0_24 = arith.constant 0 : index
      %29 = arith.index_cast %22 : i32 to index
      %c31 = arith.constant 31 : index
      %c0_25 = arith.constant 0 : index
      %30 = vector.load %arg5[%c0_24, %29, %c31, %c0_25] : memref<1x32x32x128xf32, #tpu.memory_space<vmem>>, vector<1x8x1x128xf32>
      tpu.vector_store %arg5[%c0_24, %29, %c31, %c0_25], %28 {strides = array<i32>} : memref<1x32x32x128xf32, #tpu.memory_space<vmem>>, vector<1x8x1x128xf32>,
      %31 = vector.extract_strided_slice %24 {offsets = [0, 0, 2, 0], sizes = [1, 8, 30, 128], strides = [1, 1, 1, 1]} : vector<1x8x32x128xf32> to vector<1x8x30x128xf32>
      %c0_26 = arith.constant 0 : index
      %32 = arith.index_cast %22 : i32 to index
      %c0_27 = arith.constant 0 : index
      %c0_28 = arith.constant 0 : index
      %33 = vector.load %arg6[%c0_26, %32, %c0_27, %c0_28] : memref<1x32x32x128xf32, #tpu.memory_space<vmem>>, vector<1x8x30x128xf32>
      tpu.vector_store %arg6[%c0_26, %32, %c0_27, %c0_28], %31 {strides = array<i32>} : memref<1x32x32x128xf32, #tpu.memory_space<vmem>>, vector<1x8x30x128xf32>,
      %cst_29 = arith.constant 0.000000e+00 : f32
      %34 = vector.broadcast %cst_29 : f32 to vector<1x8x2x128xf32>
      %c0_30 = arith.constant 0 : index
      %35 = arith.index_cast %22 : i32 to index
      %c30 = arith.constant 30 : index
      %c0_31 = arith.constant 0 : index
      %36 = vector.load %arg6[%c0_30, %35, %c30, %c0_31] : memref<1x32x32x128xf32, #tpu.memory_space<vmem>>, vector<1x8x2x128xf32>
      tpu.vector_store %arg6[%c0_30, %35, %c30, %c0_31], %34 {strides = array<i32>} : memref<1x32x32x128xf32, #tpu.memory_space<vmem>>, vector<1x8x2x128xf32>,
      %37 = vector.extract_strided_slice %24 {offsets = [0, 0, 3, 0], sizes = [1, 8, 29, 128], strides = [1, 1, 1, 1]} : vector<1x8x32x128xf32> to vector<1x8x29x128xf32>
      %c0_32 = arith.constant 0 : index
      %38 = arith.index_cast %22 : i32 to index
      %c0_33 = arith.constant 0 : index
      %c0_34 = arith.constant 0 : index
      %39 = vector.load %arg7[%c0_32, %38, %c0_33, %c0_34] : memref<1x32x32x128xf32, #tpu.memory_space<vmem>>, vector<1x8x29x128xf32>
      tpu.vector_store %arg7[%c0_32, %38, %c0_33, %c0_34], %37 {strides = array<i32>} : memref<1x32x32x128xf32, #tpu.memory_space<vmem>>, vector<1x8x29x128xf32>,
      %cst_35 = arith.constant 0.000000e+00 : f32
      %40 = vector.broadcast %cst_35 : f32 to vector<1x8x3x128xf32>
      %c0_36 = arith.constant 0 : index
      %41 = arith.index_cast %22 : i32 to index
      %c29 = arith.constant 29 : index
      %c0_37 = arith.constant 0 : index
      %42 = vector.load %arg7[%c0_36, %41, %c29, %c0_37] : memref<1x32x32x128xf32, #tpu.memory_space<vmem>>, vector<1x8x3x128xf32>
      tpu.vector_store %arg7[%c0_36, %41, %c29, %c0_37], %40 {strides = array<i32>} : memref<1x32x32x128xf32, #tpu.memory_space<vmem>>, vector<1x8x3x128xf32>,
      %43 = vector.extract_strided_slice %24 {offsets = [0, 0, 4, 0], sizes = [1, 8, 28, 128], strides = [1, 1, 1, 1]} : vector<1x8x32x128xf32> to vector<1x8x28x128xf32>
      %c0_38 = arith.constant 0 : index
      %44 = arith.index_cast %22 : i32 to index
      %c0_39 = arith.constant 0 : index
      %c0_40 = arith.constant 0 : index
      %45 = vector.load %arg8[%c0_38, %44, %c0_39, %c0_40] : memref<1x32x32x128xf32, #tpu.memory_space<vmem>>, vector<1x8x28x128xf32>
      tpu.vector_store %arg8[%c0_38, %44, %c0_39, %c0_40], %43 {strides = array<i32>} : memref<1x32x32x128xf32, #tpu.memory_space<vmem>>, vector<1x8x28x128xf32>,
      %cst_41 = arith.constant 0.000000e+00 : f32
      %46 = vector.broadcast %cst_41 : f32 to vector<1x8x4x128xf32>
      %c0_42 = arith.constant 0 : index
      %47 = arith.index_cast %22 : i32 to index
      %c28 = arith.constant 28 : index
      %c0_43 = arith.constant 0 : index
      %48 = vector.load %arg8[%c0_42, %47, %c28, %c0_43] : memref<1x32x32x128xf32, #tpu.memory_space<vmem>>, vector<1x8x4x128xf32>
      tpu.vector_store %arg8[%c0_42, %47, %c28, %c0_43], %46 {strides = array<i32>} : memref<1x32x32x128xf32, #tpu.memory_space<vmem>>, vector<1x8x4x128xf32>,
    }
    %c4_i32_0 = arith.constant 4 : i32
    %c0 = arith.constant 0 : index
    %c0_1 = arith.constant 0 : index
    %1 = vector.load %arg1[%c0, %c0_1] : memref<25x128xf32, #tpu.memory_space<vmem>>, vector<25x128xf32>
    %cst = arith.constant 0.000000e+00 : f32
    %2 = vector.broadcast %cst : f32 to vector<1x128xf32>
    %c0_i32_2 = arith.constant 0 : i32
    %c7_i32 = arith.constant 7 : i32
    %3 = arith.addi %c0_i32_2, %c7_i32 : i32
    %c1_i32_3 = arith.constant 1 : i32
    %4:2 = scf.for %arg9 = %c0_i32_2 to %3 step %c1_i32_3 iter_args(%arg10 = %2, %arg11 = %2) -> (vector<1x128xf32>, vector<1x128xf32>)  : i32 {
      %c4_i32_17 = arith.constant 4 : i32
      %22 = arith.muli %arg9, %c4_i32_17 : i32
      %cst_18 = arith.constant 0.000000e+00 : f32
      %23 = vector.broadcast %cst_18 : f32 to vector<1x4x28x128xf32>
      %c0_i32_19 = arith.constant 0 : i32
      %24 = arith.addi %22, %c0_i32_19 : i32
      %c0_20 = arith.constant 0 : index
      %25 = arith.index_cast %24 : i32 to index
      %c0_21 = arith.constant 0 : index
      %c0_22 = arith.constant 0 : index
      %26 = vector.load %arg0[%c0_20, %25, %c0_21, %c0_22] : memref<1x32x32x128xf32, #tpu.memory_space<vmem>>, vector<1x4x28x128xf32>
      %27 = vector.extract_strided_slice %1 {offsets = [0, 0], sizes = [1, 128], strides = [1, 1]} : vector<25x128xf32> to vector<1x128xf32>
      %28 = vector.shape_cast %27 : vector<1x128xf32> to vector<1x1x1x128xf32>
      %29 = vector.broadcast %28 : vector<1x1x1x128xf32> to vector<1x4x28x128xf32>
      %30 = arith.mulf %26, %29 : vector<1x4x28x128xf32>
      %31 = arith.addf %23, %30 : vector<1x4x28x128xf32>
      %c0_i32_23 = arith.constant 0 : i32
      %32 = arith.addi %22, %c0_i32_23 : i32
      %c0_24 = arith.constant 0 : index
      %33 = arith.index_cast %32 : i32 to index
      %c0_25 = arith.constant 0 : index
      %c0_26 = arith.constant 0 : index
      %34 = vector.load %arg5[%c0_24, %33, %c0_25, %c0_26] : memref<1x32x32x128xf32, #tpu.memory_space<vmem>>, vector<1x4x28x128xf32>
      %35 = vector.extract_strided_slice %1 {offsets = [1, 0], sizes = [1, 128], strides = [1, 1]} : vector<25x128xf32> to vector<1x128xf32>
      %36 = vector.shape_cast %35 : vector<1x128xf32> to vector<1x1x1x128xf32>
      %37 = vector.broadcast %36 : vector<1x1x1x128xf32> to vector<1x4x28x128xf32>
      %38 = arith.mulf %34, %37 : vector<1x4x28x128xf32>
      %39 = arith.addf %31, %38 : vector<1x4x28x128xf32>
      %c0_i32_27 = arith.constant 0 : i32
      %40 = arith.addi %22, %c0_i32_27 : i32
      %c0_28 = arith.constant 0 : index
      %41 = arith.index_cast %40 : i32 to index
      %c0_29 = arith.constant 0 : index
      %c0_30 = arith.constant 0 : index
      %42 = vector.load %arg6[%c0_28, %41, %c0_29, %c0_30] : memref<1x32x32x128xf32, #tpu.memory_space<vmem>>, vector<1x4x28x128xf32>
      %43 = vector.extract_strided_slice %1 {offsets = [2, 0], sizes = [1, 128], strides = [1, 1]} : vector<25x128xf32> to vector<1x128xf32>
      %44 = vector.shape_cast %43 : vector<1x128xf32> to vector<1x1x1x128xf32>
      %45 = vector.broadcast %44 : vector<1x1x1x128xf32> to vector<1x4x28x128xf32>
      %46 = arith.mulf %42, %45 : vector<1x4x28x128xf32>
      %47 = arith.addf %39, %46 : vector<1x4x28x128xf32>
      %c0_i32_31 = arith.constant 0 : i32
      %48 = arith.addi %22, %c0_i32_31 : i32
      %c0_32 = arith.constant 0 : index
      %49 = arith.index_cast %48 : i32 to index
      %c0_33 = arith.constant 0 : index
      %c0_34 = arith.constant 0 : index
      %50 = vector.load %arg7[%c0_32, %49, %c0_33, %c0_34] : memref<1x32x32x128xf32, #tpu.memory_space<vmem>>, vector<1x4x28x128xf32>
      %51 = vector.extract_strided_slice %1 {offsets = [3, 0], sizes = [1, 128], strides = [1, 1]} : vector<25x128xf32> to vector<1x128xf32>
      %52 = vector.shape_cast %51 : vector<1x128xf32> to vector<1x1x1x128xf32>
      %53 = vector.broadcast %52 : vector<1x1x1x128xf32> to vector<1x4x28x128xf32>
      %54 = arith.mulf %50, %53 : vector<1x4x28x128xf32>
      %55 = arith.addf %47, %54 : vector<1x4x28x128xf32>
      %c0_i32_35 = arith.constant 0 : i32
      %56 = arith.addi %22, %c0_i32_35 : i32
      %c0_36 = arith.constant 0 : index
      %57 = arith.index_cast %56 : i32 to index
      %c0_37 = arith.constant 0 : index
      %c0_38 = arith.constant 0 : index
      %58 = vector.load %arg8[%c0_36, %57, %c0_37, %c0_38] : memref<1x32x32x128xf32, #tpu.memory_space<vmem>>, vector<1x4x28x128xf32>
      %59 = vector.extract_strided_slice %1 {offsets = [4, 0], sizes = [1, 128], strides = [1, 1]} : vector<25x128xf32> to vector<1x128xf32>
      %60 = vector.shape_cast %59 : vector<1x128xf32> to vector<1x1x1x128xf32>
      %61 = vector.broadcast %60 : vector<1x1x1x128xf32> to vector<1x4x28x128xf32>
      %62 = arith.mulf %58, %61 : vector<1x4x28x128xf32>
      %63 = arith.addf %55, %62 : vector<1x4x28x128xf32>
      %c1_i32_39 = arith.constant 1 : i32
      %64 = arith.addi %22, %c1_i32_39 : i32
      %c0_40 = arith.constant 0 : index
      %65 = arith.index_cast %64 : i32 to index
      %c0_41 = arith.constant 0 : index
      %c0_42 = arith.constant 0 : index
      %66 = vector.load %arg0[%c0_40, %65, %c0_41, %c0_42] : memref<1x32x32x128xf32, #tpu.memory_space<vmem>>, vector<1x4x28x128xf32>
      %67 = vector.extract_strided_slice %1 {offsets = [5, 0], sizes = [1, 128], strides = [1, 1]} : vector<25x128xf32> to vector<1x128xf32>
      %68 = vector.shape_cast %67 : vector<1x128xf32> to vector<1x1x1x128xf32>
      %69 = vector.broadcast %68 : vector<1x1x1x128xf32> to vector<1x4x28x128xf32>
      %70 = arith.mulf %66, %69 : vector<1x4x28x128xf32>
      %71 = arith.addf %63, %70 : vector<1x4x28x128xf32>
      %c1_i32_43 = arith.constant 1 : i32
      %72 = arith.addi %22, %c1_i32_43 : i32
      %c0_44 = arith.constant 0 : index
      %73 = arith.index_cast %72 : i32 to index
      %c0_45 = arith.constant 0 : index
      %c0_46 = arith.constant 0 : index
      %74 = vector.load %arg5[%c0_44, %73, %c0_45, %c0_46] : memref<1x32x32x128xf32, #tpu.memory_space<vmem>>, vector<1x4x28x128xf32>
      %75 = vector.extract_strided_slice %1 {offsets = [6, 0], sizes = [1, 128], strides = [1, 1]} : vector<25x128xf32> to vector<1x128xf32>
      %76 = vector.shape_cast %75 : vector<1x128xf32> to vector<1x1x1x128xf32>
      %77 = vector.broadcast %76 : vector<1x1x1x128xf32> to vector<1x4x28x128xf32>
      %78 = arith.mulf %74, %77 : vector<1x4x28x128xf32>
      %79 = arith.addf %71, %78 : vector<1x4x28x128xf32>
      %c1_i32_47 = arith.constant 1 : i32
      %80 = arith.addi %22, %c1_i32_47 : i32
      %c0_48 = arith.constant 0 : index
      %81 = arith.index_cast %80 : i32 to index
      %c0_49 = arith.constant 0 : index
      %c0_50 = arith.constant 0 : index
      %82 = vector.load %arg6[%c0_48, %81, %c0_49, %c0_50] : memref<1x32x32x128xf32, #tpu.memory_space<vmem>>, vector<1x4x28x128xf32>
      %83 = vector.extract_strided_slice %1 {offsets = [7, 0], sizes = [1, 128], strides = [1, 1]} : vector<25x128xf32> to vector<1x128xf32>
      %84 = vector.shape_cast %83 : vector<1x128xf32> to vector<1x1x1x128xf32>
      %85 = vector.broadcast %84 : vector<1x1x1x128xf32> to vector<1x4x28x128xf32>
      %86 = arith.mulf %82, %85 : vector<1x4x28x128xf32>
      %87 = arith.addf %79, %86 : vector<1x4x28x128xf32>
      %c1_i32_51 = arith.constant 1 : i32
      %88 = arith.addi %22, %c1_i32_51 : i32
      %c0_52 = arith.constant 0 : index
      %89 = arith.index_cast %88 : i32 to index
      %c0_53 = arith.constant 0 : index
      %c0_54 = arith.constant 0 : index
      %90 = vector.load %arg7[%c0_52, %89, %c0_53, %c0_54] : memref<1x32x32x128xf32, #tpu.memory_space<vmem>>, vector<1x4x28x128xf32>
      %91 = vector.extract_strided_slice %1 {offsets = [8, 0], sizes = [1, 128], strides = [1, 1]} : vector<25x128xf32> to vector<1x128xf32>
      %92 = vector.shape_cast %91 : vector<1x128xf32> to vector<1x1x1x128xf32>
      %93 = vector.broadcast %92 : vector<1x1x1x128xf32> to vector<1x4x28x128xf32>
      %94 = arith.mulf %90, %93 : vector<1x4x28x128xf32>
      %95 = arith.addf %87, %94 : vector<1x4x28x128xf32>
      %c1_i32_55 = arith.constant 1 : i32
      %96 = arith.addi %22, %c1_i32_55 : i32
      %c0_56 = arith.constant 0 : index
      %97 = arith.index_cast %96 : i32 to index
      %c0_57 = arith.constant 0 : index
      %c0_58 = arith.constant 0 : index
      %98 = vector.load %arg8[%c0_56, %97, %c0_57, %c0_58] : memref<1x32x32x128xf32, #tpu.memory_space<vmem>>, vector<1x4x28x128xf32>
      %99 = vector.extract_strided_slice %1 {offsets = [9, 0], sizes = [1, 128], strides = [1, 1]} : vector<25x128xf32> to vector<1x128xf32>
      %100 = vector.shape_cast %99 : vector<1x128xf32> to vector<1x1x1x128xf32>
      %101 = vector.broadcast %100 : vector<1x1x1x128xf32> to vector<1x4x28x128xf32>
      %102 = arith.mulf %98, %101 : vector<1x4x28x128xf32>
      %103 = arith.addf %95, %102 : vector<1x4x28x128xf32>
      %c2_i32 = arith.constant 2 : i32
      %104 = arith.addi %22, %c2_i32 : i32
      %c0_59 = arith.constant 0 : index
      %105 = arith.index_cast %104 : i32 to index
      %c0_60 = arith.constant 0 : index
      %c0_61 = arith.constant 0 : index
      %106 = vector.load %arg0[%c0_59, %105, %c0_60, %c0_61] : memref<1x32x32x128xf32, #tpu.memory_space<vmem>>, vector<1x4x28x128xf32>
      %107 = vector.extract_strided_slice %1 {offsets = [10, 0], sizes = [1, 128], strides = [1, 1]} : vector<25x128xf32> to vector<1x128xf32>
      %108 = vector.shape_cast %107 : vector<1x128xf32> to vector<1x1x1x128xf32>
      %109 = vector.broadcast %108 : vector<1x1x1x128xf32> to vector<1x4x28x128xf32>
      %110 = arith.mulf %106, %109 : vector<1x4x28x128xf32>
      %111 = arith.addf %103, %110 : vector<1x4x28x128xf32>
      %c2_i32_62 = arith.constant 2 : i32
      %112 = arith.addi %22, %c2_i32_62 : i32
      %c0_63 = arith.constant 0 : index
      %113 = arith.index_cast %112 : i32 to index
      %c0_64 = arith.constant 0 : index
      %c0_65 = arith.constant 0 : index
      %114 = vector.load %arg5[%c0_63, %113, %c0_64, %c0_65] : memref<1x32x32x128xf32, #tpu.memory_space<vmem>>, vector<1x4x28x128xf32>
      %115 = vector.extract_strided_slice %1 {offsets = [11, 0], sizes = [1, 128], strides = [1, 1]} : vector<25x128xf32> to vector<1x128xf32>
      %116 = vector.shape_cast %115 : vector<1x128xf32> to vector<1x1x1x128xf32>
      %117 = vector.broadcast %116 : vector<1x1x1x128xf32> to vector<1x4x28x128xf32>
      %118 = arith.mulf %114, %117 : vector<1x4x28x128xf32>
      %119 = arith.addf %111, %118 : vector<1x4x28x128xf32>
      %c2_i32_66 = arith.constant 2 : i32
      %120 = arith.addi %22, %c2_i32_66 : i32
      %c0_67 = arith.constant 0 : index
      %121 = arith.index_cast %120 : i32 to index
      %c0_68 = arith.constant 0 : index
      %c0_69 = arith.constant 0 : index
      %122 = vector.load %arg6[%c0_67, %121, %c0_68, %c0_69] : memref<1x32x32x128xf32, #tpu.memory_space<vmem>>, vector<1x4x28x128xf32>
      %123 = vector.extract_strided_slice %1 {offsets = [12, 0], sizes = [1, 128], strides = [1, 1]} : vector<25x128xf32> to vector<1x128xf32>
      %124 = vector.shape_cast %123 : vector<1x128xf32> to vector<1x1x1x128xf32>
      %125 = vector.broadcast %124 : vector<1x1x1x128xf32> to vector<1x4x28x128xf32>
      %126 = arith.mulf %122, %125 : vector<1x4x28x128xf32>
      %127 = arith.addf %119, %126 : vector<1x4x28x128xf32>
      %c2_i32_70 = arith.constant 2 : i32
      %128 = arith.addi %22, %c2_i32_70 : i32
      %c0_71 = arith.constant 0 : index
      %129 = arith.index_cast %128 : i32 to index
      %c0_72 = arith.constant 0 : index
      %c0_73 = arith.constant 0 : index
      %130 = vector.load %arg7[%c0_71, %129, %c0_72, %c0_73] : memref<1x32x32x128xf32, #tpu.memory_space<vmem>>, vector<1x4x28x128xf32>
      %131 = vector.extract_strided_slice %1 {offsets = [13, 0], sizes = [1, 128], strides = [1, 1]} : vector<25x128xf32> to vector<1x128xf32>
      %132 = vector.shape_cast %131 : vector<1x128xf32> to vector<1x1x1x128xf32>
      %133 = vector.broadcast %132 : vector<1x1x1x128xf32> to vector<1x4x28x128xf32>
      %134 = arith.mulf %130, %133 : vector<1x4x28x128xf32>
      %135 = arith.addf %127, %134 : vector<1x4x28x128xf32>
      %c2_i32_74 = arith.constant 2 : i32
      %136 = arith.addi %22, %c2_i32_74 : i32
      %c0_75 = arith.constant 0 : index
      %137 = arith.index_cast %136 : i32 to index
      %c0_76 = arith.constant 0 : index
      %c0_77 = arith.constant 0 : index
      %138 = vector.load %arg8[%c0_75, %137, %c0_76, %c0_77] : memref<1x32x32x128xf32, #tpu.memory_space<vmem>>, vector<1x4x28x128xf32>
      %139 = vector.extract_strided_slice %1 {offsets = [14, 0], sizes = [1, 128], strides = [1, 1]} : vector<25x128xf32> to vector<1x128xf32>
      %140 = vector.shape_cast %139 : vector<1x128xf32> to vector<1x1x1x128xf32>
      %141 = vector.broadcast %140 : vector<1x1x1x128xf32> to vector<1x4x28x128xf32>
      %142 = arith.mulf %138, %141 : vector<1x4x28x128xf32>
      %143 = arith.addf %135, %142 : vector<1x4x28x128xf32>
      %c3_i32 = arith.constant 3 : i32
      %144 = arith.addi %22, %c3_i32 : i32
      %c0_78 = arith.constant 0 : index
      %145 = arith.index_cast %144 : i32 to index
      %c0_79 = arith.constant 0 : index
      %c0_80 = arith.constant 0 : index
      %146 = vector.load %arg0[%c0_78, %145, %c0_79, %c0_80] : memref<1x32x32x128xf32, #tpu.memory_space<vmem>>, vector<1x4x28x128xf32>
      %147 = vector.extract_strided_slice %1 {offsets = [15, 0], sizes = [1, 128], strides = [1, 1]} : vector<25x128xf32> to vector<1x128xf32>
      %148 = vector.shape_cast %147 : vector<1x128xf32> to vector<1x1x1x128xf32>
      %149 = vector.broadcast %148 : vector<1x1x1x128xf32> to vector<1x4x28x128xf32>
      %150 = arith.mulf %146, %149 : vector<1x4x28x128xf32>
      %151 = arith.addf %143, %150 : vector<1x4x28x128xf32>
      %c3_i32_81 = arith.constant 3 : i32
      %152 = arith.addi %22, %c3_i32_81 : i32
      %c0_82 = arith.constant 0 : index
      %153 = arith.index_cast %152 : i32 to index
      %c0_83 = arith.constant 0 : index
      %c0_84 = arith.constant 0 : index
      %154 = vector.load %arg5[%c0_82, %153, %c0_83, %c0_84] : memref<1x32x32x128xf32, #tpu.memory_space<vmem>>, vector<1x4x28x128xf32>
      %155 = vector.extract_strided_slice %1 {offsets = [16, 0], sizes = [1, 128], strides = [1, 1]} : vector<25x128xf32> to vector<1x128xf32>
      %156 = vector.shape_cast %155 : vector<1x128xf32> to vector<1x1x1x128xf32>
      %157 = vector.broadcast %156 : vector<1x1x1x128xf32> to vector<1x4x28x128xf32>
      %158 = arith.mulf %154, %157 : vector<1x4x28x128xf32>
      %159 = arith.addf %151, %158 : vector<1x4x28x128xf32>
      %c3_i32_85 = arith.constant 3 : i32
      %160 = arith.addi %22, %c3_i32_85 : i32
      %c0_86 = arith.constant 0 : index
      %161 = arith.index_cast %160 : i32 to index
      %c0_87 = arith.constant 0 : index
      %c0_88 = arith.constant 0 : index
      %162 = vector.load %arg6[%c0_86, %161, %c0_87, %c0_88] : memref<1x32x32x128xf32, #tpu.memory_space<vmem>>, vector<1x4x28x128xf32>
      %163 = vector.extract_strided_slice %1 {offsets = [17, 0], sizes = [1, 128], strides = [1, 1]} : vector<25x128xf32> to vector<1x128xf32>
      %164 = vector.shape_cast %163 : vector<1x128xf32> to vector<1x1x1x128xf32>
      %165 = vector.broadcast %164 : vector<1x1x1x128xf32> to vector<1x4x28x128xf32>
      %166 = arith.mulf %162, %165 : vector<1x4x28x128xf32>
      %167 = arith.addf %159, %166 : vector<1x4x28x128xf32>
      %c3_i32_89 = arith.constant 3 : i32
      %168 = arith.addi %22, %c3_i32_89 : i32
      %c0_90 = arith.constant 0 : index
      %169 = arith.index_cast %168 : i32 to index
      %c0_91 = arith.constant 0 : index
      %c0_92 = arith.constant 0 : index
      %170 = vector.load %arg7[%c0_90, %169, %c0_91, %c0_92] : memref<1x32x32x128xf32, #tpu.memory_space<vmem>>, vector<1x4x28x128xf32>
      %171 = vector.extract_strided_slice %1 {offsets = [18, 0], sizes = [1, 128], strides = [1, 1]} : vector<25x128xf32> to vector<1x128xf32>
      %172 = vector.shape_cast %171 : vector<1x128xf32> to vector<1x1x1x128xf32>
      %173 = vector.broadcast %172 : vector<1x1x1x128xf32> to vector<1x4x28x128xf32>
      %174 = arith.mulf %170, %173 : vector<1x4x28x128xf32>
      %175 = arith.addf %167, %174 : vector<1x4x28x128xf32>
      %c3_i32_93 = arith.constant 3 : i32
      %176 = arith.addi %22, %c3_i32_93 : i32
      %c0_94 = arith.constant 0 : index
      %177 = arith.index_cast %176 : i32 to index
      %c0_95 = arith.constant 0 : index
      %c0_96 = arith.constant 0 : index
      %178 = vector.load %arg8[%c0_94, %177, %c0_95, %c0_96] : memref<1x32x32x128xf32, #tpu.memory_space<vmem>>, vector<1x4x28x128xf32>
      %179 = vector.extract_strided_slice %1 {offsets = [19, 0], sizes = [1, 128], strides = [1, 1]} : vector<25x128xf32> to vector<1x128xf32>
      %180 = vector.shape_cast %179 : vector<1x128xf32> to vector<1x1x1x128xf32>
      %181 = vector.broadcast %180 : vector<1x1x1x128xf32> to vector<1x4x28x128xf32>
      %182 = arith.mulf %178, %181 : vector<1x4x28x128xf32>
      %183 = arith.addf %175, %182 : vector<1x4x28x128xf32>
      %c4_i32_97 = arith.constant 4 : i32
      %184 = arith.addi %22, %c4_i32_97 : i32
      %c0_98 = arith.constant 0 : index
      %185 = arith.index_cast %184 : i32 to index
      %c0_99 = arith.constant 0 : index
      %c0_100 = arith.constant 0 : index
      %186 = vector.load %arg0[%c0_98, %185, %c0_99, %c0_100] : memref<1x32x32x128xf32, #tpu.memory_space<vmem>>, vector<1x4x28x128xf32>
      %187 = vector.extract_strided_slice %1 {offsets = [20, 0], sizes = [1, 128], strides = [1, 1]} : vector<25x128xf32> to vector<1x128xf32>
      %188 = vector.shape_cast %187 : vector<1x128xf32> to vector<1x1x1x128xf32>
      %189 = vector.broadcast %188 : vector<1x1x1x128xf32> to vector<1x4x28x128xf32>
      %190 = arith.mulf %186, %189 : vector<1x4x28x128xf32>
      %191 = arith.addf %183, %190 : vector<1x4x28x128xf32>
      %c4_i32_101 = arith.constant 4 : i32
      %192 = arith.addi %22, %c4_i32_101 : i32
      %c0_102 = arith.constant 0 : index
      %193 = arith.index_cast %192 : i32 to index
      %c0_103 = arith.constant 0 : index
      %c0_104 = arith.constant 0 : index
      %194 = vector.load %arg5[%c0_102, %193, %c0_103, %c0_104] : memref<1x32x32x128xf32, #tpu.memory_space<vmem>>, vector<1x4x28x128xf32>
      %195 = vector.extract_strided_slice %1 {offsets = [21, 0], sizes = [1, 128], strides = [1, 1]} : vector<25x128xf32> to vector<1x128xf32>
      %196 = vector.shape_cast %195 : vector<1x128xf32> to vector<1x1x1x128xf32>
      %197 = vector.broadcast %196 : vector<1x1x1x128xf32> to vector<1x4x28x128xf32>
      %198 = arith.mulf %194, %197 : vector<1x4x28x128xf32>
      %199 = arith.addf %191, %198 : vector<1x4x28x128xf32>
      %c4_i32_105 = arith.constant 4 : i32
      %200 = arith.addi %22, %c4_i32_105 : i32
      %c0_106 = arith.constant 0 : index
      %201 = arith.index_cast %200 : i32 to index
      %c0_107 = arith.constant 0 : index
      %c0_108 = arith.constant 0 : index
      %202 = vector.load %arg6[%c0_106, %201, %c0_107, %c0_108] : memref<1x32x32x128xf32, #tpu.memory_space<vmem>>, vector<1x4x28x128xf32>
      %203 = vector.extract_strided_slice %1 {offsets = [22, 0], sizes = [1, 128], strides = [1, 1]} : vector<25x128xf32> to vector<1x128xf32>
      %204 = vector.shape_cast %203 : vector<1x128xf32> to vector<1x1x1x128xf32>
      %205 = vector.broadcast %204 : vector<1x1x1x128xf32> to vector<1x4x28x128xf32>
      %206 = arith.mulf %202, %205 : vector<1x4x28x128xf32>
      %207 = arith.addf %199, %206 : vector<1x4x28x128xf32>
      %c4_i32_109 = arith.constant 4 : i32
      %208 = arith.addi %22, %c4_i32_109 : i32
      %c0_110 = arith.constant 0 : index
      %209 = arith.index_cast %208 : i32 to index
      %c0_111 = arith.constant 0 : index
      %c0_112 = arith.constant 0 : index
      %210 = vector.load %arg7[%c0_110, %209, %c0_111, %c0_112] : memref<1x32x32x128xf32, #tpu.memory_space<vmem>>, vector<1x4x28x128xf32>
      %211 = vector.extract_strided_slice %1 {offsets = [23, 0], sizes = [1, 128], strides = [1, 1]} : vector<25x128xf32> to vector<1x128xf32>
      %212 = vector.shape_cast %211 : vector<1x128xf32> to vector<1x1x1x128xf32>
      %213 = vector.broadcast %212 : vector<1x1x1x128xf32> to vector<1x4x28x128xf32>
      %214 = arith.mulf %210, %213 : vector<1x4x28x128xf32>
      %215 = arith.addf %207, %214 : vector<1x4x28x128xf32>
      %c4_i32_113 = arith.constant 4 : i32
      %216 = arith.addi %22, %c4_i32_113 : i32
      %c0_114 = arith.constant 0 : index
      %217 = arith.index_cast %216 : i32 to index
      %c0_115 = arith.constant 0 : index
      %c0_116 = arith.constant 0 : index
      %218 = vector.load %arg8[%c0_114, %217, %c0_115, %c0_116] : memref<1x32x32x128xf32, #tpu.memory_space<vmem>>, vector<1x4x28x128xf32>
      %219 = vector.extract_strided_slice %1 {offsets = [24, 0], sizes = [1, 128], strides = [1, 1]} : vector<25x128xf32> to vector<1x128xf32>
      %220 = vector.shape_cast %219 : vector<1x128xf32> to vector<1x1x1x128xf32>
      %221 = vector.broadcast %220 : vector<1x1x1x128xf32> to vector<1x4x28x128xf32>
      %222 = arith.mulf %218, %221 : vector<1x4x28x128xf32>
      %223 = arith.addf %215, %222 : vector<1x4x28x128xf32>
      %c0_117 = arith.constant 0 : index
      %224 = arith.index_cast %22 : i32 to index
      %c0_118 = arith.constant 0 : index
      %c0_119 = arith.constant 0 : index
      %225 = vector.load %arg4[%c0_117, %224, %c0_118, %c0_119] : memref<1x28x28x128xf32, #tpu.memory_space<vmem>>, vector<1x4x28x128xf32>
      tpu.vector_store %arg4[%c0_117, %224, %c0_118, %c0_119], %223 {strides = array<i32>} : memref<1x28x28x128xf32, #tpu.memory_space<vmem>>, vector<1x4x28x128xf32>,
      %cst_120 = arith.constant dense<0.000000e+00> : vector<128xf32>
      %226 = vector.multi_reduction <add>, %223, %cst_120 [0, 1, 2] : vector<1x4x28x128xf32> to vector<128xf32>
      %227 = vector.shape_cast %226 : vector<128xf32> to vector<1x1x1x128xf32>
      %228 = vector.shape_cast %227 : vector<1x1x1x128xf32> to vector<1x128xf32>
      %229 = arith.mulf %223, %223 : vector<1x4x28x128xf32>
      %cst_121 = arith.constant dense<0.000000e+00> : vector<128xf32>
      %230 = vector.multi_reduction <add>, %229, %cst_121 [0, 1, 2] : vector<1x4x28x128xf32> to vector<128xf32>
      %231 = vector.shape_cast %230 : vector<128xf32> to vector<1x1x1x128xf32>
      %232 = vector.shape_cast %231 : vector<1x1x1x128xf32> to vector<1x128xf32>
      %233 = arith.addf %arg10, %228 : vector<1x128xf32>
      %234 = arith.addf %arg11, %232 : vector<1x128xf32>
      scf.yield %233, %234 : vector<1x128xf32>, vector<1x128xf32>
    }
    %c7_i32_4 = arith.constant 7 : i32
    %cst_5 = arith.constant 0.00127551018 : f32
    %5 = vector.broadcast %cst_5 : f32 to vector<1x128xf32>
    %6 = arith.mulf %4#0, %5 : vector<1x128xf32>
    %cst_6 = arith.constant 0.00127551018 : f32
    %7 = vector.broadcast %cst_6 : f32 to vector<1x128xf32>
    %8 = arith.mulf %4#1, %7 : vector<1x128xf32>
    %9 = arith.mulf %6, %6 : vector<1x128xf32>
    %10 = arith.subf %8, %9 : vector<1x128xf32>
    %cst_7 = arith.constant 0.000000e+00 : f32
    %11 = vector.broadcast %cst_7 : f32 to vector<1x128xf32>
    %12 = arith.maximumf %10, %11 : vector<1x128xf32>
    %c0_8 = arith.constant 0 : index
    %c0_9 = arith.constant 0 : index
    %13 = vector.load %arg2[%c0_8, %c0_9] : memref<1x128xf32, #tpu.memory_space<vmem>>, vector<1x128xf32>
    %cst_10 = arith.constant 9.99999974E-6 : f32
    %14 = vector.broadcast %cst_10 : f32 to vector<1x128xf32>
    %15 = arith.addf %12, %14 : vector<1x128xf32>
    %16 = math.rsqrt %15 : vector<1x128xf32>
    %17 = arith.mulf %13, %16 : vector<1x128xf32>
    %c0_11 = arith.constant 0 : index
    %c0_12 = arith.constant 0 : index
    %18 = vector.load %arg3[%c0_11, %c0_12] : memref<1x128xf32, #tpu.memory_space<vmem>>, vector<1x128xf32>
    %19 = arith.mulf %6, %17 : vector<1x128xf32>
    %20 = arith.subf %18, %19 : vector<1x128xf32>
    %c0_i32_13 = arith.constant 0 : i32
    %c7_i32_14 = arith.constant 7 : i32
    %21 = arith.addi %c0_i32_13, %c7_i32_14 : i32
    %c1_i32_15 = arith.constant 1 : i32
    scf.for %arg9 = %c0_i32_13 to %21 step %c1_i32_15  : i32 {
      %c4_i32_17 = arith.constant 4 : i32
      %22 = arith.muli %arg9, %c4_i32_17 : i32
      %c0_18 = arith.constant 0 : index
      %23 = arith.index_cast %22 : i32 to index
      %c0_19 = arith.constant 0 : index
      %c0_20 = arith.constant 0 : index
      %24 = vector.load %arg4[%c0_18, %23, %c0_19, %c0_20] : memref<1x28x28x128xf32, #tpu.memory_space<vmem>>, vector<1x4x28x128xf32>
      %25 = vector.shape_cast %17 : vector<1x128xf32> to vector<1x1x1x128xf32>
      %26 = vector.broadcast %25 : vector<1x1x1x128xf32> to vector<1x4x28x128xf32>
      %27 = arith.mulf %24, %26 : vector<1x4x28x128xf32>
      %28 = vector.shape_cast %20 : vector<1x128xf32> to vector<1x1x1x128xf32>
      %29 = vector.broadcast %28 : vector<1x1x1x128xf32> to vector<1x4x28x128xf32>
      %30 = arith.addf %27, %29 : vector<1x4x28x128xf32>
      %c0_21 = arith.constant 0 : index
      %31 = arith.index_cast %22 : i32 to index
      %c0_22 = arith.constant 0 : index
      %c0_23 = arith.constant 0 : index
      %32 = vector.load %arg4[%c0_21, %31, %c0_22, %c0_23] : memref<1x28x28x128xf32, #tpu.memory_space<vmem>>, vector<1x4x28x128xf32>
      tpu.vector_store %arg4[%c0_21, %31, %c0_22, %c0_23], %30 {strides = array<i32>} : memref<1x28x28x128xf32, #tpu.memory_space<vmem>>, vector<1x4x28x128xf32>,
    }
    %c7_i32_16 = arith.constant 7 : i32
    return
  }
}

</mosaic_0001>

<bundles_post_ra>
// kernel: dwconv_bn.1
= control target key start
LH: loop header
LB: loop body
LE: loop exit
PB: predicated region body
PF: predicated region fallthrough
CT: control target
= control target key end

     0   :  { %s2380_s15 = smov 0   ;;  %s3888_s0 = inlined_call_operand.vmem [shape: f32[1,32,32,128], index: 0, kind: input, shape index: {}]   ;;  %s3889_s1 = inlined_call_operand.vmem [shape: f32[25,128], index: 1, kind: input, shape index: {}]   ;;  %s3890_s2 = inlined_call_operand.vmem [shape: f32[1,128], index: 2, kind: input, shape index: {}]   ;;  %s3891_s3 = inlined_call_operand.vmem [shape: f32[1,128], index: 3, kind: input, shape index: {}]   ;;  %s3892_s4 = inlined_call_operand.vmem [shape: f32[1,28,28,128], index: 4, kind: output, shape index: {}]  }
   0x1 LB: > { %s2386_s16 = sshll.u32 %s2336_s15, 8  ;;  %v2354_v3 = vmov 0.0   ;;  %s22_s15 = sadd.s32 1, %s2336_s15   ;;  %s2336_s15 = sphi %s2380_s15, %s22_s15  }
   0x2   : > { %s2392_s19 = scalar_lea.vmem %s3888_s0, %s2386_s16  ;;  %s2398_s20 = scalar_lea.vmem [#allocation2], %s2386_s16 }
   0x3   : > { %v26_v0 = vld [vmem:[%s2392_s19] sm:$0xff]  ;;  %v27_v1 = vld [vmem:[%s2392_s19 + $0x8] sm:$0xff]  ;;  %v28_v2 = vld [vmem:[%s2392_s19 + $0x10] sm:$0xff]  ;;  %91 = vst [vmem:[%s2398_s20 + $0x1f] sm:$0x1] %v2354_v3  ;;  %s2418_s21 = scalar_lea.vmem [#allocation3], %s2386_s16 }
   0x4   : > { %92 = vst [vmem:[%s2398_s20 + $0x3f] sm:$0x1] %v2354_v3  ;;  %93 = vst [vmem:[%s2398_s20 + $0x5f] sm:$0x1] %v2354_v3  ;;  %s2422_s22 = scalar_lea.vmem [#allocation4], %s2386_s16  ;;  %v29_v4 = vld [vmem:[%s2392_s19 + $0x18] sm:$0xff] }
   0x5   : > { %94 = vst [vmem:[%s2398_s20 + $0x7f] sm:$0x1] %v2354_v3  ;;  %95 = vst [vmem:[%s2398_s20 + $0x9f] sm:$0x1] %v2354_v3  ;;  %v30_v5 = vld [vmem:[%s2392_s19 + $0x20] sm:$0xff]  ;;  %v31_v6 = vld [vmem:[%s2392_s19 + $0x28] sm:$0xff] }
   0x6   : > { %96 = vst [vmem:[%s2398_s20 + $0xbf] sm:$0x1] %v2354_v3  ;;  %97 = vst [vmem:[%s2398_s20 + $0xdf] sm:$0x1] %v2354_v3  ;;  %s2467_s23 = scalar_lea.vmem [#allocation5], %s2386_s16  ;;  %v32_v7 = vld [vmem:[%s2392_s19 + $0x30] sm:$0xff] }
   0x7   : > { %98 = vst [vmem:[%s2398_s20 + $0xff] sm:$0x1] %v2354_v3  ;;  %59 = vst [vmem:[%s2398_s20 - $0x1] sm:$0xfe] %v26_v0  ;;  %v33_v8 = vld [vmem:[%s2392_s19 + $0x38] sm:$0xff]  ;;  %v34_v9 = vld [vmem:[%s2392_s19 + $0x40] sm:$0xff] }
   0x8   : > { %100 = vst [vmem:[%s2418_s21 - $0x2] sm:$0xfc] %v26_v0  ;;  %141 = vst [vmem:[%s2422_s22 - $0x3] sm:$0xf8] %v26_v0  ;;  %v35_v10 = vld [vmem:[%s2392_s19 + $0x48] sm:$0xff]  ;;  %v36_v11 = vld [vmem:[%s2392_s19 + $0x50] sm:$0xff] }
   0x9   : > { %60 = vst [vmem:[%s2398_s20 + $0x7] sm:$0xff] %v27_v1  ;;  %101 = vst [vmem:[%s2418_s21 + $0x6] sm:$0xff] %v27_v1  ;;  %v37_v12 = vld [vmem:[%s2392_s19 + $0x58] sm:$0xff]  ;;  %v38_v13 = vld [vmem:[%s2392_s19 + $0x60] sm:$0xff]  ;;  %p19_p0 = scmp.ge.s32.totalorder %s22_s15, 4  }
   0xa   : > { %142 = vst [vmem:[%s2422_s22 + $0x5] sm:$0xff] %v27_v1  ;;  %61 = vst [vmem:[%s2398_s20 + $0xf] sm:$0xff] %v28_v2  ;;  %v39_v14 = vld [vmem:[%s2392_s19 + $0x68] sm:$0xff]  ;;  %v40_v15 = vld [vmem:[%s2392_s19 + $0x70] sm:$0xff]  ;;  %v2653_v37 = vmov (%p19_p0), 0.0   ;;  %v2655_v38 = vmov (%p19_p0), 0.0  }
   0xb   : > { %102 = vst [vmem:[%s2418_s21 + $0xe] sm:$0xff] %v28_v2  ;;  %143 = vst [vmem:[%s2422_s22 + $0xd] sm:$0xff] %v28_v2  ;;  %v41_v16 = vld [vmem:[%s2392_s19 + $0x78] sm:$0xff]  ;;  %v42_v17 = vld [vmem:[%s2392_s19 + $0x80] sm:$0xff]  ;;  %s2657_s6 = smov (%p19_p0), 0  }
   0xc   : > { %132 = vst [vmem:[%s2418_s21 + $0x1e] sm:$0x3] %v2354_v3  ;;  %133 = vst [vmem:[%s2418_s21 + $0x3e] sm:$0x3] %v2354_v3  ;;  %v43_v18 = vld [vmem:[%s2392_s19 + $0x88] sm:$0xff]  ;;  %v44_v19 = vld [vmem:[%s2392_s19 + $0x90] sm:$0xff] }
   0xd   : > { %134 = vst [vmem:[%s2418_s21 + $0x5e] sm:$0x3] %v2354_v3  ;;  %135 = vst [vmem:[%s2418_s21 + $0x7e] sm:$0x3] %v2354_v3  ;;  %v45_v20 = vld [vmem:[%s2392_s19 + $0x98] sm:$0xff]  ;;  %v46_v21 = vld [vmem:[%s2392_s19 + $0xa0] sm:$0xff] }
   0xe   : > { %136 = vst [vmem:[%s2418_s21 + $0x9e] sm:$0x3] %v2354_v3  ;;  %137 = vst [vmem:[%s2418_s21 + $0xbe] sm:$0x3] %v2354_v3  ;;  %v47_v22 = vld [vmem:[%s2392_s19 + $0xa8] sm:$0xff]  ;;  %v48_v23 = vld [vmem:[%s2392_s19 + $0xb0] sm:$0xff] }
   0xf   : > { %138 = vst [vmem:[%s2418_s21 + $0xde] sm:$0x3] %v2354_v3  ;;  %139 = vst [vmem:[%s2418_s21 + $0xfe] sm:$0x3] %v2354_v3  ;;  %v49_v24 = vld [vmem:[%s2392_s19 + $0xb8] sm:$0xff]  ;;  %v50_v25 = vld [vmem:[%s2392_s19 + $0xc0] sm:$0xff] }
  0x10   : > { %173 = vst [vmem:[%s2422_s22 + $0x1d] sm:$0x7] %v2354_v3  ;;  %174 = vst [vmem:[%s2422_s22 + $0x3d] sm:$0x7] %v2354_v3  ;;  %v51_v26 = vld [vmem:[%s2392_s19 + $0xc8] sm:$0xff]  ;;  %v52_v27 = vld [vmem:[%s2392_s19 + $0xd0] sm:$0xff] }
  0x11   : > { %175 = vst [vmem:[%s2422_s22 + $0x5d] sm:$0x7] %v2354_v3  ;;  %176 = vst [vmem:[%s2422_s22 + $0x7d] sm:$0x7] %v2354_v3  ;;  %v53_v28 = vld [vmem:[%s2392_s19 + $0xd8] sm:$0xff]  ;;  %v54_v29 = vld [vmem:[%s2392_s19 + $0xe0] sm:$0xff] }
  0x12   : > { %177 = vst [vmem:[%s2422_s22 + $0x9d] sm:$0x7] %v2354_v3  ;;  %178 = vst [vmem:[%s2422_s22 + $0xbd] sm:$0x7] %v2354_v3  ;;  %v55_v30 = vld [vmem:[%s2392_s19 + $0xe8] sm:$0xff]  ;;  %v56_v31 = vld [vmem:[%s2392_s19 + $0xf0] sm:$0xff] }
  0x13   : > { %179 = vst [vmem:[%s2422_s22 + $0xdd] sm:$0x7] %v2354_v3  ;;  %180 = vst [vmem:[%s2422_s22 + $0xfd] sm:$0x7] %v2354_v3  ;;  %v57_v32 = vld [vmem:[%s2392_s19 + $0xf8] sm:$0xff]  ;;  %v2636_v33 = vld [vmem:[%s3889_s1] sm:$0xff] (%p19_p0) }
  0x14   : > { %182 = vst [vmem:[%s2467_s23 - $0x4] sm:$0xf0] %v26_v0  ;;  %183 = vst [vmem:[%s2467_s23 + $0x4] sm:$0xff] %v27_v1  ;;  %v2641_v34 = vld [vmem:[%s3889_s1 + $0x8] sm:$0xff] (%p19_p0)  ;;  %v2646_v35 = vld [vmem:[%s3889_s1 + $0x10] sm:$0xff] (%p19_p0) }
  0x15   : > { %184 = vst [vmem:[%s2467_s23 + $0xc] sm:$0xff] %v28_v2  ;;  %62 = vst [vmem:[%s2398_s20 + $0x17] sm:$0xff] %v29_v4  ;;  %v2651_v36 = vld [vmem:[%s3889_s1 + $0x18] ss:$0 sm:$0xff] (%p19_p0) }
  0x16   : > { %103 = vst [vmem:[%s2418_s21 + $0x16] sm:$0xff] %v29_v4  ;;  %144 = vst [vmem:[%s2422_s22 + $0x15] sm:$0xff] %v29_v4 }
  0x17   : > { %185 = vst [vmem:[%s2467_s23 + $0x14] sm:$0xff] %v29_v4  ;;  %63 = vst [vmem:[%s2398_s20 + $0x1f] sm:$0xfe] %v30_v5 }
  0x18   : > { %104 = vst [vmem:[%s2418_s21 + $0x1e] sm:$0xfc] %v30_v5  ;;  %145 = vst [vmem:[%s2422_s22 + $0x1d] sm:$0xf8] %v30_v5 }
  0x19   : > { %186 = vst [vmem:[%s2467_s23 + $0x1c] sm:$0xf0] %v30_v5  ;;  %64 = vst [vmem:[%s2398_s20 + $0x27] sm:$0xff] %v31_v6 }
  0x1a   : > { %105 = vst [vmem:[%s2418_s21 + $0x26] sm:$0xff] %v31_v6  ;;  %146 = vst [vmem:[%s2422_s22 + $0x25] sm:$0xff] %v31_v6 }
  0x1b   : > { %187 = vst [vmem:[%s2467_s23 + $0x24] sm:$0xff] %v31_v6  ;;  %214 = vst [vmem:[%s2467_s23 + $0x1c] sm:$0xf] %v2354_v3 }
  0x1c   : > { %215 = vst [vmem:[%s2467_s23 + $0x3c] sm:$0xf] %v2354_v3  ;;  %216 = vst [vmem:[%s2467_s23 + $0x5c] sm:$0xf] %v2354_v3 }
  0x1d   : > { %217 = vst [vmem:[%s2467_s23 + $0x7c] sm:$0xf] %v2354_v3  ;;  %218 = vst [vmem:[%s2467_s23 + $0x9c] sm:$0xf] %v2354_v3 }
  0x1e   : > { %219 = vst [vmem:[%s2467_s23 + $0xbc] sm:$0xf] %v2354_v3  ;;  %220 = vst [vmem:[%s2467_s23 + $0xdc] sm:$0xf] %v2354_v3 }
  0x1f   : > { %221 = vst [vmem:[%s2467_s23 + $0xfc] sm:$0xf] %v2354_v3  ;;  %65 = vst [vmem:[%s2398_s20 + $0x2f] sm:$0xff] %v32_v7 }
  0x20   : > { %106 = vst [vmem:[%s2418_s21 + $0x2e] sm:$0xff] %v32_v7  ;;  %147 = vst [vmem:[%s2422_s22 + $0x2d] sm:$0xff] %v32_v7 }
  0x21   : > { %188 = vst [vmem:[%s2467_s23 + $0x2c] sm:$0xff] %v32_v7  ;;  %66 = vst [vmem:[%s2398_s20 + $0x37] sm:$0xff] %v33_v8 }
  0x22   : > { %107 = vst [vmem:[%s2418_s21 + $0x36] sm:$0xff] %v33_v8  ;;  %148 = vst [vmem:[%s2422_s22 + $0x35] sm:$0xff] %v33_v8 }
  0x23   : > { %189 = vst [vmem:[%s2467_s23 + $0x34] sm:$0xff] %v33_v8  ;;  %67 = vst [vmem:[%s2398_s20 + $0x3f] sm:$0xfe] %v34_v9 }
  0x24   : > { %108 = vst [vmem:[%s2418_s21 + $0x3e] sm:$0xfc] %v34_v9  ;;  %149 = vst [vmem:[%s2422_s22 + $0x3d] sm:$0xf8] %v34_v9 }
  0x25   : > { %190 = vst [vmem:[%s2467_s23 + $0x3c] sm:$0xf0] %v34_v9  ;;  %68 = vst [vmem:[%s2398_s20 + $0x47] sm:$0xff] %v35_v10 }
  0x26   : > { %109 = vst [vmem:[%s2418_s21 + $0x46] sm:$0xff] %v35_v10  ;;  %150 = vst [vmem:[%s2422_s22 + $0x45] sm:$0xff] %v35_v10 }
  0x27   : > { %191 = vst [vmem:[%s2467_s23 + $0x44] sm:$0xff] %v35_v10  ;;  %69 = vst [vmem:[%s2398_s20 + $0x4f] sm:$0xff] %v36_v11 }
  0x28   : > { %110 = vst [vmem:[%s2418_s21 + $0x4e] sm:$0xff] %v36_v11  ;;  %151 = vst [vmem:[%s2422_s22 + $0x4d] sm:$0xff] %v36_v11 }
  0x29   : > { %192 = vst [vmem:[%s2467_s23 + $0x4c] sm:$0xff] %v36_v11  ;;  %70 = vst [vmem:[%s2398_s20 + $0x57] sm:$0xff] %v37_v12 }
  0x2a   : > { %111 = vst [vmem:[%s2418_s21 + $0x56] sm:$0xff] %v37_v12  ;;  %152 = vst [vmem:[%s2422_s22 + $0x55] sm:$0xff] %v37_v12 }
  0x2b   : > { %193 = vst [vmem:[%s2467_s23 + $0x54] sm:$0xff] %v37_v12  ;;  %71 = vst [vmem:[%s2398_s20 + $0x5f] sm:$0xfe] %v38_v13 }
  0x2c   : > { %112 = vst [vmem:[%s2418_s21 + $0x5e] sm:$0xfc] %v38_v13  ;;  %153 = vst [vmem:[%s2422_s22 + $0x5d] sm:$0xf8] %v38_v13 }
  0x2d   : > { %194 = vst [vmem:[%s2467_s23 + $0x5c] sm:$0xf0] %v38_v13  ;;  %72 = vst [vmem:[%s2398_s20 + $0x67] sm:$0xff] %v39_v14 }
  0x2e   : > { %113 = vst [vmem:[%s2418_s21 + $0x66] sm:$0xff] %v39_v14  ;;  %154 = vst [vmem:[%s2422_s22 + $0x65] sm:$0xff] %v39_v14 }
  0x2f   : > { %195 = vst [vmem:[%s2467_s23 + $0x64] sm:$0xff] %v39_v14  ;;  %73 = vst [vmem:[%s2398_s20 + $0x6f] sm:$0xff] %v40_v15 }
  0x30   : > { %114 = vst [vmem:[%s2418_s21 + $0x6e] sm:$0xff] %v40_v15  ;;  %155 = vst [vmem:[%s2422_s22 + $0x6d] sm:$0xff] %v40_v15 }
  0x31   : > { %196 = vst [vmem:[%s2467_s23 + $0x6c] sm:$0xff] %v40_v15  ;;  %74 = vst [vmem:[%s2398_s20 + $0x77] sm:$0xff] %v41_v16 }
  0x32   : > { %115 = vst [vmem:[%s2418_s21 + $0x76] sm:$0xff] %v41_v16  ;;  %156 = vst [vmem:[%s2422_s22 + $0x75] sm:$0xff] %v41_v16 }
  0x33   : > { %197 = vst [vmem:[%s2467_s23 + $0x74] sm:$0xff] %v41_v16  ;;  %75 = vst [vmem:[%s2398_s20 + $0x7f] sm:$0xfe] %v42_v17 }
  0x34   : > { %116 = vst [vmem:[%s2418_s21 + $0x7e] sm:$0xfc] %v42_v17  ;;  %157 = vst [vmem:[%s2422_s22 + $0x7d] sm:$0xf8] %v42_v17 }
  0x35   : > { %198 = vst [vmem:[%s2467_s23 + $0x7c] sm:$0xf0] %v42_v17  ;;  %76 = vst [vmem:[%s2398_s20 + $0x87] sm:$0xff] %v43_v18 }
  0x36   : > { %117 = vst [vmem:[%s2418_s21 + $0x86] sm:$0xff] %v43_v18  ;;  %158 = vst [vmem:[%s2422_s22 + $0x85] sm:$0xff] %v43_v18 }
  0x37   : > { %199 = vst [vmem:[%s2467_s23 + $0x84] sm:$0xff] %v43_v18  ;;  %77 = vst [vmem:[%s2398_s20 + $0x8f] sm:$0xff] %v44_v19 }
  0x38   : > { %118 = vst [vmem:[%s2418_s21 + $0x8e] sm:$0xff] %v44_v19  ;;  %159 = vst [vmem:[%s2422_s22 + $0x8d] sm:$0xff] %v44_v19 }
  0x39   : > { %200 = vst [vmem:[%s2467_s23 + $0x8c] sm:$0xff] %v44_v19  ;;  %78 = vst [vmem:[%s2398_s20 + $0x97] sm:$0xff] %v45_v20 }
  0x3a   : > { %119 = vst [vmem:[%s2418_s21 + $0x96] sm:$0xff] %v45_v20  ;;  %160 = vst [vmem:[%s2422_s22 + $0x95] sm:$0xff] %v45_v20 }
  0x3b   : > { %201 = vst [vmem:[%s2467_s23 + $0x94] sm:$0xff] %v45_v20  ;;  %79 = vst [vmem:[%s2398_s20 + $0x9f] sm:$0xfe] %v46_v21 }
  0x3c   : > { %120 = vst [vmem:[%s2418_s21 + $0x9e] sm:$0xfc] %v46_v21  ;;  %161 = vst [vmem:[%s2422_s22 + $0x9d] sm:$0xf8] %v46_v21 }
  0x3d   : > { %202 = vst [vmem:[%s2467_s23 + $0x9c] sm:$0xf0] %v46_v21  ;;  %80 = vst [vmem:[%s2398_s20 + $0xa7] sm:$0xff] %v47_v22 }
  0x3e   : > { %121 = vst [vmem:[%s2418_s21 + $0xa6] sm:$0xff] %v47_v22  ;;  %162 = vst [vmem:[%s2422_s22 + $0xa5] sm:$0xff] %v47_v22 }
  0x3f   : > { %203 = vst [vmem:[%s2467_s23 + $0xa4] sm:$0xff] %v47_v22  ;;  %81 = vst [vmem:[%s2398_s20 + $0xaf] sm:$0xff] %v48_v23 }
  0x40   : > { %122 = vst [vmem:[%s2418_s21 + $0xae] sm:$0xff] %v48_v23  ;;  %163 = vst [vmem:[%s2422_s22 + $0xad] sm:$0xff] %v48_v23 }
  0x41   : > { %204 = vst [vmem:[%s2467_s23 + $0xac] sm:$0xff] %v48_v23  ;;  %82 = vst [vmem:[%s2398_s20 + $0xb7] sm:$0xff] %v49_v24 }
  0x42   : > { %123 = vst [vmem:[%s2418_s21 + $0xb6] sm:$0xff] %v49_v24  ;;  %164 = vst [vmem:[%s2422_s22 + $0xb5] sm:$0xff] %v49_v24 }
  0x43   : > { %205 = vst [vmem:[%s2467_s23 + $0xb4] sm:$0xff] %v49_v24  ;;  %83 = vst [vmem:[%s2398_s20 + $0xbf] sm:$0xfe] %v50_v25 }
  0x44   : > { %124 = vst [vmem:[%s2418_s21 + $0xbe] sm:$0xfc] %v50_v25  ;;  %165 = vst [vmem:[%s2422_s22 + $0xbd] sm:$0xf8] %v50_v25 }
  0x45   : > { %206 = vst [vmem:[%s2467_s23 + $0xbc] sm:$0xf0] %v50_v25  ;;  %84 = vst [vmem:[%s2398_s20 + $0xc7] sm:$0xff] %v51_v26 }
  0x46   : > { %125 = vst [vmem:[%s2418_s21 + $0xc6] sm:$0xff] %v51_v26  ;;  %166 = vst [vmem:[%s2422_s22 + $0xc5] sm:$0xff] %v51_v26 }
  0x47   : > { %207 = vst [vmem:[%s2467_s23 + $0xc4] sm:$0xff] %v51_v26  ;;  %85 = vst [vmem:[%s2398_s20 + $0xcf] sm:$0xff] %v52_v27 }
  0x48   : > { %126 = vst [vmem:[%s2418_s21 + $0xce] sm:$0xff] %v52_v27  ;;  %167 = vst [vmem:[%s2422_s22 + $0xcd] sm:$0xff] %v52_v27 }
  0x49   : > { %208 = vst [vmem:[%s2467_s23 + $0xcc] sm:$0xff] %v52_v27  ;;  %86 = vst [vmem:[%s2398_s20 + $0xd7] sm:$0xff] %v53_v28 }
  0x4a   : > { %127 = vst [vmem:[%s2418_s21 + $0xd6] sm:$0xff] %v53_v28  ;;  %168 = vst [vmem:[%s2422_s22 + $0xd5] sm:$0xff] %v53_v28 }
  0x4b   : > { %209 = vst [vmem:[%s2467_s23 + $0xd4] sm:$0xff] %v53_v28  ;;  %87 = vst [vmem:[%s2398_s20 + $0xdf] sm:$0xfe] %v54_v29 }
  0x4c   : > { %128 = vst [vmem:[%s2418_s21 + $0xde] sm:$0xfc] %v54_v29  ;;  %169 = vst [vmem:[%s2422_s22 + $0xdd] sm:$0xf8] %v54_v29 }
  0x4d   : > { %210 = vst [vmem:[%s2467_s23 + $0xdc] sm:$0xf0] %v54_v29  ;;  %88 = vst [vmem:[%s2398_s20 + $0xe7] sm:$0xff] %v55_v30 }
  0x4e   : > { %129 = vst [vmem:[%s2418_s21 + $0xe6] sm:$0xff] %v55_v30  ;;  %170 = vst [vmem:[%s2422_s22 + $0xe5] sm:$0xff] %v55_v30 }
  0x4f   : > { %211 = vst [vmem:[%s2467_s23 + $0xe4] sm:$0xff] %v55_v30  ;;  %89 = vst [vmem:[%s2398_s20 + $0xef] sm:$0xff] %v56_v31  ;;  %21 = sbr.rel (!%p19_p0) target bundleno = 1 (0x1), region = 89 }
  0x50   : > { %130 = vst [vmem:[%s2418_s21 + $0xee] sm:$0xff] %v56_v31  ;;  %171 = vst [vmem:[%s2422_s22 + $0xed] sm:$0xff] %v56_v31 }
  0x51   : > { %212 = vst [vmem:[%s2467_s23 + $0xec] sm:$0xff] %v56_v31  ;;  %90 = vst [vmem:[%s2398_s20 + $0xf7] sm:$0xff] %v57_v32 }
  0x52   : > { %131 = vst [vmem:[%s2418_s21 + $0xf6] sm:$0xff] %v57_v32  ;;  %172 = vst [vmem:[%s2422_s22 + $0xf5] sm:$0xff] %v57_v32 }
  0x53   : > { %213 = vst [vmem:[%s2467_s23 + $0xf4] sm:$0xff] %v57_v32  ;;  %4024 = vst [vmem:[#allocation6_spill] sm:$0xff] (%p19_p0), %v2636_v33 }
  0x54   :  { %4025 = vst [vmem:[#allocation7_spill] sm:$0xff] %v2641_v34  ;;  %4026 = vst [vmem:[#allocation8_spill] sm:$0xff] %v2646_v35 }
  0x55   :  { %4027 = vst [vmem:[#allocation9_spill] sm:$0xff] %v2651_v36 }
  0x56 LB: > { %4030 = vst [vmem:[#allocation10_spill] sm:$0xff] %v2340_v37  ;;  %4031 = vst [vmem:[#allocation11_spill] sm:$0xff] %v2344_v38  ;;  %v253_v39 = vlaneseq  ;;  %s2669_s1 = sshll.u32 %s2348_s6, 7  ;;  %vm1588_vm0 = vcmask 1043456   ;;  %s231_s6 = sadd.s32 1, %s2348_s6   ;;  %v2344_v38 = vphi %v2655_v38, %v4227_v38   ;;  %v2340_v37 = vphi %v2653_v37, %v4226_v37   ;;  %s2348_s6 = sphi %s2657_s6, %s231_s6  }
  0x57   : > { %s2677_s9 = scalar_lea.vmem %s3888_s0, %s2669_s1  ;;  %s2751_s10 = scalar_lea.vmem [#allocation2], %s2669_s1 }
  0x58   : > { %v2671_v40 = vshrl.u32 %v253_v39, 7  ;;  %v237_v41 = vld [vmem:[%s2677_s9] sm:$0xff]  ;;  %v238_v42 = vld [vmem:[%s2677_s9 + $0x8] sm:$0xff]  ;;  %v239_v43 = vld [vmem:[%s2677_s9 + $0x10] sm:$0xff]  ;;  %s2803_s11 = scalar_lea.vmem [#allocation3], %s2669_s1  ;;  %s2865_s12 = scalar_lea.vmem [#allocation4], %s2669_s1 }
  0x59   : > { %v240_v46 = vld [vmem:[%s2677_s9 + $0x18] sm:$0xf]  ;;  %v2690_v47 = vld [vmem:[%s2677_s9 + $0x20] sm:$0xff]  ;;  %v2693_v48 = vld [vmem:[%s2677_s9 + $0x28] sm:$0xff]  ;;  %s2943_s13 = scalar_lea.vmem [#allocation5], %s2669_s1  ;;  %s3779_s16 = scalar_lea.vmem %s3892_s4, %s2669_s1 }
  0x5a   : > { %v4028_v33 = vld [vmem:[#allocation6_spill] sm:$0xff]  ;;  %v2683_v44 = vsub.s32 0, %v2671_v40  ;;  %v2686_v45 = vsub.s32 1, %v2671_v40  ;;  %v2696_v49 = vsub.s32 2, %v2671_v40  ;;  %v2699_v50 = vld [vmem:[%s2677_s9 + $0x30] sm:$0xff]  ;;  %v2710_v55 = vsub.s32 3, %v2671_v40 }
  0x5b   : > { %v4029_v34 = vld [vmem:[#allocation7_spill] sm:$0xff]  ;;  %v244_v51 = vld [vmem:[%s2677_s9 + $0x38] sm:$0xf]  ;;  %v2703_v52 = vld [vmem:[%s2677_s9 + $0x40] sm:$0xff]  ;;  %v2728_v61 = vsub.s32 4, %v2671_v40  ;;  %v2731_v62 = vsub.s32 5, %v2671_v40 }
  0x5c   : > { %4032 = vst [vmem:[#allocation12_spill] sm:$0xff] %v2683_v44  ;;  %4033 = vst [vmem:[#allocation13_spill] sm:$0xff] %v2686_v45  ;;  %v256_v53 = vrot.slane %v4028_v33, %v2683_v44  ;;  %v309_v54 = vrot.slane %v4028_v33, %v2686_v45  ;;  %v2714_v56 = vrot.slane %v4029_v34, %v2683_v44  ;;  %v2717_v57 = vld [vmem:[%s2677_s9 + $0x48] sm:$0xff]  ;;  %v2720_v58 = vld [vmem:[%s2677_s9 + $0x50] sm:$0xff]  ;;  %p228_p1 = scmp.ge.s32.totalorder %s231_s6, 7  }
  0x5d   : > { %4034 = vst [vmem:[#allocation14_spill] sm:$0xff] %v2696_v49  ;;  %4035 = vst [vmem:[#allocation15_spill] sm:$0xff] %v2710_v55  ;;  %v248_v59 = vld [vmem:[%s2677_s9 + $0x58] sm:$0xf]  ;;  %v2725_v60 = vrot.slane %v4028_v33, %v2696_v49  ;;  %v2735_v63 = vrot.slane %v4029_v34, %v2686_v45  ;;  %v2738_v0 = vld [vmem:[%s2677_s9 + $0x60] sm:$0xff]  ;;  %s3836_s0 = smov (%p228_p1), 0  }
  0x5e   : > { %4036 = vst [vmem:[#allocation16_spill] sm:$0xff] %v2728_v61  ;;  %4037 = vst [vmem:[#allocation17_spill] sm:$0xff] %v2731_v62  ;;  %v2741_v1 = vld [vmem:[%s2677_s9 + $0x68] sm:$0xff]  ;;  %v2744_v2 = vld [vmem:[%s2677_s9 + $0x70] sm:$0xff]  ;;  %v257_v3 = vmul.f32 %v256_v53, %v237_v41  ;;  %v258_v4 = vmul.f32 %v256_v53, %v238_v42  ;;  %v259_v5 = vmul.f32 %v256_v53, %v239_v43 }
  0x5f   : > { %4038 = vst [vmem:[#allocation18_spill] sm:$0xff] %v2735_v63  ;;  %v260_v6 = vmul.f32 %v256_v53, %v240_v46  ;;  %v252_v7 = vld [vmem:[%s2677_s9 + $0x78] sm:$0xf]  ;;  %v261_v8 = vmul.f32 %v256_v53, %v2690_v47  ;;  %v262_v9 = vmul.f32 %v256_v53, %v2693_v48  ;;  %v263_v10 = vmul.f32 %v256_v53, %v2699_v50  ;;  %v290_v12 = vld [vmem:[%s2751_s10] sm:$0xff]  ;;  %v291_v13 = vld [vmem:[%s2751_s10 + $0x8] sm:$0xff] }
  0x60   : > { %v264_v11 = vmul.f32 %v256_v53, %v244_v51  ;;  %v265_v14 = vmul.f32 %v256_v53, %v2703_v52  ;;  %v266_v15 = vmul.f32 %v256_v53, %v2717_v57  ;;  %v267_v16 = vmul.f32 %v256_v53, %v2720_v58  ;;  %v292_v18 = vld [vmem:[%s2751_s10 + $0x10] sm:$0xff]  ;;  %v293_v19 = vld [vmem:[%s2751_s10 + $0x18] sm:$0xf]  ;;  %v2761_v20 = vld [vmem:[%s2751_s10 + $0x20] sm:$0xff] }
  0x61   : > { %v268_v17 = vmul.f32 %v256_v53, %v248_v59  ;;  %4039 = vst [vmem:[#allocation19_spill] sm:$0xff] %v2761_v20  ;;  %v269_v21 = vmul.f32 %v256_v53, %v2738_v0  ;;  %v270_v22 = vmul.f32 %v256_v53, %v2741_v1  ;;  %v271_v23 = vmul.f32 %v256_v53, %v2744_v2  ;;  %v2767_v25 = vld [vmem:[%s2751_s10 + $0x28] sm:$0xff]  ;;  %v2770_v26 = vld [vmem:[%s2751_s10 + $0x30] sm:$0xff]  ;;  %v297_v27 = vld [vmem:[%s2751_s10 + $0x38] sm:$0xf] }
  0x62   : > { %v272_v24 = vmul.f32 %v256_v53, %v252_v7  ;;  %4040 = vst [vmem:[#allocation20_spill] sm:$0xff] %v2767_v25  ;;  %4041 = vst [vmem:[#allocation21_spill] sm:$0xff] %v2770_v26  ;;  %v2774_v28 = vld [vmem:[%s2751_s10 + $0x40] sm:$0xff]  ;;  %v2777_v29 = vld [vmem:[%s2751_s10 + $0x48] sm:$0xff]  ;;  %v310_v31 = vmul.f32 %v309_v54, %v290_v12  ;;  %v311_v32 = vmul.f32 %v309_v54, %v291_v13 }
  0x63   : > { %4042 = vst [vmem:[#allocation22_spill] sm:$0xff] %v2774_v28  ;;  %4043 = vst [vmem:[#allocation23_spill] sm:$0xff] %v2777_v29  ;;  %v2780_v30 = vld [vmem:[%s2751_s10 + $0x50] sm:$0xff]  ;;  %v312_v39 = vmul.f32 %v309_v54, %v292_v18  ;;  %v313_v41 = vmul.f32 %v309_v54, %v293_v19  ;;  %v301_v42 = vld [vmem:[%s2751_s10 + $0x58] sm:$0xf]  ;;  %v314_v51 = vmul.f32 %v309_v54, %v2761_v20 }
  0x64   : > { %4044 = vst [vmem:[#allocation24_spill] sm:$0xff] %v2780_v30  ;;  %v2784_v43 = vld [vmem:[%s2751_s10 + $0x60] sm:$0xff]  ;;  %v2787_v46 = vld [vmem:[%s2751_s10 + $0x68] sm:$0xff]  ;;  %v315_v53 = vmul.f32 %v309_v54, %v2767_v25  ;;  %v316_v59 = vmul.f32 %v309_v54, %v2770_v26  ;;  %v317_v7 = vmul.f32 %v309_v54, %v297_v27  ;;  %v2793_v37 = vld [vmem:[%s2751_s10 + $0x70] sm:$0xff]  ;;  %v318_v12 = vmul.f32 %v309_v54, %v2774_v28 }
  0x65   : > { %4045 = vst [vmem:[#allocation25_spill] sm:$0xff] %v2784_v43  ;;  %4046 = vst [vmem:[#allocation26_spill] sm:$0xff] %v2787_v46  ;;  %v305_v38 = vld [vmem:[%s2751_s10 + $0x78] sm:$0xf]  ;;  %v319_v13 = vmul.f32 %v309_v54, %v2777_v29  ;;  %v320_v18 = vmul.f32 %v309_v54, %v2780_v30  ;;  %v321_v19 = vmul.f32 %v309_v54, %v301_v42  ;;  %v343_v27 = vld [vmem:[%s2803_s11] sm:$0xff] }
  0x66   : > { %4047 = vst [vmem:[#allocation27_spill] sm:$0xff] %v2793_v37  ;;  %v322_v36 = vmul.f32 %v309_v54, %v2784_v43  ;;  %v323_v45 = vmul.f32 %v309_v54, %v2787_v46  ;;  %v324_v35 = vmul.f32 %v309_v54, %v2793_v37  ;;  %v325_v44 = vmul.f32 %v309_v54, %v305_v38  ;;  %v344_v46 = vld [vmem:[%s2803_s11 + $0x8] sm:$0xff]  ;;  %v345_v37 = vld [vmem:[%s2803_s11 + $0x10] sm:$0xff]  ;;  %v346_v38 = vld [vmem:[%s2803_s11 + $0x18] sm:$0xf] }
  0x67   : > { %v326_v34 = vadd.f32 %v310_v31, %v257_v3  ;;  %v327_v49 = vadd.f32 %v311_v32, %v258_v4  ;;  %v328_v42 = vadd.f32 %v312_v39, %v259_v5  ;;  %v329_v63 = vadd.f32 %v313_v41, %v260_v6  ;;  %v2810_v28 = vld [vmem:[%s2803_s11 + $0x20] sm:$0xff]  ;;  %v2813_v26 = vld [vmem:[%s2803_s11 + $0x28] sm:$0xff]  ;;  %v2816_v3 = vld [vmem:[%s2803_s11 + $0x30] sm:$0xff] }
  0x68   : > { %v330_v54 = vadd.f32 %v314_v51, %v261_v8  ;;  %v331_v43 = vadd.f32 %v315_v53, %v262_v9  ;;  %v332_v30 = vadd.f32 %v316_v59, %v263_v10  ;;  %v333_v29 = vadd.f32 %v317_v7, %v264_v11  ;;  %4048 = vst [vmem:[#allocation28_spill] sm:$0xff] %v2810_v28  ;;  %v350_v8 = vld [vmem:[%s2803_s11 + $0x38] sm:$0xf]  ;;  %v2820_v9 = vld [vmem:[%s2803_s11 + $0x40] sm:$0xff]  ;;  %v2823_v10 = vld [vmem:[%s2803_s11 + $0x48] sm:$0xff] }
  0x69   : > { %4049 = vst [vmem:[#allocation29_spill] sm:$0xff] %v2813_v26  ;;  %4050 = vst [vmem:[#allocation30_spill] sm:$0xff] %v2816_v3  ;;  %v334_v4 = vadd.f32 %v318_v12, %v265_v14  ;;  %v335_v5 = vadd.f32 %v319_v13, %v266_v15  ;;  %v336_v6 = vadd.f32 %v320_v18, %v267_v16  ;;  %v2826_v51 = vld [vmem:[%s2803_s11 + $0x50] sm:$0xff]  ;;  %v354_v53 = vld [vmem:[%s2803_s11 + $0x58] sm:$0xf] }
  0x6a   : > { %v337_v31 = vadd.f32 %v321_v19, %v268_v17  ;;  %4051 = vst [vmem:[#allocation31_spill] sm:$0xff] %v2820_v9  ;;  %4052 = vst [vmem:[#allocation32_spill] sm:$0xff] %v2823_v10  ;;  %v338_v11 = vadd.f32 %v322_v36, %v269_v21  ;;  %v339_v32 = vadd.f32 %v323_v45, %v270_v22  ;;  %v2830_v59 = vld [vmem:[%s2803_s11 + $0x60] sm:$0xff]  ;;  %v2833_v7 = vld [vmem:[%s2803_s11 + $0x68] sm:$0xff] }
  0x6b   : > { %v340_v39 = vadd.f32 %v324_v35, %v271_v23  ;;  %v341_v41 = vadd.f32 %v325_v44, %v272_v24  ;;  %4053 = vst [vmem:[#allocation33_spill] sm:$0xff] %v2826_v51  ;;  %4054 = vst [vmem:[#allocation34_spill] sm:$0xff] %v2830_v59  ;;  %v2836_v14 = vld [vmem:[%s2803_s11 + $0x70] sm:$0xff]  ;;  %v358_v15 = vld [vmem:[%s2803_s11 + $0x78] sm:$0xf]  ;;  %v363_v16 = vmul.f32 %v2725_v60, %v343_v27 }
  0x6c   : > { %4055 = vst [vmem:[#allocation35_spill] sm:$0xff] %v2833_v7  ;;  %4056 = vst [vmem:[#allocation36_spill] sm:$0xff] %v2836_v14  ;;  %v364_v17 = vmul.f32 %v2725_v60, %v344_v46  ;;  %v365_v12 = vmul.f32 %v2725_v60, %v345_v37  ;;  %v366_v36 = vmul.f32 %v2725_v60, %v346_v38  ;;  %v2950_v20 = vld [vmem:[%s2943_s13 + $0x20] sm:$0xff] }
  0x6d   : > { %v367_v35 = vmul.f32 %v2725_v60, %v2810_v28  ;;  %v368_v44 = vmul.f32 %v2725_v60, %v2813_v26  ;;  %v369_v45 = vmul.f32 %v2725_v60, %v2816_v3  ;;  %v370_v21 = vmul.f32 %v2725_v60, %v350_v8  ;;  %4068 = vst [vmem:[#allocation48_spill] sm:$0xff] %v2950_v20 }
  0x6e   : > { %v371_v22 = vmul.f32 %v2725_v60, %v2820_v9  ;;  %v372_v37 = vmul.f32 %v2725_v60, %v2823_v10  ;;  %v373_v23 = vmul.f32 %v2725_v60, %v2826_v51  ;;  %v374_v24 = vmul.f32 %v2725_v60, %v354_v53  ;;  %v396_v53 = vld [vmem:[%s2865_s12] sm:$0xff] }
  0x6f   : > { %v375_v46 = vmul.f32 %v2725_v60, %v2830_v59  ;;  %v376_v13 = vmul.f32 %v2725_v60, %v2833_v7  ;;  %v377_v18 = vmul.f32 %v2725_v60, %v2836_v14  ;;  %v378_v19 = vmul.f32 %v2725_v60, %v358_v15 }
  0x70   : > { %v379_v27 = vadd.f32 %v363_v16, %v326_v34  ;;  %v380_v38 = vadd.f32 %v364_v17, %v327_v49  ;;  %v381_v8 = vadd.f32 %v365_v12, %v328_v42  ;;  %v382_v10 = vadd.f32 %v366_v36, %v329_v63  ;;  %v401_v16 = vld [vmem:[%s2865_s12 + $0x28] sm:$0xff]  ;;  %v2892_v17 = vld [vmem:[%s2865_s12 + $0x40] sm:$0xff]  ;;  %v2911_v36 = vld [vmem:[%s2865_s12 + $0x50] sm:$0xff] }
  0x71   : > { %v383_v9 = vadd.f32 %v367_v35, %v330_v54  ;;  %v384_v3 = vadd.f32 %v368_v44, %v331_v43  ;;  %v385_v51 = vadd.f32 %v369_v45, %v332_v30  ;;  %v386_v26 = vadd.f32 %v370_v21, %v333_v29  ;;  %v397_v29 = vld [vmem:[%s2865_s12 + $0x8] sm:$0xff]  ;;  %v398_v30 = vld [vmem:[%s2865_s12 + $0x10] sm:$0xff]  ;;  %v399_v43 = vld [vmem:[%s2865_s12 + $0x18] sm:$0xf]  ;;  %4057 = vst [vmem:[#allocation37_spill] sm:$0xff] %v2892_v17 }
  0x72   : > { %v2868_v34 = vadd.f32 %v371_v22, %v334_v4  ;;  %v2870_v49 = vadd.f32 %v372_v37, %v335_v5  ;;  %v2872_v60 = vadd.f32 %v373_v23, %v336_v6  ;;  %v2874_v63 = vadd.f32 %v374_v24, %v337_v31  ;;  %v400_v5 = vld [vmem:[%s2865_s12 + $0x20] sm:$0xff]  ;;  %v402_v6 = vld [vmem:[%s2865_s12 + $0x30] sm:$0xff]  ;;  %v403_v31 = vld [vmem:[%s2865_s12 + $0x38] sm:$0xf]  ;;  %4060 = vst [vmem:[#allocation40_spill] sm:$0xff] %v2911_v36 }
  0x73   : > { %v2879_v42 = vadd.f32 %v375_v46, %v338_v11  ;;  %v2881_v54 = vadd.f32 %v376_v13, %v339_v32  ;;  %v2883_v15 = vadd.f32 %v377_v18, %v340_v39  ;;  %v2885_v4 = vadd.f32 %v378_v19, %v341_v41  ;;  %v2895_v12 = vld [vmem:[%s2865_s12 + $0x48] sm:$0xff]  ;;  %v407_v35 = vld [vmem:[%s2865_s12 + $0x58] sm:$0xf]  ;;  %v2915_v44 = vld [vmem:[%s2865_s12 + $0x60] sm:$0xff] }
  0x74   : > { %4058 = vst [vmem:[#allocation38_spill] sm:$0xff] %v2895_v12  ;;  %v415_v11 = vrot.slane %v4028_v33, %v2710_v55  ;;  %v2901_v32 = vrot.slane %v4028_v33, %v2728_v61  ;;  %v2905_v39 = vrot.slane %v4028_v33, %v2731_v62  ;;  %v2908_v41 = vsub.s32 6, %v2671_v40  ;;  %4061 = vst [vmem:[#allocation41_spill] sm:$0xff] %v2915_v44  ;;  %v2930_v23 = vld [vmem:[%s2865_s12 + $0x68] sm:$0xff]  ;;  %v2933_v24 = vld [vmem:[%s2865_s12 + $0x70] sm:$0xff] }
  0x75   : > { %v2918_v45 = vsub.s32 7, %v2671_v40  ;;  %v2921_v21 = vmul.f32 %v2714_v56, %v400_v5  ;;  %v2924_v22 = vmul.f32 %v2714_v56, %v401_v16  ;;  %v2927_v37 = vmul.f32 %v2714_v56, %v402_v6  ;;  %4066 = vst [vmem:[#allocation46_spill] sm:$0xff] %v2930_v23  ;;  %4067 = vst [vmem:[#allocation47_spill] sm:$0xff] %v2933_v24  ;;  %v411_v46 = vld [vmem:[%s2865_s12 + $0x78] sm:$0xf] }
  0x76   : > { %4059 = vst [vmem:[#allocation39_spill] sm:$0xff] %v2908_v41  ;;  %v416_v13 = vmul.f32 %v415_v11, %v396_v53  ;;  %v417_v18 = vmul.f32 %v415_v11, %v397_v29  ;;  %v418_v19 = vmul.f32 %v415_v11, %v398_v30  ;;  %v419_v40 = vmul.f32 %v415_v11, %v399_v43  ;;  %v449_v30 = vld [vmem:[%s2943_s13] sm:$0xff] }
  0x77   : > { %4062 = vst [vmem:[#allocation42_spill] sm:$0xff] %v2918_v45  ;;  %4063 = vst [vmem:[#allocation43_spill] sm:$0xff] %v2921_v21  ;;  %v420_v62 = vmul.f32 %v415_v11, %v400_v5  ;;  %v421_v61 = vmul.f32 %v415_v11, %v401_v16  ;;  %v422_v55 = vmul.f32 %v415_v11, %v402_v6 }
  0x78   : > { %4064 = vst [vmem:[#allocation44_spill] sm:$0xff] %v2924_v22  ;;  %4065 = vst [vmem:[#allocation45_spill] sm:$0xff] %v2927_v37  ;;  %v423_v21 = vmul.f32 %v415_v11, %v403_v31  ;;  %v424_v14 = vmul.f32 %v415_v11, %v2892_v17  ;;  %v425_v22 = vmul.f32 %v415_v11, %v2895_v12  ;;  %v450_v31 = vld [vmem:[%s2943_s13 + $0x8] sm:$0xff] }
  0x79   : > { %v426_v37 = vmul.f32 %v415_v11, %v2911_v36  ;;  %v427_v7 = vmul.f32 %v415_v11, %v407_v35  ;;  %v428_v59 = vmul.f32 %v415_v11, %v2915_v44  ;;  %v429_v28 = vmul.f32 %v415_v11, %v2930_v23  ;;  %v451_v35 = vld [vmem:[%s2943_s13 + $0x10] sm:$0xff]  ;;  %v2953_v44 = vld [vmem:[%s2943_s13 + $0x28] sm:$0xff]  ;;  %v1894_v36 = vld [vmem:[%s2677_s9 + $0x58] sm:$0xf] }
  0x7a   : > { %v430_v53 = vmul.f32 %v415_v11, %v2933_v24  ;;  %v431_v29 = vmul.f32 %v415_v11, %v411_v46  ;;  %v432_v43 = vadd.f32 %v416_v13, %v379_v27  ;;  %v433_v5 = vadd.f32 %v417_v18, %v380_v38  ;;  %v452_v11 = vld [vmem:[%s2943_s13 + $0x18] sm:$0xf]  ;;  %4069 = vst [vmem:[#allocation49_spill] sm:$0xff] %v2953_v44  ;;  %v2956_v27 = vld [vmem:[%s2943_s13 + $0x30] sm:$0xff] }
  0x7b   : > { %v434_v16 = vadd.f32 %v418_v19, %v381_v8  ;;  %v435_v6 = vadd.f32 %v419_v40, %v382_v10  ;;  %v436_v46 = vadd.f32 %v420_v62, %v383_v9  ;;  %v437_v24 = vadd.f32 %v421_v61, %v384_v3  ;;  %4070 = vst [vmem:[#allocation50_spill] sm:$0xff] %v2956_v27  ;;  %v456_v62 = vld [vmem:[%s2943_s13 + $0x38] sm:$0xf]  ;;  %v2967_v3 = vld [vmem:[%s2943_s13 + $0x48] sm:$0xff] }
  0x7c   : > { %v438_v23 = vadd.f32 %v422_v55, %v385_v51  ;;  %v439_v25 = vadd.f32 %v423_v21, %v386_v26  ;;  %v440_v10 = vadd.f32 %v424_v14, %v2868_v34  ;;  %v441_v38 = vadd.f32 %v425_v22, %v2870_v49  ;;  %v2964_v26 = vld [vmem:[%s2943_s13 + $0x40] sm:$0xff]  ;;  %4072 = vst [vmem:[#allocation52_spill] sm:$0xff] %v2967_v3  ;;  %v2974_v34 = vld [vmem:[%s2943_s13 + $0x50] sm:$0xff]  ;;  %v460_v49 = vld [vmem:[%s2943_s13 + $0x58] sm:$0xf] }
  0x7d   : > { %v442_v61 = vadd.f32 %v426_v37, %v2872_v60  ;;  %v443_v55 = vadd.f32 %v427_v7, %v2874_v63  ;;  %4071 = vst [vmem:[#allocation51_spill] sm:$0xff] %v2964_v26  ;;  %v444_v9 = vadd.f32 %v428_v59, %v2879_v42  ;;  %v445_v51 = vadd.f32 %v429_v28, %v2881_v54  ;;  %v2978_v21 = vld [vmem:[%s2943_s13 + $0x60] sm:$0xff]  ;;  %v2981_v60 = vld [vmem:[%s2943_s13 + $0x68] sm:$0xff]  ;;  %v2984_v7 = vld [vmem:[%s2943_s13 + $0x70] sm:$0xff] }
  0x7e   : > { %v446_v8 = vadd.f32 %v430_v53, %v2883_v15  ;;  %v447_v14 = vadd.f32 %v431_v29, %v2885_v4  ;;  %4073 = vst [vmem:[#allocation53_spill] sm:$0xff] %v2974_v34  ;;  %4074 = vst [vmem:[#allocation54_spill] sm:$0xff] %v2978_v21  ;;  %v464_v63 = vld [vmem:[%s2943_s13 + $0x78] sm:$0xf]  ;;  %v469_v22 = vmul.f32 %v2901_v32, %v449_v30 }
  0x7f   : > { %4075 = vst [vmem:[#allocation55_spill] sm:$0xff] %v2981_v60  ;;  %4076 = vst [vmem:[#allocation56_spill] sm:$0xff] %v2984_v7  ;;  %v470_v59 = vmul.f32 %v2901_v32, %v450_v31  ;;  %v471_v28 = vmul.f32 %v2901_v32, %v451_v35  ;;  %v472_v42 = vmul.f32 %v2901_v32, %v452_v11 }
  0x80   : > { %v473_v54 = vmul.f32 %v2901_v32, %v2950_v20  ;;  %v474_v15 = vmul.f32 %v2901_v32, %v2953_v44  ;;  %v475_v4 = vmul.f32 %v2901_v32, %v2956_v27  ;;  %v476_v37 = vmul.f32 %v2901_v32, %v456_v62 }
  0x81   : > { %v477_v13 = vmul.f32 %v2901_v32, %v2964_v26  ;;  %v478_v18 = vmul.f32 %v2901_v32, %v2967_v3  ;;  %v479_v19 = vmul.f32 %v2901_v32, %v2974_v34  ;;  %v480_v40 = vmul.f32 %v2901_v32, %v460_v49 }
  0x82   : > { %v481_v53 = vmul.f32 %v2901_v32, %v2978_v21  ;;  %v482_v29 = vmul.f32 %v2901_v32, %v2981_v60  ;;  %v483_v30 = vmul.f32 %v2901_v32, %v2984_v7  ;;  %v484_v31 = vmul.f32 %v2901_v32, %v464_v63  ;;  %v1890_v60 = vld [vmem:[%s2677_s9 + $0x38] sm:$0xf] }
  0x83   : > { %v485_v35 = vadd.f32 %v469_v22, %v432_v43  ;;  %v486_v11 = vadd.f32 %v470_v59, %v433_v5  ;;  %v487_v62 = vadd.f32 %v471_v28, %v434_v16  ;;  %v488_v3 = vadd.f32 %v472_v42, %v435_v6  ;;  %v1898_v63 = vld [vmem:[%s2677_s9 + $0x78] sm:$0xf]  ;;  %v3016_v6 = vld [vmem:[%s2677_s9 + $0x80] sm:$0xff] }
  0x84   : > { %v489_v34 = vadd.f32 %v473_v54, %v436_v46  ;;  %v490_v49 = vadd.f32 %v474_v15, %v437_v24  ;;  %v491_v21 = vadd.f32 %v475_v4, %v438_v23  ;;  %v492_v26 = vadd.f32 %v476_v37, %v439_v25  ;;  %4077 = vst [vmem:[#allocation57_spill] sm:$0xff] %v3016_v6  ;;  %v3019_v46 = vld [vmem:[%s2677_s9 + $0x88] sm:$0xff]  ;;  %v3022_v24 = vld [vmem:[%s2677_s9 + $0x90] sm:$0xff]  ;;  %v1902_v23 = vld [vmem:[%s2677_s9 + $0x98] sm:$0xf] }
  0x85   : > { %v493_v27 = vadd.f32 %v477_v13, %v440_v10  ;;  %v494_v44 = vadd.f32 %v478_v18, %v441_v38  ;;  %v495_v20 = vadd.f32 %v479_v19, %v442_v61  ;;  %v496_v7 = vadd.f32 %v480_v40, %v443_v55  ;;  %4078 = vst [vmem:[#allocation58_spill] sm:$0xff] %v3019_v46  ;;  %v1944_v19 = vld [vmem:[%s2865_s12 + $0x38] sm:$0xf] }
  0x86   : > { %v497_v32 = vadd.f32 %v481_v53, %v444_v9  ;;  %v498_v43 = vadd.f32 %v482_v29, %v445_v51  ;;  %v499_v5 = vadd.f32 %v483_v30, %v446_v8  ;;  %v500_v16 = vadd.f32 %v484_v31, %v447_v14  ;;  %4079 = vst [vmem:[#allocation59_spill] sm:$0xff] %v3022_v24  ;;  %v1948_v31 = vld [vmem:[%s2865_s12 + $0x58] sm:$0xf] }
  0x87   : > { %v524_v25 = vmul.f32 %v2905_v39, %v2690_v47  ;;  %v525_v10 = vmul.f32 %v2905_v39, %v2693_v48  ;;  %v526_v38 = vmul.f32 %v2905_v39, %v2699_v50  ;;  %v527_v61 = vmul.f32 %v1890_v60, %v2905_v39 }
  0x88   : > { %v528_v55 = vmul.f32 %v2905_v39, %v2703_v52  ;;  %v529_v9 = vmul.f32 %v2905_v39, %v2717_v57  ;;  %v530_v51 = vmul.f32 %v2905_v39, %v2720_v58  ;;  %v531_v8 = vmul.f32 %v1894_v36, %v2905_v39 }
  0x89   : > { %v532_v47 = vmul.f32 %v2905_v39, %v2738_v0  ;;  %v533_v48 = vmul.f32 %v2905_v39, %v2741_v1  ;;  %v534_v50 = vmul.f32 %v2905_v39, %v2744_v2  ;;  %v535_v14 = vmul.f32 %v1898_v63, %v2905_v39 }
  0x8a   : > { %v536_v60 = vmul.f32 %v3016_v6, %v2905_v39  ;;  %v537_v22 = vmul.f32 %v3019_v46, %v2905_v39  ;;  %v538_v36 = vmul.f32 %v3022_v24, %v2905_v39  ;;  %v539_v59 = vmul.f32 %v1902_v23, %v2905_v39  ;;  %v3090_v23 = vld [vmem:[%s2751_s10 + $0x88] sm:$0xff] }
  0x8b   : > { %v540_v28 = vadd.f32 %v524_v25, %v485_v35  ;;  %v541_v42 = vadd.f32 %v525_v10, %v486_v11  ;;  %v542_v54 = vadd.f32 %v526_v38, %v487_v62  ;;  %v543_v15 = vadd.f32 %v527_v61, %v488_v3  ;;  %v1908_v11 = vld [vmem:[%s2751_s10 + $0x38] sm:$0xf]  ;;  %4083 = vst [vmem:[#allocation61_spill] sm:$0xff] %v3090_v23  ;;  %v3093_v25 = vld [vmem:[%s2751_s10 + $0x90] sm:$0xff]  ;;  %v4085_v38 = vld [vmem:[#allocation19_spill] sm:$0xff] }
  0x8c   : > { %v544_v4 = vadd.f32 %v528_v55, %v489_v34  ;;  %v545_v37 = vadd.f32 %v529_v9, %v490_v49  ;;  %v546_v13 = vadd.f32 %v530_v51, %v491_v21  ;;  %v547_v18 = vadd.f32 %v531_v8, %v492_v26  ;;  %v1912_v34 = vld [vmem:[%s2751_s10 + $0x58] sm:$0xf]  ;;  %v4081_v49 = vld [vmem:[#allocation40_spill] sm:$0xff]  ;;  %4084 = vst [vmem:[#allocation62_spill] sm:$0xff] %v3093_v25 }
  0x8d   : > { %v548_v40 = vadd.f32 %v532_v47, %v493_v27  ;;  %v549_v53 = vadd.f32 %v533_v48, %v494_v44  ;;  %v550_v29 = vadd.f32 %v534_v50, %v495_v20  ;;  %v551_v30 = vadd.f32 %v535_v14, %v496_v7  ;;  %v1916_v21 = vld [vmem:[%s2751_s10 + $0x78] sm:$0xf]  ;;  %v3072_v7 = vld [vmem:[%s2751_s10 + $0x80] sm:$0xff]  ;;  %v4086_v55 = vld [vmem:[#allocation20_spill] sm:$0xff] }
  0x8e   : > { %v552_v63 = vadd.f32 %v536_v60, %v497_v32  ;;  %v553_v39 = vadd.f32 %v537_v22, %v498_v43  ;;  %v554_v35 = vadd.f32 %v538_v36, %v499_v5  ;;  %v555_v3 = vadd.f32 %v539_v59, %v500_v16  ;;  %4080 = vst [vmem:[#allocation60_spill] sm:$0xff] %v3072_v7  ;;  %v4082_v5 = vld [vmem:[#allocation41_spill] sm:$0xff]  ;;  %v4088_v48 = vld [vmem:[#allocation22_spill] sm:$0xff]  ;;  %v4089_v14 = vld [vmem:[#allocation23_spill] sm:$0xff] }
  0x8f   : > { %v576_v26 = vrot.slane %v4028_v33, %v2908_v41  ;;  %v3061_v27 = vrot.slane %v4028_v33, %v2918_v45  ;;  %v3064_v20 = vmul.f32 %v1944_v19, %v2714_v56  ;;  %v3068_v44 = vmul.f32 %v2714_v56, %v2892_v17  ;;  %v1920_v10 = vld [vmem:[%s2751_s10 + $0x98] sm:$0xf]  ;;  %v4090_v22 = vld [vmem:[#allocation24_spill] sm:$0xff]  ;;  %v4092_v33 = vld [vmem:[#allocation26_spill] sm:$0xff] }
  0x90   : > { %v3076_v62 = vmul.f32 %v2714_v56, %v2895_v12  ;;  %v3080_v32 = vmul.f32 %v2714_v56, %v4081_v49  ;;  %v3083_v43 = vmul.f32 %v1948_v31, %v2714_v56  ;;  %v3087_v16 = vmul.f32 %v2714_v56, %v4082_v5  ;;  %v4087_v51 = vld [vmem:[#allocation21_spill] sm:$0xff]  ;;  %v4093_v5 = vld [vmem:[#allocation27_spill] sm:$0xff] }
  0x91   : > { %v577_v61 = vmul.f32 %v576_v26, %v4085_v38  ;;  %v578_v9 = vmul.f32 %v576_v26, %v4086_v55  ;;  %v579_v8 = vmul.f32 %v576_v26, %v4087_v51  ;;  %v580_v47 = vmul.f32 %v1908_v11, %v576_v26  ;;  %v4091_v19 = vld [vmem:[#allocation25_spill] sm:$0xff] }
  0x92   : > { %v581_v50 = vmul.f32 %v576_v26, %v4088_v48  ;;  %v582_v60 = vmul.f32 %v576_v26, %v4089_v14  ;;  %v583_v36 = vmul.f32 %v576_v26, %v4090_v22  ;;  %v584_v59 = vmul.f32 %v1912_v34, %v576_v26 }
  0x93   : > { %v585_v31 = vmul.f32 %v576_v26, %v4091_v19  ;;  %v586_v45 = vmul.f32 %v576_v26, %v4092_v33  ;;  %v587_v49 = vmul.f32 %v576_v26, %v4093_v5  ;;  %v588_v38 = vmul.f32 %v1916_v21, %v576_v26 }
  0x94   : > { %v589_v55 = vmul.f32 %v3072_v7, %v576_v26  ;;  %v590_v51 = vmul.f32 %v3090_v23, %v576_v26  ;;  %v591_v11 = vmul.f32 %v3093_v25, %v576_v26  ;;  %v592_v12 = vmul.f32 %v1920_v10, %v576_v26  ;;  %v1926_v7 = vld [vmem:[%s2803_s11 + $0x38] sm:$0xf] }
  0x95   : > { %v593_v17 = vadd.f32 %v577_v61, %v540_v28  ;;  %v594_v14 = vadd.f32 %v578_v9, %v541_v42  ;;  %v595_v22 = vadd.f32 %v579_v8, %v542_v54  ;;  %v596_v34 = vadd.f32 %v580_v47, %v543_v15  ;;  %v1930_v25 = vld [vmem:[%s2803_s11 + $0x58] sm:$0xf]  ;;  %v3112_v15 = vld [vmem:[%s2803_s11 + $0x80] sm:$0xff]  ;;  %v4097_v61 = vld [vmem:[#allocation28_spill] sm:$0xff] }
  0x96   : > { %v597_v19 = vadd.f32 %v581_v50, %v544_v4  ;;  %v598_v33 = vadd.f32 %v582_v60, %v545_v37  ;;  %v599_v5 = vadd.f32 %v583_v36, %v546_v13  ;;  %v600_v21 = vadd.f32 %v584_v59, %v547_v18  ;;  %v1934_v10 = vld [vmem:[%s2803_s11 + $0x78] sm:$0xf]  ;;  %4094 = vst [vmem:[#allocation19_spill] sm:$0xff] %v3112_v15  ;;  %v3115_v4 = vld [vmem:[%s2803_s11 + $0x88] sm:$0xff]  ;;  %v3118_v37 = vld [vmem:[%s2803_s11 + $0x90] sm:$0xff] }
  0x97   : > { %v601_v48 = vadd.f32 %v585_v31, %v548_v40  ;;  %v602_v23 = vadd.f32 %v586_v45, %v549_v53  ;;  %v603_v24 = vadd.f32 %v587_v49, %v550_v29  ;;  %v604_v46 = vadd.f32 %v588_v38, %v551_v30  ;;  %4095 = vst [vmem:[#allocation20_spill] sm:$0xff] %v3115_v4  ;;  %v1938_v13 = vld [vmem:[%s2803_s11 + $0x98] sm:$0xf]  ;;  %v4099_v53 = vld [vmem:[#allocation30_spill] sm:$0xff]  ;;  %v4104_v50 = vld [vmem:[#allocation35_spill] sm:$0xff] }
  0x98   : > { %v605_v26 = vadd.f32 %v589_v55, %v552_v63  ;;  %v606_v28 = vadd.f32 %v590_v51, %v553_v39  ;;  %v607_v42 = vadd.f32 %v591_v11, %v554_v35  ;;  %v608_v54 = vadd.f32 %v592_v12, %v555_v3  ;;  %4096 = vst [vmem:[#allocation21_spill] sm:$0xff] %v3118_v37  ;;  %v4098_v40 = vld [vmem:[#allocation29_spill] sm:$0xff]  ;;  %v4100_v12 = vld [vmem:[#allocation31_spill] sm:$0xff]  ;;  %v4101_v39 = vld [vmem:[#allocation32_spill] sm:$0xff] }
  0x99   : > { %v630_v18 = vmul.f32 %v3061_v27, %v4097_v61  ;;  %v631_v45 = vmul.f32 %v3061_v27, %v4098_v40  ;;  %v632_v29 = vmul.f32 %v3061_v27, %v4099_v53  ;;  %v633_v30 = vmul.f32 %v1926_v7, %v3061_v27  ;;  %v4102_v3 = vld [vmem:[#allocation33_spill] sm:$0xff]  ;;  %v4103_v8 = vld [vmem:[#allocation34_spill] sm:$0xff]  ;;  %v4105_v36 = vld [vmem:[#allocation36_spill] sm:$0xff] }
  0x9a   : > { %v634_v63 = vmul.f32 %v3061_v27, %v4100_v12  ;;  %v635_v35 = vmul.f32 %v3061_v27, %v4101_v39  ;;  %v636_v49 = vmul.f32 %v3061_v27, %v4102_v3  ;;  %v637_v9 = vmul.f32 %v1930_v25, %v3061_v27  ;;  %v3154_v12 = vld [vmem:[%s2865_s12 + $0x88] sm:$0xff] }
  0x9b   : > { %v638_v47 = vmul.f32 %v3061_v27, %v4103_v8  ;;  %v639_v60 = vmul.f32 %v3061_v27, %v4104_v50  ;;  %v640_v7 = vmul.f32 %v3061_v27, %v4105_v36  ;;  %v641_v59 = vmul.f32 %v1934_v10, %v3061_v27  ;;  %v3151_v8 = vld [vmem:[%s2865_s12 + $0x80] sm:$0xff] }
  0x9c   : > { %v642_v31 = vmul.f32 %v3112_v15, %v3061_v27  ;;  %v643_v38 = vmul.f32 %v3115_v4, %v3061_v27  ;;  %v644_v25 = vmul.f32 %v3118_v37, %v3061_v27  ;;  %v645_v55 = vmul.f32 %v1938_v13, %v3061_v27  ;;  %v1952_v15 = vld [vmem:[%s2865_s12 + $0x78] sm:$0xf]  ;;  %v3157_v27 = vld [vmem:[%s2865_s12 + $0x90] sm:$0xff] }
  0x9d   : > { %v646_v51 = vadd.f32 %v630_v18, %v593_v17  ;;  %v647_v11 = vadd.f32 %v631_v45, %v594_v14  ;;  %v648_v61 = vadd.f32 %v632_v29, %v595_v22  ;;  %v649_v40 = vadd.f32 %v633_v30, %v596_v34  ;;  %v1956_v17 = vld [vmem:[%s2865_s12 + $0x98] sm:$0xf] }
  0x9e   : > { %v650_v53 = vadd.f32 %v634_v63, %v597_v19  ;;  %v651_v10 = vadd.f32 %v635_v35, %v598_v33  ;;  %v652_v36 = vadd.f32 %v636_v49, %v599_v5  ;;  %v653_v50 = vadd.f32 %v637_v9, %v600_v21  ;;  %v4106_v19 = vld [vmem:[#allocation46_spill] sm:$0xff]  ;;  %v4107_v5 = vld [vmem:[#allocation47_spill] sm:$0xff]  ;;  %v4110_v45 = vld [vmem:[#allocation45_spill] sm:$0xff] }
  0x9f   : > { %v654_v4 = vadd.f32 %v638_v47, %v601_v48  ;;  %v655_v3 = vadd.f32 %v639_v60, %v602_v23  ;;  %v656_v39 = vadd.f32 %v640_v7, %v603_v24  ;;  %v657_v37 = vadd.f32 %v641_v59, %v604_v46  ;;  %v1962_v9 = vld [vmem:[%s2943_s13 + $0x38] sm:$0xf] }
  0xa0   : > { %v658_v13 = vadd.f32 %v642_v31, %v605_v26  ;;  %v659_v14 = vadd.f32 %v643_v38, %v606_v28  ;;  %v660_v22 = vadd.f32 %v644_v25, %v607_v42  ;;  %v661_v34 = vadd.f32 %v645_v55, %v608_v54  ;;  %v4108_v28 = vld [vmem:[#allocation43_spill] sm:$0xff]  ;;  %v4109_v54 = vld [vmem:[#allocation44_spill] sm:$0xff]  ;;  %v1970_v25 = vld [vmem:[%s2943_s13 + $0x78] sm:$0xf] }
  0xa1   : > { %v692_v33 = vmul.f32 %v2714_v56, %v4106_v19  ;;  %v693_v21 = vmul.f32 %v2714_v56, %v4107_v5  ;;  %v694_v23 = vmul.f32 %v1952_v15, %v2714_v56  ;;  %v695_v46 = vmul.f32 %v3151_v8, %v2714_v56  ;;  %v4112_v55 = vld [vmem:[#allocation48_spill] sm:$0xff] }
  0xa2   : > { %v696_v24 = vmul.f32 %v3154_v12, %v2714_v56  ;;  %v697_v48 = vmul.f32 %v3157_v27, %v2714_v56  ;;  %v698_v26 = vmul.f32 %v1956_v17, %v2714_v56  ;;  %v699_v42 = vadd.f32 %v4108_v28, %v646_v51  ;;  %v3190_v51 = vld [vmem:[%s2943_s13 + $0x88] sm:$0xff] }
  0xa3   : > { %v700_v18 = vadd.f32 %v4109_v54, %v647_v11  ;;  %v701_v29 = vadd.f32 %v4110_v45, %v648_v61  ;;  %v702_v15 = vadd.f32 %v3064_v20, %v649_v40  ;;  %v703_v30 = vadd.f32 %v3068_v44, %v650_v53  ;;  %v1966_v20 = vld [vmem:[%s2943_s13 + $0x58] sm:$0xf]  ;;  %4114 = vst [vmem:[#allocation29_spill] sm:$0xff] %v3190_v51  ;;  %v4118_v11 = vld [vmem:[#allocation51_spill] sm:$0xff]  ;;  %v4119_v40 = vld [vmem:[#allocation52_spill] sm:$0xff] }
  0xa4   : > { %v704_v63 = vadd.f32 %v3076_v62, %v651_v10  ;;  %v705_v35 = vadd.f32 %v3080_v32, %v652_v36  ;;  %v706_v56 = vadd.f32 %v3083_v43, %v653_v50  ;;  %v707_v49 = vadd.f32 %v3087_v16, %v654_v4  ;;  %v3185_v62 = vld [vmem:[%s2943_s13 + $0x80] sm:$0xff]  ;;  %v3193_v43 = vld [vmem:[%s2943_s13 + $0x90] sm:$0xff]  ;;  %v1974_v16 = vld [vmem:[%s2943_s13 + $0x98] sm:$0xf] }
  0xa5   : > { %v708_v47 = vadd.f32 %v692_v33, %v655_v3  ;;  %v709_v60 = vadd.f32 %v693_v21, %v656_v39  ;;  %v710_v7 = vadd.f32 %v694_v23, %v657_v37  ;;  %v711_v59 = vadd.f32 %v695_v46, %v658_v13  ;;  %4111 = vst [vmem:[#allocation28_spill] sm:$0xff] %v3185_v62  ;;  %v4113_v32 = vld [vmem:[#allocation18_spill] sm:$0xff]  ;;  %v4116_v4 = vld [vmem:[#allocation49_spill] sm:$0xff]  ;;  %v4123_v21 = vld [vmem:[#allocation56_spill] sm:$0xff] }
  0xa6   : > { %v712_v31 = vadd.f32 %v696_v24, %v659_v14  ;;  %v713_v38 = vadd.f32 %v697_v48, %v660_v22  ;;  %v714_v44 = vadd.f32 %v698_v26, %v661_v34  ;;  %v736_v36 = vmul.f32 %v4113_v32, %v4112_v55  ;;  %4115 = vst [vmem:[#allocation30_spill] sm:$0xff] %v3193_v43  ;;  %v4117_v37 = vld [vmem:[#allocation50_spill] sm:$0xff]  ;;  %v4120_v10 = vld [vmem:[#allocation53_spill] sm:$0xff]  ;;  %v4122_v34 = vld [vmem:[#allocation55_spill] sm:$0xff] }
  0xa7   : > { %v737_v39 = vmul.f32 %v4113_v32, %v4116_v4  ;;  %v738_v3 = vmul.f32 %v4113_v32, %v4117_v37  ;;  %v739_v50 = vmul.f32 %v1962_v9, %v4113_v32  ;;  %v740_v61 = vmul.f32 %v4113_v32, %v4118_v11  ;;  %v4121_v14 = vld [vmem:[#allocation54_spill] sm:$0xff] }
  0xa8   : > { %v741_v53 = vmul.f32 %v4113_v32, %v4119_v40  ;;  %v742_v17 = vmul.f32 %v4113_v32, %v4120_v10  ;;  %v743_v13 = vmul.f32 %v1966_v20, %v4113_v32  ;;  %v744_v22 = vmul.f32 %v4113_v32, %v4121_v14 }
  0xa9   : > { %v745_v33 = vmul.f32 %v4113_v32, %v4122_v34  ;;  %v746_v23 = vmul.f32 %v4113_v32, %v4123_v21  ;;  %v747_v46 = vmul.f32 %v1970_v25, %v4113_v32  ;;  %v748_v24 = vmul.f32 %v3185_v62, %v4113_v32 }
  0xaa   : > { %v749_v48 = vmul.f32 %v3190_v51, %v4113_v32  ;;  %v750_v26 = vmul.f32 %v3193_v43, %v4113_v32  ;;  %v751_v28 = vmul.f32 %v1974_v16, %v4113_v32  ;;  %v752_v54 = vadd.f32 %v736_v36, %v699_v42  ;;  %v1980_v32 = vld [vmem:[%s2677_s9 + $0x58] sm:$0xf]  ;;  %v4125_v16 = vld [vmem:[#allocation7_spill] sm:$0xff] }
  0xab   : > { %v753_v45 = vadd.f32 %v737_v39, %v700_v18  ;;  %v754_v9 = vadd.f32 %v738_v3, %v701_v29  ;;  %v755_v20 = vadd.f32 %v739_v50, %v702_v15  ;;  %v756_v55 = vadd.f32 %v740_v61, %v703_v30  ;;  %v1984_v29 = vld [vmem:[%s2677_s9 + $0x78] sm:$0xf]  ;;  %v4124_v15 = vld [vmem:[#allocation14_spill] sm:$0xff] }
  0xac   : > { %v757_v25 = vadd.f32 %v741_v53, %v704_v63  ;;  %v758_v4 = vadd.f32 %v742_v17, %v705_v35  ;;  %v759_v37 = vadd.f32 %v743_v13, %v706_v56  ;;  %v760_v62 = vadd.f32 %v744_v22, %v707_v49  ;;  %v1988_v39 = vld [vmem:[%s2677_s9 + $0x98] sm:$0xf]  ;;  %v3228_v63 = vld [vmem:[%s2677_s9 + $0xa0] sm:$0xff]  ;;  %v4127_v35 = vld [vmem:[#allocation15_spill] sm:$0xff] }
  0xad   : > { %v761_v21 = vadd.f32 %v745_v33, %v708_v47  ;;  %v762_v51 = vadd.f32 %v746_v23, %v709_v60  ;;  %v763_v34 = vadd.f32 %v747_v46, %v710_v7  ;;  %v764_v43 = vadd.f32 %v748_v24, %v711_v59  ;;  %4126 = vst [vmem:[#allocation46_spill] sm:$0xff] %v3228_v63  ;;  %v4128_v49 = vld [vmem:[#allocation16_spill] sm:$0xff]  ;;  %v4129_v60 = vld [vmem:[#allocation17_spill] sm:$0xff]  ;;  %v4132_v46 = vld [vmem:[#allocation58_spill] sm:$0xff] }
  0xae   : > { %v765_v42 = vadd.f32 %v749_v48, %v712_v31  ;;  %v766_v18 = vadd.f32 %v750_v26, %v713_v38  ;;  %v767_v36 = vadd.f32 %v751_v28, %v714_v44  ;;  %v790_v30 = vrot.slane %v4125_v16, %v4124_v15  ;;  %v3245_v31 = vld [vmem:[%s2677_s9 + $0xa8] sm:$0xff]  ;;  %v3248_v38 = vld [vmem:[%s2677_s9 + $0xb0] sm:$0xff]  ;;  %v1992_v44 = vld [vmem:[%s2677_s9 + $0xb8] sm:$0xf] }
  0xaf   : > { %v843_v56 = vrot.slane %v4125_v16, %v4127_v35  ;;  %v3234_v47 = vrot.slane %v4125_v16, %v4128_v49  ;;  %v3238_v7 = vrot.slane %v4125_v16, %v4129_v60  ;;  %v3242_v59 = vrot.slane %v4125_v16, %v2908_v41  ;;  %4130 = vst [vmem:[#allocation47_spill] sm:$0xff] %v3245_v31  ;;  %v4133_v48 = vld [vmem:[#allocation59_spill] sm:$0xff] }
  0xb0   : > { %4131 = vst [vmem:[#allocation43_spill] sm:$0xff] %v3248_v38  ;;  %v791_v3 = vmul.f32 %v790_v30, %v2703_v52  ;;  %v792_v50 = vmul.f32 %v790_v30, %v2717_v57  ;;  %v793_v61 = vmul.f32 %v790_v30, %v2720_v58  ;;  %v794_v53 = vmul.f32 %v1980_v32, %v790_v30 }
  0xb1   : > { %v795_v17 = vmul.f32 %v790_v30, %v2738_v0  ;;  %v796_v13 = vmul.f32 %v790_v30, %v2741_v1  ;;  %v797_v22 = vmul.f32 %v790_v30, %v2744_v2  ;;  %v798_v33 = vmul.f32 %v1984_v29, %v790_v30 }
  0xb2   : > { %v799_v23 = vmul.f32 %v3016_v6, %v790_v30  ;;  %v800_v24 = vmul.f32 %v4132_v46, %v790_v30  ;;  %v801_v26 = vmul.f32 %v4133_v48, %v790_v30  ;;  %v802_v52 = vmul.f32 %v1988_v39, %v790_v30 }
  0xb3   : > { %v803_v57 = vmul.f32 %v3228_v63, %v790_v30  ;;  %v804_v58 = vmul.f32 %v3245_v31, %v790_v30  ;;  %v805_v0 = vmul.f32 %v3248_v38, %v790_v30  ;;  %v806_v28 = vmul.f32 %v1992_v44, %v790_v30  ;;  %v1998_v63 = vld [vmem:[%s2751_s10 + $0x58] sm:$0xf] }
  0xb4   : > { %v807_v1 = vadd.f32 %v791_v3, %v752_v54  ;;  %v808_v32 = vadd.f32 %v792_v50, %v753_v45  ;;  %v809_v2 = vadd.f32 %v793_v61, %v754_v9  ;;  %v810_v29 = vadd.f32 %v794_v53, %v755_v20  ;;  %v2002_v38 = vld [vmem:[%s2751_s10 + $0x78] sm:$0xf]  ;;  %v3267_v20 = vld [vmem:[%s2751_s10 + $0xa0] sm:$0xff]  ;;  %v4138_v50 = vld [vmem:[#allocation23_spill] sm:$0xff] }
  0xb5   : > { %v811_v6 = vadd.f32 %v795_v17, %v756_v55  ;;  %v812_v46 = vadd.f32 %v796_v13, %v757_v25  ;;  %v813_v48 = vadd.f32 %v797_v22, %v758_v4  ;;  %v814_v39 = vadd.f32 %v798_v33, %v759_v37  ;;  %v2006_v44 = vld [vmem:[%s2751_s10 + $0x98] sm:$0xf]  ;;  %4134 = vst [vmem:[#allocation44_spill] sm:$0xff] %v3267_v20  ;;  %v3270_v55 = vld [vmem:[%s2751_s10 + $0xa8] sm:$0xff]  ;;  %v3273_v25 = vld [vmem:[%s2751_s10 + $0xb0] sm:$0xff] }
  0xb6   : > { %v815_v41 = vadd.f32 %v799_v23, %v760_v62  ;;  %v816_v31 = vadd.f32 %v800_v24, %v761_v21  ;;  %v817_v60 = vadd.f32 %v801_v26, %v762_v51  ;;  %v818_v49 = vadd.f32 %v802_v52, %v763_v34  ;;  %4135 = vst [vmem:[#allocation45_spill] sm:$0xff] %v3270_v55  ;;  %v2010_v4 = vld [vmem:[%s2751_s10 + $0xb8] sm:$0xf]  ;;  %v4137_v3 = vld [vmem:[#allocation22_spill] sm:$0xff]  ;;  %v4139_v21 = vld [vmem:[#allocation24_spill] sm:$0xff] }
  0xb7   : > { %v819_v30 = vadd.f32 %v803_v57, %v764_v43  ;;  %v820_v54 = vadd.f32 %v804_v58, %v765_v42  ;;  %v821_v45 = vadd.f32 %v805_v0, %v766_v18  ;;  %v822_v9 = vadd.f32 %v806_v28, %v767_v36  ;;  %4136 = vst [vmem:[#allocation48_spill] sm:$0xff] %v3273_v25  ;;  %v4140_v61 = vld [vmem:[#allocation25_spill] sm:$0xff]  ;;  %v4141_v42 = vld [vmem:[#allocation26_spill] sm:$0xff]  ;;  %v4142_v36 = vld [vmem:[#allocation27_spill] sm:$0xff] }
  0xb8   : > { %v844_v37 = vmul.f32 %v843_v56, %v4137_v3  ;;  %v845_v62 = vmul.f32 %v843_v56, %v4138_v50  ;;  %v846_v51 = vmul.f32 %v843_v56, %v4139_v21  ;;  %v847_v34 = vmul.f32 %v1998_v63, %v843_v56  ;;  %v4143_v13 = vld [vmem:[#allocation60_spill] sm:$0xff]  ;;  %v4144_v33 = vld [vmem:[#allocation61_spill] sm:$0xff]  ;;  %v4145_v24 = vld [vmem:[#allocation62_spill] sm:$0xff] }
  0xb9   : > { %v848_v43 = vmul.f32 %v843_v56, %v4140_v61  ;;  %v849_v18 = vmul.f32 %v843_v56, %v4141_v42  ;;  %v850_v53 = vmul.f32 %v843_v56, %v4142_v36  ;;  %v851_v17 = vmul.f32 %v2002_v38, %v843_v56  ;;  %v2016_v36 = vld [vmem:[%s2803_s11 + $0x58] sm:$0xf] }
  0xba   : > { %v852_v22 = vmul.f32 %v4143_v13, %v843_v56  ;;  %v853_v23 = vmul.f32 %v4144_v33, %v843_v56  ;;  %v854_v26 = vmul.f32 %v4145_v24, %v843_v56  ;;  %v855_v52 = vmul.f32 %v2006_v44, %v843_v56 }
  0xbb   : > { %v856_v57 = vmul.f32 %v3267_v20, %v843_v56  ;;  %v857_v58 = vmul.f32 %v3270_v55, %v843_v56  ;;  %v858_v63 = vmul.f32 %v3273_v25, %v843_v56  ;;  %v859_v0 = vmul.f32 %v2010_v4, %v843_v56  ;;  %v2020_v25 = vld [vmem:[%s2803_s11 + $0x78] sm:$0xf] }
  0xbc   : > { %v860_v28 = vadd.f32 %v844_v37, %v807_v1  ;;  %v861_v3 = vadd.f32 %v845_v62, %v808_v32  ;;  %v862_v50 = vadd.f32 %v846_v51, %v809_v2  ;;  %v863_v38 = vadd.f32 %v847_v34, %v810_v29  ;;  %v2024_v4 = vld [vmem:[%s2803_s11 + $0x98] sm:$0xf]  ;;  %v3292_v29 = vld [vmem:[%s2803_s11 + $0xa0] sm:$0xff]  ;;  %v4149_v37 = vld [vmem:[#allocation31_spill] sm:$0xff] }
  0xbd   : > { %v864_v21 = vadd.f32 %v848_v43, %v811_v6  ;;  %v865_v61 = vadd.f32 %v849_v18, %v812_v46  ;;  %v866_v42 = vadd.f32 %v850_v53, %v813_v48  ;;  %v867_v44 = vadd.f32 %v851_v17, %v814_v39  ;;  %4146 = vst [vmem:[#allocation18_spill] sm:$0xff] %v3292_v29  ;;  %v3295_v6 = vld [vmem:[%s2803_s11 + $0xa8] sm:$0xff]  ;;  %v3298_v46 = vld [vmem:[%s2803_s11 + $0xb0] sm:$0xff]  ;;  %v2028_v48 = vld [vmem:[%s2803_s11 + $0xb8] sm:$0xf] }
  0xbe   : > { %v868_v20 = vadd.f32 %v852_v22, %v815_v41  ;;  %v869_v55 = vadd.f32 %v853_v23, %v816_v31  ;;  %v870_v24 = vadd.f32 %v854_v26, %v817_v60  ;;  %v871_v33 = vadd.f32 %v855_v52, %v818_v49  ;;  %4147 = vst [vmem:[#allocation49_spill] sm:$0xff] %v3295_v6  ;;  %v4150_v41 = vld [vmem:[#allocation32_spill] sm:$0xff]  ;;  %v4151_v49 = vld [vmem:[#allocation33_spill] sm:$0xff]  ;;  %v4155_v18 = vld [vmem:[#allocation19_spill] sm:$0xff] }
  0xbf   : > { %v872_v56 = vadd.f32 %v856_v57, %v819_v30  ;;  %v873_v1 = vadd.f32 %v857_v58, %v820_v54  ;;  %v874_v32 = vadd.f32 %v858_v63, %v821_v45  ;;  %v875_v2 = vadd.f32 %v859_v0, %v822_v9  ;;  %4148 = vst [vmem:[#allocation50_spill] sm:$0xff] %v3298_v46  ;;  %v4152_v54 = vld [vmem:[#allocation34_spill] sm:$0xff]  ;;  %v4153_v9 = vld [vmem:[#allocation35_spill] sm:$0xff]  ;;  %v4154_v51 = vld [vmem:[#allocation36_spill] sm:$0xff] }
  0xc0   : > { %v897_v39 = vmul.f32 %v3234_v47, %v4149_v37  ;;  %v898_v60 = vmul.f32 %v3234_v47, %v4150_v41  ;;  %v899_v31 = vmul.f32 %v3234_v47, %v4151_v49  ;;  %v900_v30 = vmul.f32 %v2016_v36, %v3234_v47  ;;  %v4156_v17 = vld [vmem:[#allocation20_spill] sm:$0xff]  ;;  %v4157_v23 = vld [vmem:[#allocation21_spill] sm:$0xff] }
  0xc1   : > { %v901_v45 = vmul.f32 %v3234_v47, %v4152_v54  ;;  %v902_v62 = vmul.f32 %v3234_v47, %v4153_v9  ;;  %v903_v34 = vmul.f32 %v3234_v47, %v4154_v51  ;;  %v904_v43 = vmul.f32 %v2020_v25, %v3234_v47  ;;  %v2034_v51 = vld [vmem:[%s2865_s12 + $0x58] sm:$0xf] }
  0xc2   : > { %v905_v53 = vmul.f32 %v4155_v18, %v3234_v47  ;;  %v906_v22 = vmul.f32 %v4156_v17, %v3234_v47  ;;  %v907_v26 = vmul.f32 %v4157_v23, %v3234_v47  ;;  %v908_v52 = vmul.f32 %v2024_v4, %v3234_v47  ;;  %v2038_v17 = vld [vmem:[%s2865_s12 + $0x78] sm:$0xf] }
  0xc3   : > { %v909_v57 = vmul.f32 %v3292_v29, %v3234_v47  ;;  %v910_v58 = vmul.f32 %v3295_v6, %v3234_v47  ;;  %v911_v25 = vmul.f32 %v3298_v46, %v3234_v47  ;;  %v912_v63 = vmul.f32 %v2028_v48, %v3234_v47  ;;  %v2042_v48 = vld [vmem:[%s2865_s12 + $0x98] sm:$0xf] }
  0xc4   : > { %v913_v0 = vadd.f32 %v897_v39, %v860_v28  ;;  %v914_v36 = vadd.f32 %v898_v60, %v861_v3  ;;  %v915_v37 = vadd.f32 %v899_v31, %v862_v50  ;;  %v916_v41 = vadd.f32 %v900_v30, %v863_v38  ;;  %v3333_v38 = vld [vmem:[%s2865_s12 + $0xa0] sm:$0xff]  ;;  %v4158_v39 = vld [vmem:[#allocation37_spill] sm:$0xff] }
  0xc5   : > { %v917_v49 = vadd.f32 %v901_v45, %v864_v21  ;;  %v918_v4 = vadd.f32 %v902_v62, %v865_v61  ;;  %v919_v54 = vadd.f32 %v903_v34, %v866_v42  ;;  %v920_v9 = vadd.f32 %v904_v43, %v867_v44  ;;  %v3336_v21 = vld [vmem:[%s2865_s12 + $0xa8] sm:$0xff]  ;;  %v3339_v61 = vld [vmem:[%s2865_s12 + $0xb0] sm:$0xff]  ;;  %v2046_v42 = vld [vmem:[%s2865_s12 + $0xb8] sm:$0xf] }
  0xc6   : > { %v921_v6 = vadd.f32 %v905_v53, %v868_v20  ;;  %v922_v29 = vadd.f32 %v906_v22, %v869_v55  ;;  %v923_v23 = vadd.f32 %v907_v26, %v870_v24  ;;  %v924_v46 = vadd.f32 %v908_v52, %v871_v33  ;;  %v4159_v20 = vld [vmem:[#allocation38_spill] sm:$0xff]  ;;  %v4160_v33 = vld [vmem:[#allocation40_spill] sm:$0xff] }
  0xc7   : > { %v925_v47 = vadd.f32 %v909_v57, %v872_v56  ;;  %v926_v28 = vadd.f32 %v910_v58, %v873_v1  ;;  %v927_v3 = vadd.f32 %v911_v25, %v874_v32  ;;  %v928_v50 = vadd.f32 %v912_v63, %v875_v2  ;;  %v4161_v1 = vld [vmem:[#allocation41_spill] sm:$0xff] }
  0xc8   : > { %v950_v44 = vmul.f32 %v3238_v7, %v4158_v39  ;;  %v951_v55 = vmul.f32 %v3238_v7, %v4159_v20  ;;  %v952_v24 = vmul.f32 %v3238_v7, %v4160_v33  ;;  %v953_v56 = vmul.f32 %v2034_v51, %v3238_v7  ;;  %v2052_v51 = vld [vmem:[%s2943_s13 + $0x58] sm:$0xf] }
  0xc9   : > { %v954_v32 = vmul.f32 %v3238_v7, %v4161_v1  ;;  %v955_v2 = vmul.f32 %v3238_v7, %v4106_v19  ;;  %v956_v60 = vmul.f32 %v3238_v7, %v4107_v5  ;;  %v957_v31 = vmul.f32 %v2038_v17, %v3238_v7  ;;  %v2056_v1 = vld [vmem:[%s2943_s13 + $0x78] sm:$0xf] }
  0xca   : > { %v958_v30 = vmul.f32 %v3151_v8, %v3238_v7  ;;  %v959_v45 = vmul.f32 %v3154_v12, %v3238_v7  ;;  %v960_v62 = vmul.f32 %v3157_v27, %v3238_v7  ;;  %v961_v34 = vmul.f32 %v2042_v48, %v3238_v7 }
  0xcb   : > { %v962_v19 = vmul.f32 %v3333_v38, %v3238_v7  ;;  %v963_v5 = vmul.f32 %v3336_v21, %v3238_v7  ;;  %v964_v43 = vmul.f32 %v3339_v61, %v3238_v7  ;;  %v965_v53 = vmul.f32 %v2046_v42, %v3238_v7  ;;  %v2060_v42 = vld [vmem:[%s2943_s13 + $0x98] sm:$0xf] }
  0xcc   : > { %v966_v17 = vadd.f32 %v950_v44, %v913_v0  ;;  %v967_v22 = vadd.f32 %v951_v55, %v914_v36  ;;  %v968_v26 = vadd.f32 %v952_v24, %v915_v37  ;;  %v969_v52 = vadd.f32 %v953_v56, %v916_v41  ;;  %v3374_v41 = vld [vmem:[%s2943_s13 + $0xa0] sm:$0xff] }
  0xcd   : > { %v970_v57 = vadd.f32 %v954_v32, %v917_v49  ;;  %v971_v58 = vadd.f32 %v955_v2, %v918_v4  ;;  %v972_v25 = vadd.f32 %v956_v60, %v919_v54  ;;  %v973_v63 = vadd.f32 %v957_v31, %v920_v9  ;;  %v3377_v49 = vld [vmem:[%s2943_s13 + $0xa8] sm:$0xff]  ;;  %v3380_v4 = vld [vmem:[%s2943_s13 + $0xb0] sm:$0xff]  ;;  %v2064_v54 = vld [vmem:[%s2943_s13 + $0xb8] sm:$0xf] }
  0xce   : > { %v974_v48 = vadd.f32 %v958_v30, %v921_v6  ;;  %v975_v39 = vadd.f32 %v959_v45, %v922_v29  ;;  %v976_v20 = vadd.f32 %v960_v62, %v923_v23  ;;  %v977_v33 = vadd.f32 %v961_v34, %v924_v46  ;;  %4162 = vst [vmem:[#allocation51_spill] sm:$0xff] %v3380_v4 }
  0xcf   : > { %v978_v7 = vadd.f32 %v962_v19, %v925_v47  ;;  %v979_v0 = vadd.f32 %v963_v5, %v926_v28  ;;  %v980_v36 = vadd.f32 %v964_v43, %v927_v3  ;;  %v981_v37 = vadd.f32 %v965_v53, %v928_v50  ;;  %v4163_v47 = vld [vmem:[#allocation55_spill] sm:$0xff]  ;;  %v4164_v3 = vld [vmem:[#allocation56_spill] sm:$0xff] }
  0xd0   : > { %v1003_v9 = vmul.f32 %v3242_v59, %v4118_v11  ;;  %v1004_v29 = vmul.f32 %v3242_v59, %v4119_v40  ;;  %v1005_v6 = vmul.f32 %v3242_v59, %v4120_v10  ;;  %v1006_v46 = vmul.f32 %v2052_v51, %v3242_v59  ;;  %v4165_v11 = vld [vmem:[#allocation28_spill] sm:$0xff]  ;;  %v4166_v40 = vld [vmem:[#allocation29_spill] sm:$0xff]  ;;  %v4167_v10 = vld [vmem:[#allocation30_spill] sm:$0xff] }
  0xd1   : > { %v1007_v23 = vmul.f32 %v3242_v59, %v4121_v14  ;;  %v1008_v28 = vmul.f32 %v3242_v59, %v4163_v47  ;;  %v1009_v50 = vmul.f32 %v3242_v59, %v4164_v3  ;;  %v1010_v44 = vmul.f32 %v2056_v1, %v3242_v59  ;;  %v2067_v3 = vld [vmem:[%s2677_s9 + $0x60] sm:$0xff] }
  0xd2   : > { %v1011_v55 = vmul.f32 %v4165_v11, %v3242_v59  ;;  %v1012_v24 = vmul.f32 %v4166_v40, %v3242_v59  ;;  %v1013_v56 = vmul.f32 %v4167_v10, %v3242_v59  ;;  %v1014_v32 = vmul.f32 %v2060_v42, %v3242_v59 }
  0xd3   : > { %v1015_v14 = vmul.f32 %v3374_v41, %v3242_v59  ;;  %v1016_v2 = vmul.f32 %v3377_v49, %v3242_v59  ;;  %v1017_v60 = vmul.f32 %v3380_v4, %v3242_v59  ;;  %v1018_v31 = vmul.f32 %v2064_v54, %v3242_v59  ;;  %v2070_v54 = vld [vmem:[%s2677_s9 + $0x78] sm:$0xf] }
  0xd4   : > { %v1019_v30 = vadd.f32 %v1003_v9, %v966_v17  ;;  %v1020_v45 = vadd.f32 %v1004_v29, %v967_v22  ;;  %v1021_v62 = vadd.f32 %v1005_v6, %v968_v26  ;;  %v1022_v34 = vadd.f32 %v1006_v46, %v969_v52  ;;  %v2068_v52 = vld [vmem:[%s2677_s9 + $0x68] sm:$0xff]  ;;  %v4175_v6 = vld [vmem:[#allocation17_spill] sm:$0xff] }
  0xd5   : > { %v1023_v19 = vadd.f32 %v1007_v23, %v970_v57  ;;  %v1024_v5 = vadd.f32 %v1008_v28, %v971_v58  ;;  %v1025_v43 = vadd.f32 %v1009_v50, %v972_v25  ;;  %v1026_v53 = vadd.f32 %v1010_v44, %v973_v63  ;;  %v2069_v57 = vld [vmem:[%s2677_s9 + $0x70] sm:$0xff]  ;;  %v2074_v58 = vld [vmem:[%s2677_s9 + $0x98] sm:$0xf]  ;;  %v4168_v25 = vld [vmem:[#allocation42_spill] sm:$0xff] }
  0xd6   : > { %v1027_v51 = vadd.f32 %v1011_v55, %v974_v48  ;;  %v1028_v1 = vadd.f32 %v1012_v24, %v975_v39  ;;  %v1029_v42 = vadd.f32 %v1013_v56, %v976_v20  ;;  %v1030_v47 = vadd.f32 %v1014_v32, %v977_v33  ;;  %v4169_v48 = vld [vmem:[#allocation12_spill] sm:$0xff]  ;;  %v4170_v39 = vld [vmem:[#allocation8_spill] sm:$0xff]  ;;  %v4171_v33 = vld [vmem:[#allocation13_spill] sm:$0xff] }
  0xd7   : > { %v1031_v59 = vadd.f32 %v1015_v14, %v978_v7  ;;  %v1032_v17 = vadd.f32 %v1016_v2, %v979_v0  ;;  %v1033_v22 = vadd.f32 %v1017_v60, %v980_v36  ;;  %v1034_v26 = vadd.f32 %v1018_v31, %v981_v37  ;;  %v2078_v36 = vld [vmem:[%s2677_s9 + $0xb8] sm:$0xf]  ;;  %v3432_v37 = vld [vmem:[%s2677_s9 + $0xc0] sm:$0xff]  ;;  %v4177_v23 = vld [vmem:[#allocation39_spill] sm:$0xff] }
  0xd8   : > { %v1057_v63 = vrot.slane %v4125_v16, %v4168_v25  ;;  %v3420_v20 = vrot.slane %v4170_v39, %v4169_v48  ;;  %v3424_v7 = vrot.slane %v4170_v39, %v4171_v33  ;;  %v3428_v0 = vrot.slane %v4170_v39, %v4124_v15  ;;  %4172 = vst [vmem:[#allocation52_spill] sm:$0xff] %v3432_v37  ;;  %v4173_v16 = vld [vmem:[#allocation16_spill] sm:$0xff]  ;;  %v3451_v15 = vld [vmem:[%s2677_s9 + $0xc8] sm:$0xff]  ;;  %v2082_v44 = vld [vmem:[%s2677_s9 + $0xd8] sm:$0xf] }
  0xd9   : > { %v3436_v9 = vrot.slane %v4170_v39, %v4127_v35  ;;  %v3440_v29 = vrot.slane %v4170_v39, %v4173_v16  ;;  %v3444_v46 = vrot.slane %v4170_v39, %v4175_v6  ;;  %v3448_v28 = vrot.slane %v4170_v39, %v4177_v23  ;;  %4179 = vst [vmem:[#allocation15_spill] sm:$0xff] %v3451_v15  ;;  %v3454_v50 = vld [vmem:[%s2677_s9 + $0xd0] sm:$0xff]  ;;  %v4181_v32 = vld [vmem:[#allocation57_spill] sm:$0xff]  ;;  %v4182_v2 = vld [vmem:[#allocation58_spill] sm:$0xff] }
  0xda   : > { %4180 = vst [vmem:[#allocation22_spill] sm:$0xff] %v3454_v50  ;;  %v1058_v55 = vmul.f32 %v2067_v3, %v1057_v63  ;;  %v1059_v35 = vmul.f32 %v2068_v52, %v1057_v63  ;;  %v1060_v24 = vmul.f32 %v2069_v57, %v1057_v63  ;;  %v1061_v56 = vmul.f32 %v2070_v54, %v1057_v63  ;;  %v4183_v31 = vld [vmem:[#allocation59_spill] sm:$0xff]  ;;  %v4184_v16 = vld [vmem:[#allocation46_spill] sm:$0xff]  ;;  %v2088_v4 = vld [vmem:[%s2751_s10 + $0x78] sm:$0xf] }
  0xdb   : > { %4174 = vst [vmem:[#allocation53_spill] sm:$0xff] %v3440_v29  ;;  %4176 = vst [vmem:[#allocation54_spill] sm:$0xff] %v3444_v46  ;;  %v1062_v14 = vmul.f32 %v4181_v32, %v1057_v63  ;;  %v1063_v60 = vmul.f32 %v4182_v2, %v1057_v63  ;;  %v1064_v48 = vmul.f32 %v4183_v31, %v1057_v63  ;;  %v4185_v23 = vld [vmem:[#allocation47_spill] sm:$0xff] }
  0xdc   : > { %4178 = vst [vmem:[#allocation14_spill] sm:$0xff] %v3448_v28  ;;  %v1065_v33 = vmul.f32 %v2074_v58, %v1057_v63  ;;  %v1066_v6 = vmul.f32 %v4184_v16, %v1057_v63  ;;  %v1067_v39 = vmul.f32 %v4185_v23, %v1057_v63  ;;  %v4186_v25 = vld [vmem:[#allocation43_spill] sm:$0xff]  ;;  %v1069_v3 = vmul.f32 %v2078_v36, %v1057_v63  ;;  %v2085_v16 = vld [vmem:[%s2751_s10 + $0x60] sm:$0xff] }
  0xdd   : > { %v1068_v28 = vmul.f32 %v4186_v25, %v1057_v63  ;;  %v1070_v52 = vmul.f32 %v3432_v37, %v1057_v63  ;;  %v1071_v57 = vmul.f32 %v3451_v15, %v1057_v63  ;;  %v1072_v54 = vmul.f32 %v3454_v50, %v1057_v63  ;;  %v2086_v37 = vld [vmem:[%s2751_s10 + $0x68] sm:$0xff]  ;;  %v2087_v15 = vld [vmem:[%s2751_s10 + $0x70] sm:$0xff] }
  0xde   : > { %v1073_v32 = vmul.f32 %v2082_v44, %v1057_v63  ;;  %v1074_v2 = vadd.f32 %v1058_v55, %v1019_v30  ;;  %v1075_v58 = vadd.f32 %v1059_v35, %v1020_v45  ;;  %v1076_v31 = vadd.f32 %v1060_v24, %v1021_v62  ;;  %v2092_v45 = vld [vmem:[%s2751_s10 + $0x98] sm:$0xf] }
  0xdf   : > { %v1077_v46 = vadd.f32 %v1061_v56, %v1022_v34  ;;  %v1078_v23 = vadd.f32 %v1062_v14, %v1023_v19  ;;  %v1079_v29 = vadd.f32 %v1063_v60, %v1024_v5  ;;  %v1080_v25 = vadd.f32 %v1064_v48, %v1025_v43  ;;  %v2096_v35 = vld [vmem:[%s2751_s10 + $0xb8] sm:$0xf]  ;;  %v3473_v5 = vld [vmem:[%s2751_s10 + $0xc0] sm:$0xff]  ;;  %v3476_v43 = vld [vmem:[%s2751_s10 + $0xc8] sm:$0xff] }
  0xe0   : > { %v1081_v36 = vadd.f32 %v1065_v33, %v1026_v53  ;;  %v1082_v50 = vadd.f32 %v1066_v6, %v1027_v51  ;;  %v1083_v63 = vadd.f32 %v1067_v39, %v1028_v1  ;;  %v1084_v30 = vadd.f32 %v1068_v28, %v1029_v42  ;;  %4187 = vst [vmem:[#allocation23_spill] sm:$0xff] %v3473_v5  ;;  %v3479_v53 = vld [vmem:[%s2751_s10 + $0xd0] sm:$0xff]  ;;  %v2100_v24 = vld [vmem:[%s2751_s10 + $0xd8] sm:$0xf] }
  0xe1   : > { %v1085_v44 = vadd.f32 %v1069_v3, %v1030_v47  ;;  %v1086_v62 = vadd.f32 %v1070_v52, %v1031_v59  ;;  %v1087_v34 = vadd.f32 %v1071_v57, %v1032_v17  ;;  %v1088_v55 = vadd.f32 %v1072_v54, %v1033_v22  ;;  %4188 = vst [vmem:[#allocation24_spill] sm:$0xff] %v3476_v43  ;;  %v4190_v59 = vld [vmem:[#allocation61_spill] sm:$0xff]  ;;  %v4191_v22 = vld [vmem:[#allocation62_spill] sm:$0xff]  ;;  %v4192_v28 = vld [vmem:[#allocation44_spill] sm:$0xff] }
  0xe2   : > { %v1089_v19 = vadd.f32 %v1073_v32, %v1034_v26  ;;  %4189 = vst [vmem:[#allocation25_spill] sm:$0xff] %v3479_v53  ;;  %v1111_v56 = vmul.f32 %v2085_v16, %v3420_v20  ;;  %v1112_v51 = vmul.f32 %v2086_v37, %v3420_v20  ;;  %v1113_v1 = vmul.f32 %v2087_v15, %v3420_v20  ;;  %v4193_v37 = vld [vmem:[#allocation45_spill] sm:$0xff]  ;;  %v2103_v32 = vld [vmem:[%s2803_s11 + $0x60] sm:$0xff] }
  0xe3   : > { %v1114_v42 = vmul.f32 %v2088_v4, %v3420_v20  ;;  %v1115_v47 = vmul.f32 %v4143_v13, %v3420_v20  ;;  %v1116_v17 = vmul.f32 %v4190_v59, %v3420_v20  ;;  %v1117_v26 = vmul.f32 %v4191_v22, %v3420_v20  ;;  %v4194_v4 = vld [vmem:[#allocation48_spill] sm:$0xff] }
  0xe4   : > { %v1118_v39 = vmul.f32 %v2092_v45, %v3420_v20  ;;  %v1119_v14 = vmul.f32 %v4192_v28, %v3420_v20  ;;  %v1120_v15 = vmul.f32 %v4193_v37, %v3420_v20  ;;  %v1121_v60 = vmul.f32 %v4194_v4, %v3420_v20 }
  0xe5   : > { %v1122_v13 = vmul.f32 %v2096_v35, %v3420_v20  ;;  %v1123_v48 = vmul.f32 %v3473_v5, %v3420_v20  ;;  %v1124_v33 = vmul.f32 %v3476_v43, %v3420_v20  ;;  %v1125_v16 = vmul.f32 %v3479_v53, %v3420_v20  ;;  %v2104_v43 = vld [vmem:[%s2803_s11 + $0x68] sm:$0xff]  ;;  %v2105_v5 = vld [vmem:[%s2803_s11 + $0x70] sm:$0xff]  ;;  %v2106_v53 = vld [vmem:[%s2803_s11 + $0x78] sm:$0xf] }
  0xe6   : > { %v1126_v6 = vmul.f32 %v2100_v24, %v3420_v20  ;;  %v1127_v3 = vadd.f32 %v1111_v56, %v1074_v2  ;;  %v1128_v52 = vadd.f32 %v1112_v51, %v1075_v58  ;;  %v1129_v57 = vadd.f32 %v1113_v1, %v1076_v31  ;;  %v2110_v58 = vld [vmem:[%s2803_s11 + $0x98] sm:$0xf] }
  0xe7   : > { %v1130_v54 = vadd.f32 %v1114_v42, %v1077_v46  ;;  %v1131_v45 = vadd.f32 %v1115_v47, %v1078_v23  ;;  %v1132_v35 = vadd.f32 %v1116_v17, %v1079_v29  ;;  %v1133_v59 = vadd.f32 %v1117_v26, %v1080_v25  ;;  %v2114_v51 = vld [vmem:[%s2803_s11 + $0xb8] sm:$0xf]  ;;  %v3514_v29 = vld [vmem:[%s2803_s11 + $0xc0] sm:$0xff]  ;;  %v3517_v25 = vld [vmem:[%s2803_s11 + $0xc8] sm:$0xff] }
  0xe8   : > { %v1134_v22 = vadd.f32 %v1118_v39, %v1081_v36  ;;  %v1135_v4 = vadd.f32 %v1119_v14, %v1082_v50  ;;  %v1136_v20 = vadd.f32 %v1120_v15, %v1083_v63  ;;  %v1137_v2 = vadd.f32 %v1121_v60, %v1084_v30  ;;  %4195 = vst [vmem:[#allocation26_spill] sm:$0xff] %v3514_v29  ;;  %v3520_v36 = vld [vmem:[%s2803_s11 + $0xd0] sm:$0xff]  ;;  %v2118_v1 = vld [vmem:[%s2803_s11 + $0xd8] sm:$0xf]  ;;  %v4200_v17 = vld [vmem:[#allocation18_spill] sm:$0xff] }
  0xe9   : > { %v1138_v24 = vadd.f32 %v1122_v13, %v1085_v44  ;;  %v1139_v31 = vadd.f32 %v1123_v48, %v1086_v62  ;;  %v1140_v46 = vadd.f32 %v1124_v33, %v1087_v34  ;;  %v1141_v56 = vadd.f32 %v1125_v16, %v1088_v55  ;;  %4196 = vst [vmem:[#allocation27_spill] sm:$0xff] %v3517_v25  ;;  %v4198_v62 = vld [vmem:[#allocation20_spill] sm:$0xff]  ;;  %v4199_v55 = vld [vmem:[#allocation21_spill] sm:$0xff] }
  0xea   : > { %v1142_v23 = vadd.f32 %v1126_v6, %v1089_v19  ;;  %4197 = vst [vmem:[#allocation60_spill] sm:$0xff] %v3520_v36  ;;  %v1164_v42 = vmul.f32 %v2103_v32, %v3424_v7  ;;  %v1165_v50 = vmul.f32 %v2104_v43, %v3424_v7  ;;  %v1166_v63 = vmul.f32 %v2105_v5, %v3424_v7  ;;  %v4201_v43 = vld [vmem:[#allocation49_spill] sm:$0xff]  ;;  %v2121_v32 = vld [vmem:[%s2865_s12 + $0x60] sm:$0xff] }
  0xeb   : > { %v1167_v30 = vmul.f32 %v2106_v53, %v3424_v7  ;;  %v1168_v44 = vmul.f32 %v4155_v18, %v3424_v7  ;;  %v1169_v34 = vmul.f32 %v4198_v62, %v3424_v7  ;;  %v1170_v19 = vmul.f32 %v4199_v55, %v3424_v7  ;;  %v4202_v53 = vld [vmem:[#allocation50_spill] sm:$0xff] }
  0xec   : > { %v1171_v47 = vmul.f32 %v2110_v58, %v3424_v7  ;;  %v1172_v26 = vmul.f32 %v4200_v17, %v3424_v7  ;;  %v1173_v5 = vmul.f32 %v4201_v43, %v3424_v7  ;;  %v1174_v39 = vmul.f32 %v4202_v53, %v3424_v7 }
  0xed   : > { %v1175_v18 = vmul.f32 %v2114_v51, %v3424_v7  ;;  %v1176_v14 = vmul.f32 %v3514_v29, %v3424_v7  ;;  %v1177_v15 = vmul.f32 %v3517_v25, %v3424_v7  ;;  %v1178_v60 = vmul.f32 %v3520_v36, %v3424_v7  ;;  %v2122_v25 = vld [vmem:[%s2865_s12 + $0x68] sm:$0xff]  ;;  %v2123_v29 = vld [vmem:[%s2865_s12 + $0x70] sm:$0xff]  ;;  %v2124_v36 = vld [vmem:[%s2865_s12 + $0x78] sm:$0xf] }
  0xee   : > { %v1179_v13 = vmul.f32 %v2118_v1, %v3424_v7  ;;  %v1180_v48 = vadd.f32 %v1164_v42, %v1127_v3  ;;  %v1181_v33 = vadd.f32 %v1165_v50, %v1128_v52  ;;  %v1182_v16 = vadd.f32 %v1166_v63, %v1129_v57  ;;  %v2128_v52 = vld [vmem:[%s2865_s12 + $0x98] sm:$0xf] }
  0xef   : > { %v1183_v6 = vadd.f32 %v1167_v30, %v1130_v54  ;;  %v1184_v58 = vadd.f32 %v1168_v44, %v1131_v45  ;;  %v1185_v51 = vadd.f32 %v1169_v34, %v1132_v35  ;;  %v1186_v62 = vadd.f32 %v1170_v19, %v1133_v59  ;;  %v2132_v50 = vld [vmem:[%s2865_s12 + $0xb8] sm:$0xf]  ;;  %v3555_v35 = vld [vmem:[%s2865_s12 + $0xc0] sm:$0xff]  ;;  %v3558_v59 = vld [vmem:[%s2865_s12 + $0xc8] sm:$0xff] }
  0xf0   : > { %v1187_v55 = vadd.f32 %v1171_v47, %v1134_v22  ;;  %v1188_v53 = vadd.f32 %v1172_v26, %v1135_v4  ;;  %v1189_v7 = vadd.f32 %v1173_v5, %v1136_v20  ;;  %v1190_v3 = vadd.f32 %v1174_v39, %v1137_v2  ;;  %v3561_v22 = vld [vmem:[%s2865_s12 + $0xd0] sm:$0xff]  ;;  %v2136_v63 = vld [vmem:[%s2865_s12 + $0xd8] sm:$0xf]  ;;  %v2139_v5 = vld [vmem:[%s2943_s13 + $0x60] sm:$0xff] }
  0xf1   : > { %v1191_v1 = vadd.f32 %v1175_v18, %v1138_v24  ;;  %v1192_v57 = vadd.f32 %v1176_v14, %v1139_v31  ;;  %v1193_v54 = vadd.f32 %v1177_v15, %v1140_v46  ;;  %v1194_v42 = vadd.f32 %v1178_v60, %v1141_v56  ;;  %v2140_v60 = vld [vmem:[%s2943_s13 + $0x68] sm:$0xff] }
  0xf2   : > { %v1195_v45 = vadd.f32 %v1179_v13, %v1142_v23  ;;  %v1217_v30 = vmul.f32 %v2121_v32, %v3428_v0  ;;  %v1218_v4 = vmul.f32 %v2122_v25, %v3428_v0  ;;  %v1219_v20 = vmul.f32 %v2123_v29, %v3428_v0  ;;  %v2141_v13 = vld [vmem:[%s2943_s13 + $0x70] sm:$0xff]  ;;  %v2142_v32 = vld [vmem:[%s2943_s13 + $0x78] sm:$0xf] }
  0xf3   : > { %v1220_v2 = vmul.f32 %v2124_v36, %v3428_v0  ;;  %v1221_v24 = vmul.f32 %v3151_v8, %v3428_v0  ;;  %v1222_v31 = vmul.f32 %v3154_v12, %v3428_v0  ;;  %v1223_v46 = vmul.f32 %v3157_v27, %v3428_v0 }
  0xf4   : > { %v1224_v56 = vmul.f32 %v2128_v52, %v3428_v0  ;;  %v1225_v23 = vmul.f32 %v3333_v38, %v3428_v0  ;;  %v1226_v29 = vmul.f32 %v3336_v21, %v3428_v0  ;;  %v1227_v25 = vmul.f32 %v3339_v61, %v3428_v0 }
  0xf5   : > { %v1228_v8 = vmul.f32 %v2132_v50, %v3428_v0  ;;  %v1229_v12 = vmul.f32 %v3555_v35, %v3428_v0  ;;  %v1230_v27 = vmul.f32 %v3558_v59, %v3428_v0  ;;  %v1231_v36 = vmul.f32 %v3561_v22, %v3428_v0 }
  0xf6   : > { %v1232_v44 = vmul.f32 %v2136_v63, %v3428_v0  ;;  %v1233_v34 = vadd.f32 %v1217_v30, %v1180_v48  ;;  %v1234_v19 = vadd.f32 %v1218_v4, %v1181_v33  ;;  %v1235_v47 = vadd.f32 %v1219_v20, %v1182_v16  ;;  %v2146_v33 = vld [vmem:[%s2943_s13 + $0x98] sm:$0xf] }
  0xf7   : > { %v1236_v26 = vadd.f32 %v1220_v2, %v1183_v6  ;;  %v1237_v39 = vadd.f32 %v1221_v24, %v1184_v58  ;;  %v1238_v18 = vadd.f32 %v1222_v31, %v1185_v51  ;;  %v1239_v14 = vadd.f32 %v1223_v46, %v1186_v62  ;;  %v2150_v30 = vld [vmem:[%s2943_s13 + $0xb8] sm:$0xf]  ;;  %v3596_v51 = vld [vmem:[%s2943_s13 + $0xc0] sm:$0xff]  ;;  %v3599_v62 = vld [vmem:[%s2943_s13 + $0xc8] sm:$0xff] }
  0xf8   : > { %v1240_v15 = vadd.f32 %v1224_v56, %v1187_v55  ;;  %v1241_v52 = vadd.f32 %v1225_v23, %v1188_v53  ;;  %v1242_v0 = vadd.f32 %v1226_v29, %v1189_v7  ;;  %v1243_v48 = vadd.f32 %v1227_v25, %v1190_v3  ;;  %v3602_v55 = vld [vmem:[%s2943_s13 + $0xd0] sm:$0xff]  ;;  %v2154_v4 = vld [vmem:[%s2943_s13 + $0xd8] sm:$0xf]  ;;  %v4203_v24 = vld [vmem:[#allocation51_spill] sm:$0xff] }
  0xf9   : > { %v1244_v50 = vadd.f32 %v1228_v8, %v1191_v1  ;;  %v1245_v16 = vadd.f32 %v1229_v12, %v1192_v57  ;;  %v1246_v6 = vadd.f32 %v1230_v27, %v1193_v54  ;;  %v1247_v63 = vadd.f32 %v1231_v36, %v1194_v42  ;;  %v2157_v12 = vld [vmem:[%s2677_s9 + $0x80] sm:$0xff] }
  0xfa   : > { %v1248_v58 = vadd.f32 %v1232_v44, %v1195_v45  ;;  %v1270_v20 = vmul.f32 %v2139_v5, %v3436_v9  ;;  %v1271_v53 = vmul.f32 %v2140_v60, %v3436_v9  ;;  %v1272_v7 = vmul.f32 %v2141_v13, %v3436_v9  ;;  %v2158_v60 = vld [vmem:[%s2677_s9 + $0x88] sm:$0xff]  ;;  %v2159_v13 = vld [vmem:[%s2677_s9 + $0x90] sm:$0xff] }
  0xfb   : > { %v1273_v3 = vmul.f32 %v2142_v32, %v3436_v9  ;;  %v1274_v1 = vmul.f32 %v4165_v11, %v3436_v9  ;;  %v1275_v57 = vmul.f32 %v4166_v40, %v3436_v9  ;;  %v1276_v54 = vmul.f32 %v4167_v10, %v3436_v9  ;;  %v2160_v32 = vld [vmem:[%s2677_s9 + $0x98] sm:$0xf] }
  0xfc   : > { %v1277_v42 = vmul.f32 %v2146_v33, %v3436_v9  ;;  %v1278_v45 = vmul.f32 %v3374_v41, %v3436_v9  ;;  %v1279_v2 = vmul.f32 %v3377_v49, %v3436_v9  ;;  %v1280_v31 = vmul.f32 %v4203_v24, %v3436_v9 }
  0xfd   : > { %v1281_v11 = vmul.f32 %v2150_v30, %v3436_v9  ;;  %v1282_v40 = vmul.f32 %v3596_v51, %v3436_v9  ;;  %v1283_v10 = vmul.f32 %v3599_v62, %v3436_v9  ;;  %v1284_v46 = vmul.f32 %v3602_v55, %v3436_v9 }
  0xfe   : > { %v1285_v56 = vmul.f32 %v2154_v4, %v3436_v9  ;;  %v1286_v23 = vadd.f32 %v1270_v20, %v1233_v34  ;;  %v1287_v29 = vadd.f32 %v1271_v53, %v1234_v19  ;;  %v1288_v25 = vadd.f32 %v1272_v7, %v1235_v47  ;;  %v2164_v19 = vld [vmem:[%s2677_s9 + $0xb8] sm:$0xf]  ;;  %v2170_v53 = vld [vmem:[%s2677_s9 + $0xe8] sm:$0xff] }
  0xff   : > { %v1289_v8 = vadd.f32 %v1273_v3, %v1236_v26  ;;  %v1290_v27 = vadd.f32 %v1274_v1, %v1237_v39  ;;  %v1291_v36 = vadd.f32 %v1275_v57, %v1238_v18  ;;  %v1292_v44 = vadd.f32 %v1276_v54, %v1239_v14  ;;  %v2168_v20 = vld [vmem:[%s2677_s9 + $0xd8] sm:$0xf]  ;;  %v2169_v18 = vld [vmem:[%s2677_s9 + $0xe0] sm:$0xff]  ;;  %v2171_v14 = vld [vmem:[%s2677_s9 + $0xf0] sm:$0xff] }
 0x100   : > { %v1293_v5 = vadd.f32 %v1277_v42, %v1240_v15  ;;  %v1294_v33 = vadd.f32 %v1278_v45, %v1241_v52  ;;  %v1295_v9 = vadd.f32 %v1279_v2, %v1242_v0  ;;  %v1296_v34 = vadd.f32 %v1280_v31, %v1243_v48  ;;  %v2172_v7 = vld [vmem:[%s2677_s9 + $0xf8] sm:$0xf]  ;;  %v4205_v0 = vld [vmem:[#allocation46_spill] sm:$0xff]  ;;  %v4208_v54 = vld [vmem:[#allocation52_spill] sm:$0xff] }
 0x101   : > { %v1297_v30 = vadd.f32 %v1281_v11, %v1244_v50  ;;  %v1298_v47 = vadd.f32 %v1282_v40, %v1245_v16  ;;  %v1299_v26 = vadd.f32 %v1283_v10, %v1246_v6  ;;  %v1300_v4 = vadd.f32 %v1284_v46, %v1247_v63  ;;  %v4204_v15 = vld [vmem:[#allocation53_spill] sm:$0xff]  ;;  %v4206_v50 = vld [vmem:[#allocation47_spill] sm:$0xff]  ;;  %v4210_v31 = vld [vmem:[#allocation22_spill] sm:$0xff] }
 0x102   : > { %v1301_v39 = vadd.f32 %v1285_v56, %v1248_v58  ;;  %v1325_v3 = vmul.f32 %v2157_v12, %v4204_v15  ;;  %v1326_v1 = vmul.f32 %v2158_v60, %v4204_v15  ;;  %v1327_v57 = vmul.f32 %v2159_v13, %v4204_v15  ;;  %v4207_v6 = vld [vmem:[#allocation43_spill] sm:$0xff] }
 0x103   : > { %v1328_v52 = vmul.f32 %v2160_v32, %v4204_v15  ;;  %v1329_v48 = vmul.f32 %v4205_v0, %v4204_v15  ;;  %v1330_v16 = vmul.f32 %v4206_v50, %v4204_v15  ;;  %v1331_v63 = vmul.f32 %v4207_v6, %v4204_v15  ;;  %v4209_v45 = vld [vmem:[#allocation15_spill] sm:$0xff]  ;;  %v2175_v0 = vld [vmem:[%s2751_s10 + $0x80] sm:$0xff] }
 0x104   : > { %v1332_v58 = vmul.f32 %v2164_v19, %v4204_v15  ;;  %v1333_v42 = vmul.f32 %v4208_v54, %v4204_v15  ;;  %v1334_v2 = vmul.f32 %v4209_v45, %v4204_v15  ;;  %v1335_v11 = vmul.f32 %v4210_v31, %v4204_v15 }
 0x105   : > { %v1336_v40 = vmul.f32 %v2168_v20, %v4204_v15  ;;  %v1337_v10 = vmul.f32 %v2169_v18, %v4204_v15  ;;  %v1338_v46 = vmul.f32 %v2170_v53, %v4204_v15  ;;  %v1339_v56 = vmul.f32 %v2171_v14, %v4204_v15  ;;  %v2176_v18 = vld [vmem:[%s2751_s10 + $0x88] sm:$0xff]  ;;  %v2177_v53 = vld [vmem:[%s2751_s10 + $0x90] sm:$0xff]  ;;  %v2178_v14 = vld [vmem:[%s2751_s10 + $0x98] sm:$0xf] }
 0x106   : > { %v1340_v12 = vmul.f32 %v2172_v7, %v4204_v15  ;;  %v1341_v60 = vadd.f32 %v1325_v3, %v1286_v23  ;;  %v1342_v13 = vadd.f32 %v1326_v1, %v1287_v29  ;;  %v1343_v32 = vadd.f32 %v1327_v57, %v1288_v25  ;;  %v2182_v29 = vld [vmem:[%s2751_s10 + $0xb8] sm:$0xf]  ;;  %v2188_v57 = vld [vmem:[%s2751_s10 + $0xe8] sm:$0xff] }
 0x107   : > { %v1344_v19 = vadd.f32 %v1328_v52, %v1289_v8  ;;  %v1345_v50 = vadd.f32 %v1329_v48, %v1290_v27  ;;  %v1346_v6 = vadd.f32 %v1330_v16, %v1291_v36  ;;  %v1347_v20 = vadd.f32 %v1331_v63, %v1292_v44  ;;  %v2186_v1 = vld [vmem:[%s2751_s10 + $0xd8] sm:$0xf]  ;;  %v2187_v36 = vld [vmem:[%s2751_s10 + $0xe0] sm:$0xff]  ;;  %v2189_v44 = vld [vmem:[%s2751_s10 + $0xf0] sm:$0xff] }
 0x108   : > { %v1348_v54 = vadd.f32 %v1332_v58, %v1293_v5  ;;  %v1349_v45 = vadd.f32 %v1333_v42, %v1294_v33  ;;  %v1350_v7 = vadd.f32 %v1334_v2, %v1295_v9  ;;  %v1351_v23 = vadd.f32 %v1335_v11, %v1296_v34  ;;  %v2190_v52 = vld [vmem:[%s2751_s10 + $0xf8] sm:$0xf]  ;;  %v4211_v5 = vld [vmem:[#allocation54_spill] sm:$0xff]  ;;  %v4214_v58 = vld [vmem:[#allocation24_spill] sm:$0xff] }
 0x109   : > { %v1352_v15 = vadd.f32 %v1336_v40, %v1297_v30  ;;  %v1353_v25 = vadd.f32 %v1337_v10, %v1298_v47  ;;  %v1354_v8 = vadd.f32 %v1338_v46, %v1299_v26  ;;  %v1355_v3 = vadd.f32 %v1339_v56, %v1300_v4  ;;  %v4212_v30 = vld [vmem:[#allocation48_spill] sm:$0xff]  ;;  %v4213_v4 = vld [vmem:[#allocation23_spill] sm:$0xff]  ;;  %v4215_v2 = vld [vmem:[#allocation25_spill] sm:$0xff] }
 0x10a   : > { %v1356_v27 = vadd.f32 %v1340_v12, %v1301_v39  ;;  %v1378_v48 = vmul.f32 %v2175_v0, %v4211_v5  ;;  %v1379_v16 = vmul.f32 %v2176_v18, %v4211_v5  ;;  %v1380_v63 = vmul.f32 %v2177_v53, %v4211_v5  ;;  %v2193_v18 = vld [vmem:[%s2803_s11 + $0x80] sm:$0xff] }
 0x10b   : > { %v1381_v33 = vmul.f32 %v2178_v14, %v4211_v5  ;;  %v1382_v9 = vmul.f32 %v4192_v28, %v4211_v5  ;;  %v1383_v34 = vmul.f32 %v4193_v37, %v4211_v5  ;;  %v1384_v47 = vmul.f32 %v4212_v30, %v4211_v5 }
 0x10c   : > { %v1385_v26 = vmul.f32 %v2182_v29, %v4211_v5  ;;  %v1386_v39 = vmul.f32 %v4213_v4, %v4211_v5  ;;  %v1387_v42 = vmul.f32 %v4214_v58, %v4211_v5  ;;  %v1388_v31 = vmul.f32 %v4215_v2, %v4211_v5 }
 0x10d   : > { %v1389_v28 = vmul.f32 %v2186_v1, %v4211_v5  ;;  %v1390_v37 = vmul.f32 %v2187_v36, %v4211_v5  ;;  %v1391_v11 = vmul.f32 %v2188_v57, %v4211_v5  ;;  %v1392_v40 = vmul.f32 %v2189_v44, %v4211_v5  ;;  %v2194_v36 = vld [vmem:[%s2803_s11 + $0x88] sm:$0xff]  ;;  %v2195_v57 = vld [vmem:[%s2803_s11 + $0x90] sm:$0xff]  ;;  %v2196_v44 = vld [vmem:[%s2803_s11 + $0x98] sm:$0xf] }
 0x10e   : > { %v1393_v10 = vmul.f32 %v2190_v52, %v4211_v5  ;;  %v1394_v46 = vadd.f32 %v1378_v48, %v1341_v60  ;;  %v1395_v56 = vadd.f32 %v1379_v16, %v1342_v13  ;;  %v1396_v12 = vadd.f32 %v1380_v63, %v1343_v32  ;;  %v2200_v13 = vld [vmem:[%s2803_s11 + $0xb8] sm:$0xf]  ;;  %v2206_v63 = vld [vmem:[%s2803_s11 + $0xe8] sm:$0xff] }
 0x10f   : > { %v1397_v0 = vadd.f32 %v1381_v33, %v1344_v19  ;;  %v1398_v53 = vadd.f32 %v1382_v9, %v1345_v50  ;;  %v1399_v14 = vadd.f32 %v1383_v34, %v1346_v6  ;;  %v1400_v29 = vadd.f32 %v1384_v47, %v1347_v20  ;;  %v2204_v16 = vld [vmem:[%s2803_s11 + $0xd8] sm:$0xf]  ;;  %v2205_v6 = vld [vmem:[%s2803_s11 + $0xe0] sm:$0xff]  ;;  %v2207_v20 = vld [vmem:[%s2803_s11 + $0xf0] sm:$0xff] }
 0x110   : > { %v1401_v1 = vadd.f32 %v1385_v26, %v1348_v54  ;;  %v1402_v30 = vadd.f32 %v1386_v39, %v1349_v45  ;;  %v1403_v52 = vadd.f32 %v1387_v42, %v1350_v7  ;;  %v1404_v60 = vadd.f32 %v1388_v31, %v1351_v23  ;;  %v2208_v33 = vld [vmem:[%s2803_s11 + $0xf8] sm:$0xf]  ;;  %v4216_v54 = vld [vmem:[#allocation14_spill] sm:$0xff]  ;;  %v4219_v26 = vld [vmem:[#allocation27_spill] sm:$0xff] }
 0x111   : > { %v1405_v5 = vadd.f32 %v1389_v28, %v1352_v15  ;;  %v1406_v32 = vadd.f32 %v1390_v37, %v1353_v25  ;;  %v1407_v19 = vadd.f32 %v1391_v11, %v1354_v8  ;;  %v1408_v48 = vadd.f32 %v1392_v40, %v1355_v3  ;;  %v4217_v15 = vld [vmem:[#allocation50_spill] sm:$0xff]  ;;  %v4220_v39 = vld [vmem:[#allocation60_spill] sm:$0xff] }
 0x112   : > { %v1409_v50 = vadd.f32 %v1393_v10, %v1356_v27  ;;  %v1431_v9 = vmul.f32 %v2193_v18, %v4216_v54  ;;  %v1432_v34 = vmul.f32 %v2194_v36, %v4216_v54  ;;  %v1433_v47 = vmul.f32 %v2195_v57, %v4216_v54  ;;  %v4218_v3 = vld [vmem:[#allocation26_spill] sm:$0xff] }
 0x113   : > { %v1434_v45 = vmul.f32 %v2196_v44, %v4216_v54  ;;  %v1435_v7 = vmul.f32 %v4200_v17, %v4216_v54  ;;  %v1436_v23 = vmul.f32 %v4201_v43, %v4216_v54  ;;  %v1437_v25 = vmul.f32 %v4217_v15, %v4216_v54  ;;  %v2229_v44 = vld [vmem:[%s2943_s13 + $0x80] sm:$0xff]  ;;  %v2224_v15 = vld [vmem:[%s2865_s12 + $0xe8] sm:$0xff] }
 0x114   : > { %v1438_v8 = vmul.f32 %v2200_v13, %v4216_v54  ;;  %v1439_v27 = vmul.f32 %v4218_v3, %v4216_v54  ;;  %v1440_v4 = vmul.f32 %v4219_v26, %v4216_v54  ;;  %v1441_v58 = vmul.f32 %v4220_v39, %v4216_v54  ;;  %v2230_v13 = vld [vmem:[%s2943_s13 + $0x88] sm:$0xff] }
 0x115   : > { %v1442_v17 = vmul.f32 %v2204_v16, %v4216_v54  ;;  %v1443_v43 = vmul.f32 %v2205_v6, %v4216_v54  ;;  %v1444_v42 = vmul.f32 %v2206_v63, %v4216_v54  ;;  %v1445_v2 = vmul.f32 %v2207_v20, %v4216_v54  ;;  %v2231_v16 = vld [vmem:[%s2943_s13 + $0x90] sm:$0xff] }
 0x116   : > { %v1446_v31 = vmul.f32 %v2208_v33, %v4216_v54  ;;  %v1447_v28 = vadd.f32 %v1431_v9, %v1394_v46  ;;  %v1448_v37 = vadd.f32 %v1432_v34, %v1395_v56  ;;  %v1449_v11 = vadd.f32 %v1433_v47, %v1396_v12  ;;  %v2211_v56 = vld [vmem:[%s2865_s12 + $0x80] sm:$0xff]  ;;  %v2232_v12 = vld [vmem:[%s2943_s13 + $0x98] sm:$0xf]  ;;  %v2213_v33 = vld [vmem:[%s2865_s12 + $0x90] sm:$0xff] }
 0x117   : > { %v1450_v40 = vadd.f32 %v1434_v45, %v1397_v0  ;;  %v1451_v10 = vadd.f32 %v1435_v7, %v1398_v53  ;;  %v1452_v18 = vadd.f32 %v1436_v23, %v1399_v14  ;;  %v1453_v36 = vadd.f32 %v1437_v25, %v1400_v29  ;;  %v2214_v54 = vld [vmem:[%s2865_s12 + $0x98] sm:$0xf]  ;;  %v4221_v34 = vld [vmem:[#allocation42_spill] sm:$0xff]  ;;  %v2225_v25 = vld [vmem:[%s2865_s12 + $0xf0] sm:$0xff] }
 0x118   : > { %v1454_v57 = vadd.f32 %v1438_v8, %v1401_v1  ;;  %v1455_v6 = vadd.f32 %v1439_v27, %v1402_v30  ;;  %v1456_v63 = vadd.f32 %v1440_v4, %v1403_v52  ;;  %v1457_v20 = vadd.f32 %v1441_v58, %v1404_v60  ;;  %v2212_v1 = vld [vmem:[%s2865_s12 + $0x88] sm:$0xff]  ;;  %v2218_v9 = vld [vmem:[%s2865_s12 + $0xb8] sm:$0xf]  ;;  %v4222_v30 = vld [vmem:[#allocation8_spill] sm:$0xff] }
 0x119   : > { %v1458_v46 = vadd.f32 %v1442_v17, %v1405_v5  ;;  %v1459_v0 = vadd.f32 %v1443_v43, %v1406_v32  ;;  %v1460_v53 = vadd.f32 %v1444_v42, %v1407_v19  ;;  %v1461_v14 = vadd.f32 %v1445_v2, %v1408_v48  ;;  %v4223_v60 = vld [vmem:[#allocation9_spill] sm:$0xff]  ;;  %v2223_v19 = vld [vmem:[%s2865_s12 + $0xe0] sm:$0xff] }
 0x11a   : > { %v1462_v29 = vadd.f32 %v1446_v31, %v1409_v50  ;;  %v1483_v52 = vrot.slane %v4222_v30, %v4221_v34  ;;  %v1537_v47 = vmul.f32 %v4223_v60, %v2229_v44  ;;  %v1538_v5 = vmul.f32 %v4223_v60, %v2230_v13  ;;  %v2222_v32 = vld [vmem:[%s2865_s12 + $0xd8] sm:$0xf]  ;;  %v2241_v30 = vld [vmem:[%s2943_s13 + $0xe0] sm:$0xff] }
 0x11b   : > { %v1539_v45 = vmul.f32 %v4223_v60, %v2231_v16  ;;  %v1540_v48 = vmul.f32 %v4223_v60, %v2232_v12  ;;  %v1541_v50 = vmul.f32 %v4223_v60, %v3374_v41  ;;  %v1542_v7 = vmul.f32 %v4223_v60, %v3377_v49  ;;  %v2226_v8 = vld [vmem:[%s2865_s12 + $0xf8] sm:$0xf] }
 0x11c   : > { %v1543_v23 = vmul.f32 %v4223_v60, %v4203_v24  ;;  %v1484_v3 = vmul.f32 %v2211_v56, %v1483_v52  ;;  %v1485_v27 = vmul.f32 %v2212_v1, %v1483_v52  ;;  %v1486_v26 = vmul.f32 %v2213_v33, %v1483_v52  ;;  %v2236_v1 = vld [vmem:[%s2943_s13 + $0xb8] sm:$0xf] }
 0x11d   : > { %v1487_v4 = vmul.f32 %v2214_v54, %v1483_v52  ;;  %v1488_v39 = vmul.f32 %v3333_v38, %v1483_v52  ;;  %v1489_v58 = vmul.f32 %v3336_v21, %v1483_v52  ;;  %v1490_v17 = vmul.f32 %v3339_v61, %v1483_v52  ;;  %v2240_v33 = vld [vmem:[%s2943_s13 + $0xd8] sm:$0xf] }
 0x11e   : > { %v1491_v41 = vmul.f32 %v2218_v9, %v1483_v52  ;;  %v1492_v43 = vmul.f32 %v3555_v35, %v1483_v52  ;;  %v1493_v49 = vmul.f32 %v3558_v59, %v1483_v52  ;;  %v1494_v24 = vmul.f32 %v3561_v22, %v1483_v52 }
 0x11f   : > { %v1495_v42 = vmul.f32 %v2222_v32, %v1483_v52  ;;  %v1496_v2 = vmul.f32 %v2223_v19, %v1483_v52  ;;  %v1497_v31 = vmul.f32 %v2224_v15, %v1483_v52  ;;  %v1498_v44 = vmul.f32 %v2225_v25, %v1483_v52  ;;  %v2243_v32 = vld [vmem:[%s2943_s13 + $0xf0] sm:$0xff] }
 0x120   : > { %v1499_v13 = vmul.f32 %v2226_v8, %v1483_v52  ;;  %v1500_v38 = vadd.f32 %v1484_v3, %v1447_v28  ;;  %v1501_v21 = vadd.f32 %v1485_v27, %v1448_v37  ;;  %v1502_v61 = vadd.f32 %v1486_v26, %v1449_v11  ;;  %v2242_v52 = vld [vmem:[%s2943_s13 + $0xe8] sm:$0xff] }
 0x121   : > { %v1503_v16 = vadd.f32 %v1487_v4, %v1450_v40  ;;  %v1504_v56 = vadd.f32 %v1488_v39, %v1451_v10  ;;  %v1505_v35 = vadd.f32 %v1489_v58, %v1452_v18  ;;  %v1506_v12 = vadd.f32 %v1490_v17, %v1453_v36  ;;  %v2244_v40 = vld [vmem:[%s2943_s13 + $0xf8] sm:$0xf] }
 0x122   : > { %v1507_v59 = vadd.f32 %v1491_v41, %v1454_v57  ;;  %v1508_v22 = vadd.f32 %v1492_v43, %v1455_v6  ;;  %v1509_v54 = vadd.f32 %v1493_v49, %v1456_v63  ;;  %v1510_v9 = vadd.f32 %v1494_v24, %v1457_v20 }
 0x123   : > { %v1511_v34 = vadd.f32 %v1495_v42, %v1458_v46  ;;  %v1512_v28 = vadd.f32 %v1496_v2, %v1459_v0  ;;  %v1513_v19 = vadd.f32 %v1497_v31, %v1460_v53  ;;  %v1514_v37 = vadd.f32 %v1498_v44, %v1461_v14 }
 0x124   : > { %v1515_v11 = vadd.f32 %v1499_v13, %v1462_v29  ;;  %v1544_v10 = vmul.f32 %v4223_v60, %v2236_v1  ;;  %v1545_v18 = vmul.f32 %v4223_v60, %v3596_v51  ;;  %v1546_v36 = vmul.f32 %v4223_v60, %v3599_v62 }
 0x125   : > { %v1547_v57 = vmul.f32 %v4223_v60, %v3602_v55  ;;  %v1548_v6 = vmul.f32 %v4223_v60, %v2240_v33  ;;  %v1549_v63 = vmul.f32 %v4223_v60, %v2241_v30  ;;  %v1550_v20 = vmul.f32 %v4223_v60, %v2242_v52 }
 0x126   : > { %v1551_v46 = vmul.f32 %v4223_v60, %v2243_v32  ;;  %v1552_v51 = vmul.f32 %v4223_v60, %v2244_v40  ;;  %v1553_v62 = vadd.f32 %v1537_v47, %v1500_v38  ;;  %v1554_v55 = vadd.f32 %v1538_v5, %v1501_v21 }
 0x127   : > { %v1555_v0 = vadd.f32 %v1539_v45, %v1502_v61  ;;  %v1556_v53 = vadd.f32 %v1540_v48, %v1503_v16  ;;  %v1557_v14 = vadd.f32 %v1541_v50, %v1504_v56  ;;  %v1558_v29 = vadd.f32 %v1542_v7, %v1505_v35 }
 0x128   : > { %v1559_v15 = vadd.f32 %v1543_v23, %v1506_v12  ;;  %v1560_v25 = vadd.f32 %v1544_v10, %v1507_v59  ;;  %v1561_v8 = vadd.f32 %v1545_v18, %v1508_v22  ;;  %v1562_v3 = vadd.f32 %v1546_v36, %v1509_v54  ;;  %1570 = vst [vmem:[%s3779_s16] sm:$0xff] %v1553_v62 }
 0x129   : > { %v1563_v27 = vadd.f32 %v1547_v57, %v1510_v9  ;;  %1571 = vst [vmem:[%s3779_s16 + $0x8] sm:$0xff] %v1554_v55  ;;  %1572 = vst [vmem:[%s3779_s16 + $0x10] sm:$0xff] %v1555_v0  ;;  %v1564_v47 = vadd.f32 %v1548_v6, %v1511_v34  ;;  %v1565_v5 = vadd.f32 %v1549_v63, %v1512_v28  ;;  %v1589_v23 = vsel %vm1588_vm0, %v1556_v53, 0.0 }
 0x12a   : > { %v1566_v45 = vadd.f32 %v1550_v20, %v1513_v19  ;;  %v3785_v48 = vadd.f32 %v1551_v46, %v1514_v37  ;;  %1573 = vst [vmem:[%s3779_s16 + $0x18] sm:$0xf] %v1556_v53  ;;  %1574 = vst [vmem:[%s3779_s16 + $0x20] sm:$0xff] %v1557_v14  ;;  %v1568_v50 = vadd.f32 %v1552_v51, %v1515_v11  ;;  %v1594_v44 = vsel %vm1588_vm0, %v1560_v25, 0.0 }
 0x12b   : > { %1575 = vst [vmem:[%s3779_s16 + $0x28] sm:$0xff] %v1558_v29  ;;  %1576 = vst [vmem:[%s3779_s16 + $0x30] sm:$0xff] %v1559_v15  ;;  %v1586_v7 = vadd.f32 %v1554_v55, %v1553_v62  ;;  %v1612_v4 = vmul.f32 %v1553_v62, %v1553_v62  ;;  %v1613_v39 = vmul.f32 %v1554_v55, %v1554_v55  ;;  %v1599_v9 = vsel %vm1588_vm0, %v1564_v47, 0.0 }
 0x12c   : > { %1577 = vst [vmem:[%s3779_s16 + $0x38] sm:$0xf] %v1560_v25  ;;  %1578 = vst [vmem:[%s3779_s16 + $0x40] sm:$0xff] %v1561_v8  ;;  %v1615_v58 = vmul.f32 %v1556_v53, %v1556_v53  ;;  %v1614_v41 = vmul.f32 %v1555_v0, %v1555_v0  ;;  %v1616_v2 = vmul.f32 %v1557_v14, %v1557_v14  ;;  %v1604_v6 = vsel %vm1588_vm0, %v1568_v50, 0.0 }
 0x12d   : > { %1579 = vst [vmem:[%s3779_s16 + $0x48] sm:$0xff] %v1562_v3  ;;  %1580 = vst [vmem:[%s3779_s16 + $0x50] sm:$0xff] %v1563_v27  ;;  %v1587_v26 = vadd.f32 %v1586_v7, %v1555_v0  ;;  %v1628_v49 = vadd.f32 %v1613_v39, %v1612_v4  ;;  %v1617_v38 = vmul.f32 %v1558_v29, %v1558_v29 }
 0x12e   : > { %1581 = vst [vmem:[%s3779_s16 + $0x58] sm:$0xf] %v1564_v47  ;;  %1582 = vst [vmem:[%s3779_s16 + $0x60] sm:$0xff] %v1565_v5  ;;  %v1630_v24 = vsel %vm1588_vm0, %v1615_v58, 0.0  ;;  %v1619_v61 = vmul.f32 %v1560_v25, %v1560_v25  ;;  %v1618_v56 = vmul.f32 %v1559_v15, %v1559_v15  ;;  %v1620_v22 = vmul.f32 %v1561_v8, %v1561_v8  ;;  %v4225_v58 = vld [vmem:[#allocation10_spill] sm:$0xff] }
 0x12f   : > { %1583 = vst [vmem:[%s3779_s16 + $0x68] sm:$0xff] %v1566_v45  ;;  %1584 = vst [vmem:[%s3779_s16 + $0x70] sm:$0xff] %v3785_v48  ;;  %v1590_v17 = vadd.f32 %v1589_v23, %v1587_v26  ;;  %v1629_v31 = vadd.f32 %v1628_v49, %v1614_v41  ;;  %v1621_v30 = vmul.f32 %v1562_v3, %v1562_v3  ;;  %v4224_v26 = vld [vmem:[#allocation11_spill] sm:$0xff] }
 0x130   : > { %1585 = vst [vmem:[%s3779_s16 + $0x78] sm:$0xf] %v1568_v50  ;;  %v1635_v1 = vsel %vm1588_vm0, %v1619_v61, 0.0  ;;  %v1623_v32 = vmul.f32 %v1564_v47, %v1564_v47  ;;  %v1622_v19 = vmul.f32 %v1563_v27, %v1563_v27  ;;  %v1624_v36 = vmul.f32 %v1565_v5, %v1565_v5 }
 0x131   : > { %v1591_v43 = vadd.f32 %v1590_v17, %v1557_v14  ;;  %v1631_v21 = vadd.f32 %v1630_v24, %v1629_v31  ;;  %v1625_v20 = vmul.f32 %v1566_v45, %v1566_v45  ;;  %v1627_v51 = vmul.f32 %v1568_v50, %v1568_v50  ;;  %v1660_v31 = vld [vmem:[%s3890_s2] sm:$0x1] (%p228_p1) }
 0x132   : > { %v1640_v10 = vsel %vm1588_vm0, %v1623_v32, 0.0  ;;  %v1626_v55 = vmul.f32 %v3785_v48, %v3785_v48 }
 0x133   : > { %v1592_v42 = vadd.f32 %v1591_v43, %v1558_v29  ;;  %v1632_v35 = vadd.f32 %v1631_v21, %v1616_v2  ;;  %v1645_v29 = vsel %vm1588_vm0, %v1627_v51, 0.0 }
 0x135   : > { %v1593_v13 = vadd.f32 %v1592_v42, %v1559_v15  ;;  %v1633_v59 = vadd.f32 %v1632_v35, %v1617_v38 }
 0x137   : > { %v1595_v16 = vadd.f32 %v1594_v44, %v1593_v13  ;;  %v1634_v54 = vadd.f32 %v1633_v59, %v1618_v56 }
 0x139   : > { %v1596_v12 = vadd.f32 %v1595_v16, %v1561_v8  ;;  %v1636_v52 = vadd.f32 %v1635_v1, %v1634_v54 }
 0x13b   : > { %v1597_v33 = vadd.f32 %v1596_v12, %v1562_v3  ;;  %v1637_v37 = vadd.f32 %v1636_v52, %v1620_v22 }
 0x13d   : > { %v1598_v34 = vadd.f32 %v1597_v33, %v1563_v27  ;;  %v1638_v40 = vadd.f32 %v1637_v37, %v1621_v30 }
 0x13f   : > { %v1600_v28 = vadd.f32 %v1599_v9, %v1598_v34  ;;  %v1639_v57 = vadd.f32 %v1638_v40, %v1622_v19 }
 0x141   : > { %v1601_v11 = vadd.f32 %v1600_v28, %v1565_v5  ;;  %v1641_v46 = vadd.f32 %v1640_v10, %v1639_v57 }
 0x143   : > { %v1602_v18 = vadd.f32 %v1601_v11, %v1566_v45  ;;  %v1642_v0 = vadd.f32 %v1641_v46, %v1624_v36 }
 0x145   : > { %v1603_v63 = vadd.f32 %v1602_v18, %v3785_v48  ;;  %v1643_v14 = vadd.f32 %v1642_v0, %v1625_v20 }
 0x147   : > { %v1605_v62 = vadd.f32 %v1604_v6, %v1603_v63  ;;  %v1644_v25 = vadd.f32 %v1643_v14, %v1626_v55 }
 0x149   : > { %v1606_v53 = vrot.slane %v1605_v62, 4  ;;  %v1646_v3 = vadd.f32 %v1645_v29, %v1644_v25 }
 0x14b   : > { %v1607_v15 = vadd.f32 %v1606_v53, %v1605_v62  ;;  %v1647_v47 = vrot.slane %v1646_v3, 4 }
 0x14d   : > { %v1608_v8 = vrot.slane %v1607_v15, 2  ;;  %v1648_v7 = vadd.f32 %v1647_v47, %v1646_v3 }
 0x14f   : > { %v1609_v27 = vadd.f32 %v1608_v8, %v1607_v15  ;;  %v1649_v23 = vrot.slane %v1648_v7, 2 }
 0x151   : > { %v1610_v5 = vrot.slane %v1609_v27, 1  ;;  %v1650_v50 = vadd.f32 %v1649_v23, %v1648_v7 }
 0x153   : > { %v1611_v45 = vadd.f32 %v1610_v5, %v1609_v27  ;;  %v1651_v39 = vrot.slane %v1650_v50, 1 }
 0x155   : > { %v1653_v4 = vadd.f32 %v4224_v26, %v1611_v45   ;;  %v1652_v48 = vadd.f32 %v1651_v39, %v1650_v50  ;;  %230 = sbr.rel (!%p228_p1) target bundleno = 86 (0x56), region = 100 }
 0x157   : > { %v1654_v17 = vadd.f32 %v4225_v58, %v1652_v48   ;;  %v4227_v38 = vmov %v1653_v4  ;;  %v1655_v41 = vmul.f32 (%p228_p1), 0.0012755102, %v1653_v4 }
 0x158   :  { %v3829_v38 = vld [vmem:[%s3891_s3] sm:$0x1] (%p228_p1) }
 0x159   : > { %v4226_v37 = vmov %v1654_v17  ;;  %v1656_v43 = vmul.f32 (%p228_p1), 0.0012755102, %v1654_v17  ;;  %v1657_v49 = vmul.f32 (%p228_p1), %v1655_v41, %v1655_v41 }
 0x15b   :  { %v1658_v24 = vsub.f32 %v1656_v43, %v1657_v49 }
 0x15d   :  { %v1659_v42 = vmax.f32 %v1658_v24, 0.0 }
 0x15f   :  { %v1661_v2 = vadd.f32 1e-05, %v1659_v42 }
 0x161   :  { %2312 = vrsqrt.f32 %v1661_v2 }
 0x16e   :  { %v2313_v44 = vpop.eup %2312 }
 0x16f   :  { %v3824_v13 = vmul.f32 %v2313_v44, %v1660_v31 }
 0x171   :  { %v3832_v60 = vmul.f32 %v3824_v13, %v1655_v41 }
 0x173   :  { %v1666_v21 = vsub.f32 %v3829_v38, %v3832_v60 }
 0x174 LB: > { %v4228_v61 = vld [vmem:[#allocation12_spill] sm:$0xff]  ;;  %s2270_s2 = sshll.u32 %s2352_s0, 7  ;;  %s1672_s0 = sadd.s32 1, %s2352_s0   ;;  %s2352_s0 = sphi %s3836_s0, %s1672_s0  }
 0x175   : > { %v1696_v16 = vrot.slane %v3824_v13, %v4228_v61  ;;  %s3847_s22 = scalar_lea.vmem %s3892_s4, %s2270_s2  ;;  %v1718_v56 = vrot.slane %v1666_v21, %v4228_v61  ;;  %p1669_p2 = scmp.ge.s32.totalorder %s1672_s0, 7  }
 0x176   : > { %v1676_v35 = vld [vmem:[%s3847_s22] sm:$0xff]  ;;  %v1677_v12 = vld [vmem:[%s3847_s22 + $0x8] sm:$0xff]  ;;  %v1678_v59 = vld [vmem:[%s3847_s22 + $0x10] sm:$0xff] }
 0x177   : > { %v1698_v1 = vmul.f32 %v1696_v16, %v1676_v35  ;;  %v1699_v33 = vmul.f32 %v1696_v16, %v1677_v12  ;;  %v1700_v22 = vmul.f32 %v1696_v16, %v1678_v59  ;;  %v1679_v54 = vld [vmem:[%s3847_s22 + $0x18] sm:$0xf]  ;;  %v1680_v9 = vld [vmem:[%s3847_s22 + $0x20] sm:$0xff]  ;;  %v1681_v34 = vld [vmem:[%s3847_s22 + $0x28] sm:$0xff] }
 0x178   : > { %v1701_v30 = vmul.f32 %v1696_v16, %v1679_v54  ;;  %v1702_v52 = vmul.f32 %v1696_v16, %v1680_v9  ;;  %v1703_v32 = vmul.f32 %v1696_v16, %v1681_v34  ;;  %v1682_v28 = vld [vmem:[%s3847_s22 + $0x30] sm:$0xff]  ;;  %v1683_v19 = vld [vmem:[%s3847_s22 + $0x38] sm:$0xf]  ;;  %v1684_v37 = vld [vmem:[%s3847_s22 + $0x40] sm:$0xff] }
 0x179   : > { %v1720_v11 = vadd.f32 %v1718_v56, %v1698_v1  ;;  %v1721_v40 = vadd.f32 %v1718_v56, %v1699_v33  ;;  %v1722_v10 = vadd.f32 %v1718_v56, %v1700_v22  ;;  %v1704_v18 = vmul.f32 %v1696_v16, %v1682_v28  ;;  %v1685_v36 = vld [vmem:[%s3847_s22 + $0x48] sm:$0xff]  ;;  %v1686_v57 = vld [vmem:[%s3847_s22 + $0x50] sm:$0xff]  ;;  %v1687_v6 = vld [vmem:[%s3847_s22 + $0x58] sm:$0xf] }
 0x17a   : > { %v1723_v63 = vadd.f32 %v1718_v56, %v1701_v30  ;;  %v1724_v20 = vadd.f32 %v1718_v56, %v1702_v52  ;;  %v1725_v46 = vadd.f32 %v1718_v56, %v1703_v32  ;;  %v1705_v51 = vmul.f32 %v1696_v16, %v1683_v19  ;;  %v1688_v62 = vld [vmem:[%s3847_s22 + $0x60] sm:$0xff]  ;;  %v1689_v55 = vld [vmem:[%s3847_s22 + $0x68] sm:$0xff]  ;;  %v1690_v0 = vld [vmem:[%s3847_s22 + $0x70] sm:$0xff] }
 0x17b   : > { %1736 = vst [vmem:[%s3847_s22] sm:$0xff] %v1720_v11  ;;  %1737 = vst [vmem:[%s3847_s22 + $0x8] sm:$0xff] %v1721_v40  ;;  %v1726_v53 = vadd.f32 %v1718_v56, %v1704_v18  ;;  %v1706_v14 = vmul.f32 %v1696_v16, %v1684_v37  ;;  %v1707_v29 = vmul.f32 %v1696_v16, %v1685_v36  ;;  %v1691_v25 = vld [vmem:[%s3847_s22 + $0x78] sm:$0xf] }
 0x17c   : > { %1738 = vst [vmem:[%s3847_s22 + $0x10] sm:$0xff] %v1722_v10  ;;  %v1708_v15 = vmul.f32 %v1696_v16, %v1686_v57  ;;  %1739 = vst [vmem:[%s3847_s22 + $0x18] sm:$0xf] %v1723_v63  ;;  %v1727_v8 = vadd.f32 %v1718_v56, %v1705_v51  ;;  %v1709_v3 = vmul.f32 %v1696_v16, %v1687_v6 }
 0x17d   : > { %1740 = vst [vmem:[%s3847_s22 + $0x20] sm:$0xff] %v1724_v20  ;;  %1741 = vst [vmem:[%s3847_s22 + $0x28] sm:$0xff] %v1725_v46  ;;  %v1710_v27 = vmul.f32 %v1696_v16, %v1688_v62  ;;  %v1711_v47 = vmul.f32 %v1696_v16, %v1689_v55  ;;  %v1728_v5 = vadd.f32 %v1718_v56, %v1706_v14 }
 0x17e   : > { %1742 = vst [vmem:[%s3847_s22 + $0x30] sm:$0xff] %v1726_v53  ;;  %v1729_v7 = vadd.f32 %v1718_v56, %v1707_v29  ;;  %v1730_v45 = vadd.f32 %v1718_v56, %v1708_v15  ;;  %v1712_v23 = vmul.f32 %v1696_v16, %v1690_v0  ;;  %1743 = vst [vmem:[%s3847_s22 + $0x38] sm:$0xf] %v1727_v8 }
 0x17f   : > { %v1731_v50 = vadd.f32 %v1718_v56, %v1709_v3  ;;  %v1732_v26 = vadd.f32 %v1718_v56, %v1710_v27  ;;  %v1733_v4 = vadd.f32 %v1718_v56, %v1711_v47  ;;  %v1713_v39 = vmul.f32 %v1696_v16, %v1691_v25  ;;  %1744 = vst [vmem:[%s3847_s22 + $0x40] sm:$0xff] %v1728_v5 }
 0x180   : > { %1745 = vst [vmem:[%s3847_s22 + $0x48] sm:$0xff] %v1729_v7  ;;  %1746 = vst [vmem:[%s3847_s22 + $0x50] sm:$0xff] %v1730_v45  ;;  %v1734_v48 = vadd.f32 %v1718_v56, %v1712_v23  ;;  %1671 = sbr.rel (!%p1669_p2) target bundleno = 372 (0x174), region = 111 }
 0x181   : > { %1747 = vst [vmem:[%s3847_s22 + $0x58] sm:$0xf] %v1731_v50  ;;  %1748 = vst [vmem:[%s3847_s22 + $0x60] sm:$0xff] %v1732_v26  ;;  %v1735_v58 = vadd.f32 %v1718_v56, %v1713_v39 }
 0x182   : > { %1749 = vst [vmem:[%s3847_s22 + $0x68] sm:$0xff] %v1733_v4  ;;  %1750 = vst [vmem:[%s3847_s22 + $0x70] sm:$0xff] %v1734_v48 }
 0x183   : > { %1751 = vst [vmem:[%s3847_s22 + $0x78] sm:$0xf] %v1735_v58 }

</bundles_post_ra>
